<compile_context>
chip_gen: v5e
topology: v5e:2x2
jax: 0.10.0
libtpu: 0.0.40
codegen_flags: <defaults>
</compile_context>

<pallas_src>
import functools
import math

import jax
import jax.numpy as jnp
from jax import lax
from jax.experimental import pallas as pl
from jax.experimental.pallas import tpu as pltpu

# ----------------------------- small test config -----------------------------
B = 2                 # batch
SEQ = 8               # context length (CLIP uses 77; pad to a sublane multiple at real sizes)
VOCAB = 64            # vocab size (synthetic)
CLIP_WIDTH = 32       # CLIP text width (512 in real ViT-B/32)
CLIP_HEADS = 4
CLIP_LAYERS = 2       # 12 in real CLIP; synthetic small stack
CLIP_FF = 4 * CLIP_WIDTH         # 128 -> lane-dense MLP intermediate
LATENT_DIM = CLIP_WIDTH          # text_latent_dim == CLIP width -> text_pre_proj = Identity
TEXT_LAYERS = 4       # num_text_layers (module default)
TEXT_HEADS = 4        # text_num_heads
TEXT_FF = CLIP_FF     # text_ff_size; equal to CLIP FF (true at real defaults: 2048) -> stacks fuse
TIME_EMBED_DIM = 128  # time_embed_dim (2048 in module; 128 keeps output lane-dense)

LN_EPS = 1e-5

# Matmul operand dtype.  Keep f32 for the toy-size correctness check; at real
# CLIP sizes flip to jnp.bfloat16 (weight-DMA-bound regime; accumulation and all
# LN/softmax/GELU math stays f32).
MATMUL_DTYPE = jnp.float32

# Explicit scoped-VMEM budget.  Defaults: 16 MiB (v5e) / 32 MiB (v6e, v7x);
# 64 MiB fits v7x physical VMEM and comfortably holds the bf16 double-buffered
# per-layer weight slab (~12.6 MB at D=512/FF=2048) + resident activations.
VMEM_LIMIT_BYTES = 64 * 1024 * 1024


# --------------- feature probe: single-buffered constant operands -------------
@functools.cache
def _single_buffer_consts_ok():
    """Probe whether pipeline_mode=pl.Buffered(1) works on this jax build.

    Constant-index operands never change across grid steps, so double-buffering
    them is pure VMEM waste.  If the build rejects (or mis-handles) Buffered(1)
    we silently fall back to the default double-buffered spec.
    """
    try:
        const = jnp.full((8, 128), 2.0, jnp.float32)
        stream = jnp.arange(16 * 128, dtype=jnp.float32).reshape(16, 128)
        dummy = jnp.zeros((1,), jnp.int32)

        def body(dummy_ref, c_ref, s_ref, o_ref):
            del dummy_ref
            o_ref[...] = c_ref[...] + s_ref[...]

        out = pl.pallas_call(
            body,
            out_shape=jax.ShapeDtypeStruct((16, 128), jnp.float32),
            grid_spec=pltpu.PrefetchScalarGridSpec(
                num_scalar_prefetch=1,
                grid=(2,),
                in_specs=[pl.BlockSpec((8, 128), lambda i, *_: (0, 0),
                                       pipeline_mode=pl.Buffered(1)),
                          pl.BlockSpec((8, 128), lambda i, *_: (i, 0))],
                out_specs=pl.BlockSpec((8, 128), lambda i, *_: (i, 0))),
        )(dummy, const, stream)
        out = jax.block_until_ready(out)
        return bool(jnp.allclose(out, stream + 2.0))
    except Exception:
        return False


# ------------------------------ kernel math helpers ---------------------------
def _ln(v, g, b):
    mu = jnp.mean(v, axis=-1, keepdims=True)
    var = jnp.mean(jnp.square(v - mu), axis=-1, keepdims=True)
    return (v - mu) * lax.rsqrt(var + LN_EPS) * g + b


def _erf_approx(x):
    # Abramowitz & Stegun 7.1.26 (max abs err ~1.5e-7); avoids relying on an erf
    # lowering inside Mosaic.  Matches PyTorch's exact (erf) GELU closely.
    a1, a2, a3, a4, a5 = 0.254829592, -0.284496736, 1.421413741, -1.453152027, 1.061405429
    p = 0.3275911
    sgn = jnp.where(x >= 0, 1.0, -1.0)
    ax = jnp.abs(x)
    t = 1.0 / (1.0 + p * ax)
    poly = ((((a5 * t + a4) * t + a3) * t + a2) * t + a1) * t
    return sgn * (1.0 - poly * jnp.exp(-ax * ax))


def _gelu_erf(x):
    return 0.5 * x * (1.0 + _erf_approx(x * 0.7071067811865476))


def _quick_gelu(x):
    # x * sigmoid(1.702 x); divide moved to the EUP via approximate reciprocal.
    return x * pl.reciprocal(1.0 + jnp.exp(-1.702 * x), approx=True)


def _softmax_lastdim(s):
    m = jnp.max(s, axis=-1, keepdims=True)
    p = jnp.exp(s - m)
    return p * pl.reciprocal(jnp.sum(p, axis=-1, keepdims=True), approx=True)


def _encoder_layer(x, w_in, b_in, w_out, b_out, w1, b1, w2, b2, g1, be1, g2, be2,
                   *, num_heads, pre_norm, causal, quick_gelu):
    """One transformer encoder layer on in-register values (f32 activations).

    pre_norm=True,  causal=True,  quick_gelu=True  -> CLIP ResidualAttentionBlock
    pre_norm=False, causal=False, quick_gelu=False -> nn.TransformerEncoderLayer
    """
    Bq, T, D = x.shape
    H = num_heads
    hd = D // H
    scale = 1.0 / math.sqrt(hd)
    cdt = w_in.dtype  # matmul operand dtype (f32 or bf16); accumulation is f32

    def attn(v):
        v2 = v.reshape(Bq * T, D).astype(cdt)
        # Fused QKV projection: one (B*T, D) @ (D, 3D) MXU matmul.
        qkv = jnp.dot(v2, w_in, preferred_element_type=jnp.float32) + b_in
        if causal:
            ti = lax.broadcasted_iota(jnp.int32, (T, T), 0)
            si = lax.broadcasted_iota(jnp.int32, (T, T), 1)
            bias = jnp.where(si <= ti, 0.0, -1e30).astype(jnp.float32)[None]
        # Per-head loop: only the tiny (T,T) score/softmax/PV work is per head.
        # (Head-batched rank-4 einsums need non-minor transposes / multi-batch
        #  dot_general that Mosaic does not reliably lower.)
        heads = []
        for h in range(H):
            qh = (qkv[:, h * hd:(h + 1) * hd]).reshape(Bq, T, hd) * scale
            kh = (qkv[:, D + h * hd:D + (h + 1) * hd]).reshape(Bq, T, hd)
            vh = (qkv[:, 2 * D + h * hd:2 * D + (h + 1) * hd]).reshape(Bq, T, hd)
            s = jnp.einsum('btd,bsd->bts', qh.astype(cdt), kh.astype(cdt),
                           preferred_element_type=jnp.float32)
            if causal:
                s = s + bias
            p = _softmax_lastdim(s)
            oh = jnp.einsum('bts,bsd->btd', p.astype(cdt), vh.astype(cdt),
                            preferred_element_type=jnp.float32)
            heads.append(oh.reshape(Bq * T, hd))
        # Fused output projection: one (B*T, D) @ (D, D) MXU matmul.
        o = jnp.concatenate(heads, axis=-1).astype(cdt)
        return (jnp.dot(o, w_out, preferred_element_type=jnp.float32)
                + b_out).reshape(Bq, T, D)

    def mlp(v):
        h = jnp.dot(v.reshape(Bq * T, D).astype(cdt), w1,
                    preferred_element_type=jnp.float32) + b1
        h = _quick_gelu(h) if quick_gelu else _gelu_erf(h)
        out = jnp.dot(h.astype(cdt), w2, preferred_element_type=jnp.float32) + b2
        return out.reshape(Bq, T, D)

    if pre_norm:
        x = x + attn(_ln(x, g1, be1))
        x = x + mlp(_ln(x, g2, be2))
    else:
        x = _ln(x + attn(x), g1, be1)
        x = _ln(x + mlp(x), g2, be2)
    return x


# ----------------------------------- kernel -----------------------------------
def encoder_stack_kernel(eot_ref,  # scalar-prefetch: EOT positions (B,) int32 in SMEM
                         x_ref,
                         w_in_ref, b_in_ref, w_out_ref, b_out_ref,
                         w1_ref, b1_ref, w2_ref, b2_ref,
                         g1_ref, be1_ref, g2_ref, be2_ref,
                         lnf_g_ref, lnf_b_ref, ln_g_ref, ln_b_ref,
                         proj_w_ref, proj_b_ref,
                         o_ref, x_sc,
                         *, clip_layers, clip_heads, text_heads):
    """Fused CLIP text stack + textTransEncoder: grid over all layers.

    Activation (B, T, D) stays resident in VMEM scratch across all grid steps;
    per-layer weights are streamed (double-buffered DMA behind compute).
    """
    l = pl.program_id(0)
    last = pl.num_programs(0) - 1

    @pl.when(l == 0)
    def _():
        x_sc[...] = x_ref[...].astype(jnp.float32)

    layer_w = (w_in_ref[0], b_in_ref[0], w_out_ref[0], b_out_ref[0],
               w1_ref[0], b1_ref[0], w2_ref[0], b2_ref[0],
               g1_ref[0], be1_ref[0], g2_ref[0], be2_ref[0])

    @pl.when(l < clip_layers)
    def _():  # CLIP ResidualAttentionBlock: pre-LN, causal mask, QuickGELU
        x_sc[...] = _encoder_layer(x_sc[...], *layer_w, num_heads=clip_heads,
                                   pre_norm=True, causal=True, quick_gelu=True)

    @pl.when(l == clip_layers - 1)
    def _():  # clip.ln_final fused onto the last CLIP step
        x_sc[...] = _ln(x_sc[...], lnf_g_ref[...], lnf_b_ref[...])

    @pl.when(l >= clip_layers)
    def _():  # nn.TransformerEncoderLayer: post-LN, no mask, exact GELU
        x_sc[...] = _encoder_layer(x_sc[...], *layer_w, num_heads=text_heads,
                                   pre_norm=False, causal=False, quick_gelu=False)

    @pl.when(l == last)
    def _():  # EOT gather (indices from SMEM) -> text_ln -> text_proj, B rows only
        Bq, T, D = x_sc.shape
        rows = []
        for b in range(Bq):
            sel = (lax.broadcasted_iota(jnp.int32, (T, 1), 0)
                   == eot_ref[b]).astype(jnp.float32)
            rows.append(jnp.sum(sel * x_sc[b], axis=0, keepdims=True))
        pooled = _ln(jnp.concatenate(rows, axis=0),
                     ln_g_ref[...], ln_b_ref[...])                      # (B, D)
        o_ref[...] = (jnp.dot(pooled.astype(proj_w_ref.dtype), proj_w_ref[...],
                              preferred_element_type=jnp.float32)
                      + proj_b_ref[...]).astype(o_ref.dtype)


# ------------------------------ pallas wrapper --------------------------------
def _stacked_spec(a):
    # (L_total, ...) weight stack: stream one layer slice per grid step
    # (double-buffered -> next layer's DMA hides behind current layer's compute).
    nd = a.ndim
    return pl.BlockSpec((1,) + a.shape[1:], lambda l, *_: (l,) + (0,) * (nd - 1))


def _const_spec(a):
    # Whole array, constant block index -> fetched once, resident in VMEM.
    # Single-buffered (no double-buffer VMEM waste) when the build supports it.
    nd = a.ndim
    idx = lambda l, *_: (0,) * nd
    if _single_buffer_consts_ok():
        return pl.BlockSpec(a.shape, idx, pipeline_mode=pl.Buffered(1))
    return pl.BlockSpec(a.shape, idx)


def run_encoder_stack(x, packed, eot):
    sp = packed['stack']
    L = sp['w_in'].shape[0]
    TE = packed['proj_w'].shape[1]
    stacked = (sp['w_in'], sp['b_in'], sp['w_out'], sp['b_out'],
               sp['w1'], sp['b1'], sp['w2'], sp['b2'],
               sp['g1'], sp['be1'], sp['g2'], sp['be2'])
    tail = (packed['clip_lnf_g'], packed['clip_lnf_b'],
            packed['text_ln_g'], packed['text_ln_b'],
            packed['proj_w'], packed['proj_b'])
    args = (x,) + stacked + tail
    in_specs = ([_const_spec(x)] + [_stacked_spec(a) for a in stacked]
                + [_const_spec(a) for a in tail])
    return pl.pallas_call(
        functools.partial(encoder_stack_kernel,
                          clip_layers=CLIP_LAYERS,
                          clip_heads=CLIP_HEADS, text_heads=TEXT_HEADS),
        out_shape=jax.ShapeDtypeStruct((x.shape[0], TE), jnp.float32),
        grid_spec=pltpu.PrefetchScalarGridSpec(
            num_scalar_prefetch=1,          # EOT indices -> SMEM
            grid=(L,),
            in_specs=in_specs,
            out_specs=pl.BlockSpec((x.shape[0], TE), lambda l, *_: (0, 0)),
            scratch_shapes=[pltpu.VMEM(x.shape, jnp.float32)]),
        # Layer axis is sequential (resident activation) -> "arbitrary".
        # No "parallel" batch axis: at small B the stack is weight-DMA-bound and
        # splitting across v7x's two TCs would duplicate the weight stream.
        compiler_params=pltpu.CompilerParams(
            dimension_semantics=("arbitrary",),
            vmem_limit_bytes=VMEM_LIMIT_BYTES),
    )(eot, *args)


# ------------------------------ one-time weight packing ------------------------
def _pack_stack(layers, dtype):
    out = {}
    for name in ('w_in', 'b_in', 'w_out', 'b_out', 'w1', 'b1', 'w2', 'b2',
                 'g1', 'be1', 'g2', 'be2'):
        a = jnp.stack([lp[name] for lp in layers], axis=0)
        if a.ndim == 2:              # vectors -> (L, 1, X) so blocks stay >=2-D
            a = a[:, None, :]
        # Only the MXU operands get the (optionally reduced-precision) cast.
        cast = dtype if name in ('w_in', 'w_out', 'w1', 'w2') else jnp.float32
        out[name] = a.astype(cast)
    return out


def pack_params(params):
    """Done ONCE at init (not per forward): stack & fuse layers, reshape, cast."""
    # Fused single-stack streaming requires identical per-layer weight shapes in
    # both stacks (true at real defaults: D=512, FF=2048 for CLIP and the text
    # encoder alike).
    for k in ('w_in', 'b_in', 'w_out', 'b_out', 'w1', 'b1', 'w2', 'b2'):
        assert (params['clip_layers'][0][k].shape
                == params['text_layers'][0][k].shape), "stacks must match to fuse"
    layers = params['clip_layers'] + params['text_layers']
    return {
        'tok_emb': params['tok_emb'],
        'pos_emb': params['pos_emb'],
        'stack': _pack_stack(layers, MATMUL_DTYPE),
        'clip_lnf_g': params['clip_lnf_g'].reshape(1, -1),
        'clip_lnf_b': params['clip_lnf_b'].reshape(1, -1),
        'text_ln_g': params['text_ln_g'].reshape(1, -1),
        'text_ln_b': params['text_ln_b'].reshape(1, -1),
        'proj_w': params['proj_w'].astype(MATMUL_DTYPE),
        'proj_b': params['proj_b'].reshape(1, -1),
    }


# ------------------------------ full forward ----------------------------------
@jax.jit
def text_encoder_forward(tokens, packed):
    # TODO(synk): clip.tokenize (string -> token ids) has no Pallas equivalent;
    # the forward consumes pre-tokenized int32 ids directly.
    # Token + positional embedding and the argmax are tiny XLA glue ops.
    x = jnp.take(packed['tok_emb'], tokens, axis=0) + packed['pos_emb'][None]
    eot = jnp.argmax(tokens, axis=-1).astype(jnp.int32)       # text.argmax(dim=-1)
    # clip.transformer + clip.ln_final + text_pre_proj(Identity) +
    # textTransEncoder + text_ln + EOT gather + text_proj — one fused pallas_call.
    return run_encoder_stack(x, packed, eot)


# ------------------------------ pure-JAX reference -----------------------------
def _ref_ln(v, g, b):
    mu = jnp.mean(v, axis=-1, keepdims=True)
    var = jnp.mean(jnp.square(v - mu), axis=-1, keepdims=True)
    return (v - mu) * lax.rsqrt(var + LN_EPS) * g + b


def _ref_layer(x, lp, *, num_heads, pre_norm, causal, quick_gelu):
    Bq, T, D = x.shape
    H, hd = num_heads, D // num_heads

    def attn(v):
        qkv = v @ lp['w_in'] + lp['b_in']
        q, k, w = jnp.split(qkv, 3, axis=-1)
        q = q * (1.0 / math.sqrt(hd))
        q = q.reshape(Bq, T, H, hd)
        k = k.reshape(Bq, T, H, hd)
        w = w.reshape(Bq, T, H, hd)
        s = jnp.einsum('bthd,bshd->bhts', q, k)
        if causal:
            mask = jnp.where(jnp.tril(jnp.ones((T, T), bool)), 0.0, -1e30)
            s = s + mask[None, None]
        p = jax.nn.softmax(s, axis=-1)
        o = jnp.einsum('bhts,bshd->bthd', p, w).reshape(Bq, T, D)
        return o @ lp['w_out'] + lp['b_out']

    def mlp(v):
        h = v @ lp['w1'] + lp['b1']
        if quick_gelu:
            h = h * jax.nn.sigmoid(1.702 * h)
        else:
            h = jax.nn.gelu(h, approximate=False)
        return h @ lp['w2'] + lp['b2']

    if pre_norm:
        x = x + attn(_ref_ln(x, lp['g1'], lp['be1']))
        x = x + mlp(_ref_ln(x, lp['g2'], lp['be2']))
    else:
        x = _ref_ln(x + attn(x), lp['g1'], lp['be1'])
        x = _ref_ln(x + mlp(x), lp['g2'], lp['be2'])
    return x


def ref_forward(tokens, params):
    x = jnp.take(params['tok_emb'], tokens, axis=0) + params['pos_emb'][None]
    for lp in params['clip_layers']:
        x = _ref_layer(x, lp, num_heads=CLIP_HEADS, pre_norm=True, causal=True, quick_gelu=True)
    x = _ref_ln(x, params['clip_lnf_g'], params['clip_lnf_b'])
    for lp in params['text_layers']:
        x = _ref_layer(x, lp, num_heads=TEXT_HEADS, pre_norm=False, causal=False, quick_gelu=False)
    x = _ref_ln(x, params['text_ln_g'], params['text_ln_b'])
    eot = jnp.argmax(tokens, axis=-1)
    pooled = x[jnp.arange(x.shape[0]), eot]
    return pooled @ params['proj_w'] + params['proj_b']


# ------------------------------ deterministic params ---------------------------
def init_layer_params(key, d, ff):
    ks = jax.random.split(key, 8)
    s = 0.2
    return dict(
        w_in=jax.random.normal(ks[0], (d, 3 * d), jnp.float32) * s,
        b_in=jax.random.normal(ks[1], (3 * d,), jnp.float32) * s,
        w_out=jax.random.normal(ks[2], (d, d), jnp.float32) * s,
        b_out=jax.random.normal(ks[3], (d,), jnp.float32) * s,
        w1=jax.random.normal(ks[4], (d, ff), jnp.float32) * s,
        b1=jax.random.normal(ks[5], (ff,), jnp.float32) * s,
        w2=jax.random.normal(ks[6], (ff, d), jnp.float32) * s,
        b2=jax.random.normal(ks[7], (d,), jnp.float32) * s,
        g1=jnp.ones((d,), jnp.float32), be1=jnp.zeros((d,), jnp.float32),
        g2=jnp.ones((d,), jnp.float32), be2=jnp.zeros((d,), jnp.float32),
    )


def init_params(key):
    n = 4 + CLIP_LAYERS + TEXT_LAYERS
    ks = list(jax.random.split(key, n))
    p = {}
    p['tok_emb'] = jax.random.normal(ks[0], (VOCAB, CLIP_WIDTH), jnp.float32) * 0.5
    p['pos_emb'] = jax.random.normal(ks[1], (SEQ, CLIP_WIDTH), jnp.float32) * 0.1
    p['clip_layers'] = [init_layer_params(ks[2 + i], CLIP_WIDTH, CLIP_FF)
                        for i in range(CLIP_LAYERS)]
    off = 2 + CLIP_LAYERS
    p['text_layers'] = [init_layer_params(ks[off + i], LATENT_DIM, TEXT_FF)
                        for i in range(TEXT_LAYERS)]
    p['clip_lnf_g'] = jnp.ones((CLIP_WIDTH,), jnp.float32)
    p['clip_lnf_b'] = jnp.zeros((CLIP_WIDTH,), jnp.float32)
    p['text_ln_g'] = jnp.ones((LATENT_DIM,), jnp.float32)
    p['text_ln_b'] = jnp.zeros((LATENT_DIM,), jnp.float32)
    p['proj_w'] = jax.random.normal(ks[off + TEXT_LAYERS],
                                    (LATENT_DIM, TIME_EMBED_DIM), jnp.float32) * 0.2
    p['proj_b'] = jax.random.normal(ks[off + TEXT_LAYERS + 1],
                                    (TIME_EMBED_DIM,), jnp.float32) * 0.2
    return p


# ----------------------------------- main --------------------------------------
if __name__ == "__main__":
    key = jax.random.PRNGKey(0)
    k_tok, k_par = jax.random.split(key)
    tokens = jax.random.randint(k_tok, (B, SEQ), 0, VOCAB, dtype=jnp.int32)
    params = init_params(k_par)
    packed = pack_params(params)          # one-time weight packing (not per call)

    _single_buffer_consts_ok()            # warm the feature probe before tracing

    out = jax.block_until_ready(text_encoder_forward(tokens, packed))
    assert out.shape == (B, TIME_EMBED_DIM), out.shape

    with jax.default_matmul_precision('highest'):
        ref = jax.block_until_ready(ref_forward(tokens, params))

    if not bool(jnp.allclose(out, ref, atol=1e-2, rtol=1e-2)):
        max_err = float(jnp.max(jnp.abs(out - ref)))
        raise SystemExit(f"mismatch vs reference, max abs err={max_err}")

    print("KERNEL_OK")
</pallas_src>

<mosaic_0001>
module attributes {stable_mosaic.version = 11 : i64} {
  func.func @body(%arg0: i32, %arg1: memref<1xi32, #tpu.memory_space<smem>>, %arg2: memref<8x128xf32, #tpu.memory_space<vmem>>, %arg3: memref<8x128xf32, #tpu.memory_space<vmem>>, %arg4: memref<8x128xf32, #tpu.memory_space<vmem>>) attributes {dimension_semantics = [#tpu.dimension_semantics<arbitrary>], iteration_bounds = array<i64: 2>, scalar_prefetch = 1 : i64, scratch_operands = 0 : i64, tpu.core_type = #tpu.core_type<tc>, window_params = [{pipeline_mode = #tpu.pipeline_mode<synchronous>, transform_indices = @transform_0, window_bounds = array<i64: 8, 128>}, {transform_indices = @transform_1, window_bounds = array<i64: 8, 128>}, {transform_indices = @transform_2, window_bounds = array<i64: 8, 128>}]} {
    %c0 = arith.constant 0 : index
    %c0_0 = arith.constant 0 : index
    %0 = vector.load %arg2[%c0, %c0_0] : memref<8x128xf32, #tpu.memory_space<vmem>>, vector<8x128xf32>
    %c0_1 = arith.constant 0 : index
    %c0_2 = arith.constant 0 : index
    %1 = vector.load %arg3[%c0_1, %c0_2] : memref<8x128xf32, #tpu.memory_space<vmem>>, vector<8x128xf32>
    %2 = arith.addf %0, %1 : vector<8x128xf32>
    %c0_3 = arith.constant 0 : index
    %c0_4 = arith.constant 0 : index
    %3 = vector.load %arg4[%c0_3, %c0_4] : memref<8x128xf32, #tpu.memory_space<vmem>>, vector<8x128xf32>
    tpu.vector_store %arg4[%c0_3, %c0_4], %2 {strides = array<i32>} : memref<8x128xf32, #tpu.memory_space<vmem>>, vector<8x128xf32>,
    return
  }
  func.func @transform_0(%arg0: i32, %arg1: memref<1xi32, #tpu.memory_space<smem>>) -> (i32, i32) {
    %c0_i32 = arith.constant 0 : i32
    %c0_i32_0 = arith.constant 0 : i32
    %c0_i32_1 = arith.constant 0 : i32
    return %c0_i32, %c0_i32_0 : i32, i32
  }
  func.func @transform_1(%arg0: i32, %arg1: memref<1xi32, #tpu.memory_space<smem>>) -> (i32, i32) {
    %c0_i32 = arith.constant 0 : i32
    %c0_i32_0 = arith.constant 0 : i32
    return %arg0, %c0_i32 : i32, i32
  }
  func.func @transform_2(%arg0: i32, %arg1: memref<1xi32, #tpu.memory_space<smem>>) -> (i32, i32) {
    %c0_i32 = arith.constant 0 : i32
    %c0_i32_0 = arith.constant 0 : i32
    return %arg0, %c0_i32 : i32, i32
  }
}

module attributes {stable_mosaic.version = 11 : i64} {
  func.func @encoder_stack_kernel(%arg0: i32, %arg1: memref<2xi32, #tpu.memory_space<smem>>, %arg2: memref<2x8x32xf32, #tpu.memory_space<vmem>>, %arg3: memref<1x32x96xf32, #tpu.memory_space<vmem>>, %arg4: memref<1x1x96xf32, #tpu.memory_space<vmem>>, %arg5: memref<1x32x32xf32, #tpu.memory_space<vmem>>, %arg6: memref<1x1x32xf32, #tpu.memory_space<vmem>>, %arg7: memref<1x32x128xf32, #tpu.memory_space<vmem>>, %arg8: memref<1x1x128xf32, #tpu.memory_space<vmem>>, %arg9: memref<1x128x32xf32, #tpu.memory_space<vmem>>, %arg10: memref<1x1x32xf32, #tpu.memory_space<vmem>>, %arg11: memref<1x1x32xf32, #tpu.memory_space<vmem>>, %arg12: memref<1x1x32xf32, #tpu.memory_space<vmem>>, %arg13: memref<1x1x32xf32, #tpu.memory_space<vmem>>, %arg14: memref<1x1x32xf32, #tpu.memory_space<vmem>>, %arg15: memref<1x32xf32, #tpu.memory_space<vmem>>, %arg16: memref<1x32xf32, #tpu.memory_space<vmem>>, %arg17: memref<1x32xf32, #tpu.memory_space<vmem>>, %arg18: memref<1x32xf32, #tpu.memory_space<vmem>>, %arg19: memref<32x128xf32, #tpu.memory_space<vmem>>, %arg20: memref<1x128xf32, #tpu.memory_space<vmem>>, %arg21: memref<2x128xf32, #tpu.memory_space<vmem>>, %arg22: memref<2x8x32xf32, #tpu.memory_space<vmem>>) attributes {dimension_semantics = [#tpu.dimension_semantics<arbitrary>], iteration_bounds = array<i64: 6>, scalar_prefetch = 1 : i64, scratch_operands = 1 : i64, tpu.core_type = #tpu.core_type<tc>, window_params = [{pipeline_mode = #tpu.pipeline_mode<synchronous>, transform_indices = @transform_0, window_bounds = array<i64: 2, 8, 32>}, {transform_indices = @transform_1, window_bounds = array<i64: 1, 32, 96>}, {transform_indices = @transform_2, window_bounds = array<i64: 1, 1, 96>}, {transform_indices = @transform_3, window_bounds = array<i64: 1, 32, 32>}, {transform_indices = @transform_4, window_bounds = array<i64: 1, 1, 32>}, {transform_indices = @transform_5, window_bounds = array<i64: 1, 32, 128>}, {transform_indices = @transform_6, window_bounds = array<i64: 1, 1, 128>}, {transform_indices = @transform_7, window_bounds = array<i64: 1, 128, 32>}, {transform_indices = @transform_8, window_bounds = array<i64: 1, 1, 32>}, {transform_indices = @transform_9, window_bounds = array<i64: 1, 1, 32>}, {transform_indices = @transform_10, window_bounds = array<i64: 1, 1, 32>}, {transform_indices = @transform_11, window_bounds = array<i64: 1, 1, 32>}, {transform_indices = @transform_12, window_bounds = array<i64: 1, 1, 32>}, {pipeline_mode = #tpu.pipeline_mode<synchronous>, transform_indices = @transform_13, window_bounds = array<i64: 1, 32>}, {pipeline_mode = #tpu.pipeline_mode<synchronous>, transform_indices = @transform_14, window_bounds = array<i64: 1, 32>}, {pipeline_mode = #tpu.pipeline_mode<synchronous>, transform_indices = @transform_15, window_bounds = array<i64: 1, 32>}, {pipeline_mode = #tpu.pipeline_mode<synchronous>, transform_indices = @transform_16, window_bounds = array<i64: 1, 32>}, {pipeline_mode = #tpu.pipeline_mode<synchronous>, transform_indices = @transform_17, window_bounds = array<i64: 32, 128>}, {pipeline_mode = #tpu.pipeline_mode<synchronous>, transform_indices = @transform_18, window_bounds = array<i64: 1, 128>}, {pipeline_mode = #tpu.pipeline_mode<synchronous>, transform_indices = @transform_19, window_bounds = array<i64: 2, 128>}]} {
    %c0_i32 = arith.constant 0 : i32
    %0 = arith.cmpi eq, %arg0, %c0_i32 : i32
    %1 = arith.extui %0 : i1 to i32
    %c0_i32_0 = arith.constant 0 : i32
    %2 = arith.cmpi ne, %1, %c0_i32_0 : i32
    scf.if %2 {
      %c0_41 = arith.constant 0 : index
      %c0_42 = arith.constant 0 : index
      %c0_43 = arith.constant 0 : index
      %39 = vector.load %arg2[%c0_41, %c0_42, %c0_43] : memref<2x8x32xf32, #tpu.memory_space<vmem>>, vector<2x8x32xf32>
      %c0_44 = arith.constant 0 : index
      %c0_45 = arith.constant 0 : index
      %c0_46 = arith.constant 0 : index
      %40 = vector.load %arg22[%c0_44, %c0_45, %c0_46] : memref<2x8x32xf32, #tpu.memory_space<vmem>>, vector<2x8x32xf32>
      tpu.vector_store %arg22[%c0_44, %c0_45, %c0_46], %39 {strides = array<i32>} : memref<2x8x32xf32, #tpu.memory_space<vmem>>, vector<2x8x32xf32>,
    } else {
    }
    %c0 = arith.constant 0 : index
    %c0_1 = arith.constant 0 : index
    %c0_2 = arith.constant 0 : index
    %3 = vector.load %arg3[%c0, %c0_1, %c0_2] : memref<1x32x96xf32, #tpu.memory_space<vmem>>, vector<1x32x96xf32>
    %4 = vector.shape_cast %3 : vector<1x32x96xf32> to vector<32x96xf32>
    %c0_3 = arith.constant 0 : index
    %c0_4 = arith.constant 0 : index
    %c0_5 = arith.constant 0 : index
    %5 = vector.load %arg4[%c0_3, %c0_4, %c0_5] : memref<1x1x96xf32, #tpu.memory_space<vmem>>, vector<1x1x96xf32>
    %6 = vector.shape_cast %5 : vector<1x1x96xf32> to vector<1x96xf32>
    %c0_6 = arith.constant 0 : index
    %c0_7 = arith.constant 0 : index
    %c0_8 = arith.constant 0 : index
    %7 = vector.load %arg5[%c0_6, %c0_7, %c0_8] : memref<1x32x32xf32, #tpu.memory_space<vmem>>, vector<1x32x32xf32>
    %8 = vector.shape_cast %7 : vector<1x32x32xf32> to vector<32x32xf32>
    %c0_9 = arith.constant 0 : index
    %c0_10 = arith.constant 0 : index
    %c0_11 = arith.constant 0 : index
    %9 = vector.load %arg6[%c0_9, %c0_10, %c0_11] : memref<1x1x32xf32, #tpu.memory_space<vmem>>, vector<1x1x32xf32>
    %10 = vector.shape_cast %9 : vector<1x1x32xf32> to vector<1x32xf32>
    %c0_12 = arith.constant 0 : index
    %c0_13 = arith.constant 0 : index
    %c0_14 = arith.constant 0 : index
    %11 = vector.load %arg7[%c0_12, %c0_13, %c0_14] : memref<1x32x128xf32, #tpu.memory_space<vmem>>, vector<1x32x128xf32>
    %12 = vector.shape_cast %11 : vector<1x32x128xf32> to vector<32x128xf32>
    %c0_15 = arith.constant 0 : index
    %c0_16 = arith.constant 0 : index
    %c0_17 = arith.constant 0 : index
    %13 = vector.load %arg8[%c0_15, %c0_16, %c0_17] : memref<1x1x128xf32, #tpu.memory_space<vmem>>, vector<1x1x128xf32>
    %14 = vector.shape_cast %13 : vector<1x1x128xf32> to vector<1x128xf32>
    %c0_18 = arith.constant 0 : index
    %c0_19 = arith.constant 0 : index
    %c0_20 = arith.constant 0 : index
    %15 = vector.load %arg9[%c0_18, %c0_19, %c0_20] : memref<1x128x32xf32, #tpu.memory_space<vmem>>, vector<1x128x32xf32>
    %16 = vector.shape_cast %15 : vector<1x128x32xf32> to vector<128x32xf32>
    %c0_21 = arith.constant 0 : index
    %c0_22 = arith.constant 0 : index
    %c0_23 = arith.constant 0 : index
    %17 = vector.load %arg10[%c0_21, %c0_22, %c0_23] : memref<1x1x32xf32, #tpu.memory_space<vmem>>, vector<1x1x32xf32>
    %18 = vector.shape_cast %17 : vector<1x1x32xf32> to vector<1x32xf32>
    %c0_24 = arith.constant 0 : index
    %c0_25 = arith.constant 0 : index
    %c0_26 = arith.constant 0 : index
    %19 = vector.load %arg11[%c0_24, %c0_25, %c0_26] : memref<1x1x32xf32, #tpu.memory_space<vmem>>, vector<1x1x32xf32>
    %20 = vector.shape_cast %19 : vector<1x1x32xf32> to vector<1x32xf32>
    %c0_27 = arith.constant 0 : index
    %c0_28 = arith.constant 0 : index
    %c0_29 = arith.constant 0 : index
    %21 = vector.load %arg12[%c0_27, %c0_28, %c0_29] : memref<1x1x32xf32, #tpu.memory_space<vmem>>, vector<1x1x32xf32>
    %22 = vector.shape_cast %21 : vector<1x1x32xf32> to vector<1x32xf32>
    %c0_30 = arith.constant 0 : index
    %c0_31 = arith.constant 0 : index
    %c0_32 = arith.constant 0 : index
    %23 = vector.load %arg13[%c0_30, %c0_31, %c0_32] : memref<1x1x32xf32, #tpu.memory_space<vmem>>, vector<1x1x32xf32>
    %24 = vector.shape_cast %23 : vector<1x1x32xf32> to vector<1x32xf32>
    %c0_33 = arith.constant 0 : index
    %c0_34 = arith.constant 0 : index
    %c0_35 = arith.constant 0 : index
    %25 = vector.load %arg14[%c0_33, %c0_34, %c0_35] : memref<1x1x32xf32, #tpu.memory_space<vmem>>, vector<1x1x32xf32>
    %26 = vector.shape_cast %25 : vector<1x1x32xf32> to vector<1x32xf32>
    %c2_i32 = arith.constant 2 : i32
    %27 = arith.cmpi slt, %arg0, %c2_i32 : i32
    %28 = arith.extui %27 : i1 to i32
    %c0_i32_36 = arith.constant 0 : i32
    %29 = arith.cmpi ne, %28, %c0_i32_36 : i32
    scf.if %29 {
      %c0_41 = arith.constant 0 : index
      %c0_42 = arith.constant 0 : index
      %c0_43 = arith.constant 0 : index
      %39 = vector.load %arg22[%c0_41, %c0_42, %c0_43] : memref<2x8x32xf32, #tpu.memory_space<vmem>>, vector<2x8x32xf32>
      %cst = arith.constant dense<0.000000e+00> : vector<2x8xf32>
      %40 = vector.multi_reduction <add>, %39, %cst [2] : vector<2x8x32xf32> to vector<2x8xf32>
      %41 = vector.shape_cast %40 : vector<2x8xf32> to vector<2x8x1xf32>
      %cst_44 = arith.constant 3.200000e+01 : f32
      %42 = vector.broadcast %cst_44 : f32 to vector<2x8x1xf32>
      %43 = arith.divf %41, %42 : vector<2x8x1xf32>
      %44 = vector.broadcast %43 : vector<2x8x1xf32> to vector<2x8x32xf32>
      %45 = arith.subf %39, %44 : vector<2x8x32xf32>
      %46 = arith.mulf %45, %45 : vector<2x8x32xf32>
      %cst_45 = arith.constant dense<0.000000e+00> : vector<2x8xf32>
      %47 = vector.multi_reduction <add>, %46, %cst_45 [2] : vector<2x8x32xf32> to vector<2x8xf32>
      %48 = vector.shape_cast %47 : vector<2x8xf32> to vector<2x8x1xf32>
      %cst_46 = arith.constant 3.200000e+01 : f32
      %49 = vector.broadcast %cst_46 : f32 to vector<2x8x1xf32>
      %50 = arith.divf %48, %49 : vector<2x8x1xf32>
      %51 = vector.broadcast %43 : vector<2x8x1xf32> to vector<2x8x32xf32>
      %52 = arith.subf %39, %51 : vector<2x8x32xf32>
      %cst_47 = arith.constant 9.99999974E-6 : f32
      %53 = vector.broadcast %cst_47 : f32 to vector<2x8x1xf32>
      %54 = arith.addf %50, %53 : vector<2x8x1xf32>
      %55 = math.rsqrt %54 : vector<2x8x1xf32>
      %56 = vector.broadcast %55 : vector<2x8x1xf32> to vector<2x8x32xf32>
      %57 = arith.mulf %52, %56 : vector<2x8x32xf32>
      %58 = vector.shape_cast %20 : vector<1x32xf32> to vector<1x1x32xf32>
      %59 = vector.broadcast %58 : vector<1x1x32xf32> to vector<2x8x32xf32>
      %60 = arith.mulf %57, %59 : vector<2x8x32xf32>
      %61 = vector.shape_cast %22 : vector<1x32xf32> to vector<1x1x32xf32>
      %62 = vector.broadcast %61 : vector<1x1x32xf32> to vector<2x8x32xf32>
      %63 = arith.addf %60, %62 : vector<2x8x32xf32>
      %64 = vector.shape_cast %63 : vector<2x8x32xf32> to vector<16x32xf32>
      %cst_48 = arith.constant dense<0.000000e+00> : vector<16x96xf32>
      %65 = tpu.matmul %64, %4, %cst_48 {dimension_numbers = #tpu.dot_dimension_numbers<[1], [0], [0], [1], [0, 0, 1, 1], [], []>} : vector<16x32xf32>, vector<32x96xf32>, vector<16x96xf32> -> vector<16x96xf32>
      %66 = vector.broadcast %6 : vector<1x96xf32> to vector<16x96xf32>
      %67 = arith.addf %65, %66 : vector<16x96xf32>
      %68 = tpu.iota {dimensions = array<i32: 0>} : vector<8x8xi32>
      %69 = tpu.iota {dimensions = array<i32: 1>} : vector<8x8xi32>
      %70 = arith.cmpi sle, %69, %68 : vector<8x8xi32>
      %cst_49 = arith.constant 0.000000e+00 : f32
      %cst_50 = arith.constant -1.000000e+30 : f32
      %71 = vector.broadcast %cst_49 : f32 to vector<8x8xf32>
      %72 = vector.broadcast %cst_50 : f32 to vector<8x8xf32>
      %73 = arith.select %70, %71, %72 : vector<8x8xi1>, vector<8x8xf32>
      %74 = vector.shape_cast %73 : vector<8x8xf32> to vector<1x8x8xf32>
      %75 = vector.extract_strided_slice %67 {offsets = [0, 0], sizes = [16, 8], strides = [1, 1]} : vector<16x96xf32> to vector<16x8xf32>
      %76 = vector.shape_cast %75 : vector<16x8xf32> to vector<2x8x8xf32>
      %cst_51 = arith.constant 0.353553385 : f32
      %77 = vector.broadcast %cst_51 : f32 to vector<2x8x8xf32>
      %78 = arith.mulf %76, %77 : vector<2x8x8xf32>
      %79 = vector.extract_strided_slice %67 {offsets = [0, 32], sizes = [16, 8], strides = [1, 1]} : vector<16x96xf32> to vector<16x8xf32>
      %80 = vector.shape_cast %79 : vector<16x8xf32> to vector<2x8x8xf32>
      %81 = vector.extract_strided_slice %67 {offsets = [0, 64], sizes = [16, 8], strides = [1, 1]} : vector<16x96xf32> to vector<16x8xf32>
      %82 = vector.shape_cast %81 : vector<16x8xf32> to vector<2x8x8xf32>
      "tpu.trace_start"() <{level = 10 : i32, message = "btd,bsd->bts"}> : () -> ()
      %cst_52 = arith.constant dense<0.000000e+00> : vector<2x8x8xf32>
      %83 = tpu.matmul %78, %80, %cst_52 {dimension_numbers = #tpu.dot_dimension_numbers<[2], [2], [1], [1], [0, 0, 0, 1, 1, 1], [0], [0]>} : vector<2x8x8xf32>, vector<2x8x8xf32>, vector<2x8x8xf32> -> vector<2x8x8xf32>
      "tpu.trace_stop"() : () -> ()
      %84 = vector.broadcast %74 : vector<1x8x8xf32> to vector<2x8x8xf32>
      %85 = arith.addf %83, %84 : vector<2x8x8xf32>
      %cst_53 = arith.constant dense<0xFF800000> : vector<2x8xf32>
      %86 = vector.multi_reduction <maximumf>, %85, %cst_53 [2] : vector<2x8x8xf32> to vector<2x8xf32>
      %87 = vector.shape_cast %86 : vector<2x8xf32> to vector<2x8x1xf32>
      %88 = vector.broadcast %87 : vector<2x8x1xf32> to vector<2x8x8xf32>
      %89 = arith.subf %85, %88 : vector<2x8x8xf32>
      %90 = math.exp %89 : vector<2x8x8xf32>
      %cst_54 = arith.constant dense<0.000000e+00> : vector<2x8xf32>
      %91 = vector.multi_reduction <add>, %90, %cst_54 [2] : vector<2x8x8xf32> to vector<2x8xf32>
      %92 = vector.shape_cast %91 : vector<2x8xf32> to vector<2x8x1xf32>
      %93 = tpu.reciprocal %92 {approx = true} : vector<2x8x1xf32> -> vector<2x8x1xf32>
      %94 = vector.broadcast %93 : vector<2x8x1xf32> to vector<2x8x8xf32>
      %95 = arith.mulf %90, %94 : vector<2x8x8xf32>
      "tpu.trace_start"() <{level = 10 : i32, message = "bts,bsd->btd"}> : () -> ()
      %cst_55 = arith.constant dense<0.000000e+00> : vector<2x8x8xf32>
      %96 = tpu.matmul %95, %82, %cst_55 {dimension_numbers = #tpu.dot_dimension_numbers<[2], [1], [1], [2], [0, 0, 0, 1, 1, 2], [0], [0]>} : vector<2x8x8xf32>, vector<2x8x8xf32>, vector<2x8x8xf32> -> vector<2x8x8xf32>
      "tpu.trace_stop"() : () -> ()
      %97 = vector.shape_cast %96 : vector<2x8x8xf32> to vector<16x8xf32>
      %98 = vector.extract_strided_slice %67 {offsets = [0, 8], sizes = [16, 8], strides = [1, 1]} : vector<16x96xf32> to vector<16x8xf32>
      %99 = vector.shape_cast %98 : vector<16x8xf32> to vector<2x8x8xf32>
      %cst_56 = arith.constant 0.353553385 : f32
      %100 = vector.broadcast %cst_56 : f32 to vector<2x8x8xf32>
      %101 = arith.mulf %99, %100 : vector<2x8x8xf32>
      %102 = vector.extract_strided_slice %67 {offsets = [0, 40], sizes = [16, 8], strides = [1, 1]} : vector<16x96xf32> to vector<16x8xf32>
      %103 = vector.shape_cast %102 : vector<16x8xf32> to vector<2x8x8xf32>
      %104 = vector.extract_strided_slice %67 {offsets = [0, 72], sizes = [16, 8], strides = [1, 1]} : vector<16x96xf32> to vector<16x8xf32>
      %105 = vector.shape_cast %104 : vector<16x8xf32> to vector<2x8x8xf32>
      "tpu.trace_start"() <{level = 10 : i32, message = "btd,bsd->bts"}> : () -> ()
      %cst_57 = arith.constant dense<0.000000e+00> : vector<2x8x8xf32>
      %106 = tpu.matmul %101, %103, %cst_57 {dimension_numbers = #tpu.dot_dimension_numbers<[2], [2], [1], [1], [0, 0, 0, 1, 1, 1], [0], [0]>} : vector<2x8x8xf32>, vector<2x8x8xf32>, vector<2x8x8xf32> -> vector<2x8x8xf32>
      "tpu.trace_stop"() : () -> ()
      %107 = vector.broadcast %74 : vector<1x8x8xf32> to vector<2x8x8xf32>
      %108 = arith.addf %106, %107 : vector<2x8x8xf32>
      %cst_58 = arith.constant dense<0xFF800000> : vector<2x8xf32>
      %109 = vector.multi_reduction <maximumf>, %108, %cst_58 [2] : vector<2x8x8xf32> to vector<2x8xf32>
      %110 = vector.shape_cast %109 : vector<2x8xf32> to vector<2x8x1xf32>
      %111 = vector.broadcast %110 : vector<2x8x1xf32> to vector<2x8x8xf32>
      %112 = arith.subf %108, %111 : vector<2x8x8xf32>
      %113 = math.exp %112 : vector<2x8x8xf32>
      %cst_59 = arith.constant dense<0.000000e+00> : vector<2x8xf32>
      %114 = vector.multi_reduction <add>, %113, %cst_59 [2] : vector<2x8x8xf32> to vector<2x8xf32>
      %115 = vector.shape_cast %114 : vector<2x8xf32> to vector<2x8x1xf32>
      %116 = tpu.reciprocal %115 {approx = true} : vector<2x8x1xf32> -> vector<2x8x1xf32>
      %117 = vector.broadcast %116 : vector<2x8x1xf32> to vector<2x8x8xf32>
      %118 = arith.mulf %113, %117 : vector<2x8x8xf32>
      "tpu.trace_start"() <{level = 10 : i32, message = "bts,bsd->btd"}> : () -> ()
      %cst_60 = arith.constant dense<0.000000e+00> : vector<2x8x8xf32>
      %119 = tpu.matmul %118, %105, %cst_60 {dimension_numbers = #tpu.dot_dimension_numbers<[2], [1], [1], [2], [0, 0, 0, 1, 1, 2], [0], [0]>} : vector<2x8x8xf32>, vector<2x8x8xf32>, vector<2x8x8xf32> -> vector<2x8x8xf32>
      "tpu.trace_stop"() : () -> ()
      %120 = vector.shape_cast %119 : vector<2x8x8xf32> to vector<16x8xf32>
      %121 = vector.extract_strided_slice %67 {offsets = [0, 16], sizes = [16, 8], strides = [1, 1]} : vector<16x96xf32> to vector<16x8xf32>
      %122 = vector.shape_cast %121 : vector<16x8xf32> to vector<2x8x8xf32>
      %cst_61 = arith.constant 0.353553385 : f32
      %123 = vector.broadcast %cst_61 : f32 to vector<2x8x8xf32>
      %124 = arith.mulf %122, %123 : vector<2x8x8xf32>
      %125 = vector.extract_strided_slice %67 {offsets = [0, 48], sizes = [16, 8], strides = [1, 1]} : vector<16x96xf32> to vector<16x8xf32>
      %126 = vector.shape_cast %125 : vector<16x8xf32> to vector<2x8x8xf32>
      %127 = vector.extract_strided_slice %67 {offsets = [0, 80], sizes = [16, 8], strides = [1, 1]} : vector<16x96xf32> to vector<16x8xf32>
      %128 = vector.shape_cast %127 : vector<16x8xf32> to vector<2x8x8xf32>
      "tpu.trace_start"() <{level = 10 : i32, message = "btd,bsd->bts"}> : () -> ()
      %cst_62 = arith.constant dense<0.000000e+00> : vector<2x8x8xf32>
      %129 = tpu.matmul %124, %126, %cst_62 {dimension_numbers = #tpu.dot_dimension_numbers<[2], [2], [1], [1], [0, 0, 0, 1, 1, 1], [0], [0]>} : vector<2x8x8xf32>, vector<2x8x8xf32>, vector<2x8x8xf32> -> vector<2x8x8xf32>
      "tpu.trace_stop"() : () -> ()
      %130 = vector.broadcast %74 : vector<1x8x8xf32> to vector<2x8x8xf32>
      %131 = arith.addf %129, %130 : vector<2x8x8xf32>
      %cst_63 = arith.constant dense<0xFF800000> : vector<2x8xf32>
      %132 = vector.multi_reduction <maximumf>, %131, %cst_63 [2] : vector<2x8x8xf32> to vector<2x8xf32>
      %133 = vector.shape_cast %132 : vector<2x8xf32> to vector<2x8x1xf32>
      %134 = vector.broadcast %133 : vector<2x8x1xf32> to vector<2x8x8xf32>
      %135 = arith.subf %131, %134 : vector<2x8x8xf32>
      %136 = math.exp %135 : vector<2x8x8xf32>
      %cst_64 = arith.constant dense<0.000000e+00> : vector<2x8xf32>
      %137 = vector.multi_reduction <add>, %136, %cst_64 [2] : vector<2x8x8xf32> to vector<2x8xf32>
      %138 = vector.shape_cast %137 : vector<2x8xf32> to vector<2x8x1xf32>
      %139 = tpu.reciprocal %138 {approx = true} : vector<2x8x1xf32> -> vector<2x8x1xf32>
      %140 = vector.broadcast %139 : vector<2x8x1xf32> to vector<2x8x8xf32>
      %141 = arith.mulf %136, %140 : vector<2x8x8xf32>
      "tpu.trace_start"() <{level = 10 : i32, message = "bts,bsd->btd"}> : () -> ()
      %cst_65 = arith.constant dense<0.000000e+00> : vector<2x8x8xf32>
      %142 = tpu.matmul %141, %128, %cst_65 {dimension_numbers = #tpu.dot_dimension_numbers<[2], [1], [1], [2], [0, 0, 0, 1, 1, 2], [0], [0]>} : vector<2x8x8xf32>, vector<2x8x8xf32>, vector<2x8x8xf32> -> vector<2x8x8xf32>
      "tpu.trace_stop"() : () -> ()
      %143 = vector.shape_cast %142 : vector<2x8x8xf32> to vector<16x8xf32>
      %144 = vector.extract_strided_slice %67 {offsets = [0, 24], sizes = [16, 8], strides = [1, 1]} : vector<16x96xf32> to vector<16x8xf32>
      %145 = vector.shape_cast %144 : vector<16x8xf32> to vector<2x8x8xf32>
      %cst_66 = arith.constant 0.353553385 : f32
      %146 = vector.broadcast %cst_66 : f32 to vector<2x8x8xf32>
      %147 = arith.mulf %145, %146 : vector<2x8x8xf32>
      %148 = vector.extract_strided_slice %67 {offsets = [0, 56], sizes = [16, 8], strides = [1, 1]} : vector<16x96xf32> to vector<16x8xf32>
      %149 = vector.shape_cast %148 : vector<16x8xf32> to vector<2x8x8xf32>
      %150 = vector.extract_strided_slice %67 {offsets = [0, 88], sizes = [16, 8], strides = [1, 1]} : vector<16x96xf32> to vector<16x8xf32>
      %151 = vector.shape_cast %150 : vector<16x8xf32> to vector<2x8x8xf32>
      "tpu.trace_start"() <{level = 10 : i32, message = "btd,bsd->bts"}> : () -> ()
      %cst_67 = arith.constant dense<0.000000e+00> : vector<2x8x8xf32>
      %152 = tpu.matmul %147, %149, %cst_67 {dimension_numbers = #tpu.dot_dimension_numbers<[2], [2], [1], [1], [0, 0, 0, 1, 1, 1], [0], [0]>} : vector<2x8x8xf32>, vector<2x8x8xf32>, vector<2x8x8xf32> -> vector<2x8x8xf32>
      "tpu.trace_stop"() : () -> ()
      %153 = vector.broadcast %74 : vector<1x8x8xf32> to vector<2x8x8xf32>
      %154 = arith.addf %152, %153 : vector<2x8x8xf32>
      %cst_68 = arith.constant dense<0xFF800000> : vector<2x8xf32>
      %155 = vector.multi_reduction <maximumf>, %154, %cst_68 [2] : vector<2x8x8xf32> to vector<2x8xf32>
      %156 = vector.shape_cast %155 : vector<2x8xf32> to vector<2x8x1xf32>
      %157 = vector.broadcast %156 : vector<2x8x1xf32> to vector<2x8x8xf32>
      %158 = arith.subf %154, %157 : vector<2x8x8xf32>
      %159 = math.exp %158 : vector<2x8x8xf32>
      %cst_69 = arith.constant dense<0.000000e+00> : vector<2x8xf32>
      %160 = vector.multi_reduction <add>, %159, %cst_69 [2] : vector<2x8x8xf32> to vector<2x8xf32>
      %161 = vector.shape_cast %160 : vector<2x8xf32> to vector<2x8x1xf32>
      %162 = tpu.reciprocal %161 {approx = true} : vector<2x8x1xf32> -> vector<2x8x1xf32>
      %163 = vector.broadcast %162 : vector<2x8x1xf32> to vector<2x8x8xf32>
      %164 = arith.mulf %159, %163 : vector<2x8x8xf32>
      "tpu.trace_start"() <{level = 10 : i32, message = "bts,bsd->btd"}> : () -> ()
      %cst_70 = arith.constant dense<0.000000e+00> : vector<2x8x8xf32>
      %165 = tpu.matmul %164, %151, %cst_70 {dimension_numbers = #tpu.dot_dimension_numbers<[2], [1], [1], [2], [0, 0, 0, 1, 1, 2], [0], [0]>} : vector<2x8x8xf32>, vector<2x8x8xf32>, vector<2x8x8xf32> -> vector<2x8x8xf32>
      "tpu.trace_stop"() : () -> ()
      %166 = vector.shape_cast %165 : vector<2x8x8xf32> to vector<16x8xf32>
      %167 = tpu.concatenate %97, %120, %143, %166 in 1 : vector<16x8xf32>, vector<16x8xf32>, vector<16x8xf32>, vector<16x8xf32> -> vector<16x32xf32>
      %cst_71 = arith.constant dense<0.000000e+00> : vector<16x32xf32>
      %168 = tpu.matmul %167, %8, %cst_71 {dimension_numbers = #tpu.dot_dimension_numbers<[1], [0], [0], [1], [0, 0, 1, 1], [], []>} : vector<16x32xf32>, vector<32x32xf32>, vector<16x32xf32> -> vector<16x32xf32>
      %169 = vector.broadcast %10 : vector<1x32xf32> to vector<16x32xf32>
      %170 = arith.addf %168, %169 : vector<16x32xf32>
      %171 = vector.shape_cast %170 : vector<16x32xf32> to vector<2x8x32xf32>
      %172 = arith.addf %39, %171 : vector<2x8x32xf32>
      %cst_72 = arith.constant dense<0.000000e+00> : vector<2x8xf32>
      %173 = vector.multi_reduction <add>, %172, %cst_72 [2] : vector<2x8x32xf32> to vector<2x8xf32>
      %174 = vector.shape_cast %173 : vector<2x8xf32> to vector<2x8x1xf32>
      %cst_73 = arith.constant 3.200000e+01 : f32
      %175 = vector.broadcast %cst_73 : f32 to vector<2x8x1xf32>
      %176 = arith.divf %174, %175 : vector<2x8x1xf32>
      %177 = vector.broadcast %176 : vector<2x8x1xf32> to vector<2x8x32xf32>
      %178 = arith.subf %172, %177 : vector<2x8x32xf32>
      %179 = arith.mulf %178, %178 : vector<2x8x32xf32>
      %cst_74 = arith.constant dense<0.000000e+00> : vector<2x8xf32>
      %180 = vector.multi_reduction <add>, %179, %cst_74 [2] : vector<2x8x32xf32> to vector<2x8xf32>
      %181 = vector.shape_cast %180 : vector<2x8xf32> to vector<2x8x1xf32>
      %cst_75 = arith.constant 3.200000e+01 : f32
      %182 = vector.broadcast %cst_75 : f32 to vector<2x8x1xf32>
      %183 = arith.divf %181, %182 : vector<2x8x1xf32>
      %184 = vector.broadcast %176 : vector<2x8x1xf32> to vector<2x8x32xf32>
      %185 = arith.subf %172, %184 : vector<2x8x32xf32>
      %cst_76 = arith.constant 9.99999974E-6 : f32
      %186 = vector.broadcast %cst_76 : f32 to vector<2x8x1xf32>
      %187 = arith.addf %183, %186 : vector<2x8x1xf32>
      %188 = math.rsqrt %187 : vector<2x8x1xf32>
      %189 = vector.broadcast %188 : vector<2x8x1xf32> to vector<2x8x32xf32>
      %190 = arith.mulf %185, %189 : vector<2x8x32xf32>
      %191 = vector.shape_cast %24 : vector<1x32xf32> to vector<1x1x32xf32>
      %192 = vector.broadcast %191 : vector<1x1x32xf32> to vector<2x8x32xf32>
      %193 = arith.mulf %190, %192 : vector<2x8x32xf32>
      %194 = vector.shape_cast %26 : vector<1x32xf32> to vector<1x1x32xf32>
      %195 = vector.broadcast %194 : vector<1x1x32xf32> to vector<2x8x32xf32>
      %196 = arith.addf %193, %195 : vector<2x8x32xf32>
      %197 = vector.shape_cast %196 : vector<2x8x32xf32> to vector<16x32xf32>
      %cst_77 = arith.constant dense<0.000000e+00> : vector<16x128xf32>
      %198 = tpu.matmul %197, %12, %cst_77 {dimension_numbers = #tpu.dot_dimension_numbers<[1], [0], [0], [1], [0, 0, 1, 1], [], []>} : vector<16x32xf32>, vector<32x128xf32>, vector<16x128xf32> -> vector<16x128xf32>
      %199 = vector.broadcast %14 : vector<1x128xf32> to vector<16x128xf32>
      %200 = arith.addf %198, %199 : vector<16x128xf32>
      %cst_78 = arith.constant -1.702000e+00 : f32
      %201 = vector.broadcast %cst_78 : f32 to vector<16x128xf32>
      %202 = arith.mulf %201, %200 : vector<16x128xf32>
      %203 = math.exp %202 : vector<16x128xf32>
      %cst_79 = arith.constant 1.000000e+00 : f32
      %204 = vector.broadcast %cst_79 : f32 to vector<16x128xf32>
      %205 = arith.addf %204, %203 : vector<16x128xf32>
      %206 = tpu.reciprocal %205 {approx = true} : vector<16x128xf32> -> vector<16x128xf32>
      %207 = arith.mulf %200, %206 : vector<16x128xf32>
      %cst_80 = arith.constant dense<0.000000e+00> : vector<16x32xf32>
      %208 = tpu.matmul %207, %16, %cst_80 {dimension_numbers = #tpu.dot_dimension_numbers<[1], [0], [0], [1], [0, 0, 1, 1], [], []>} : vector<16x128xf32>, vector<128x32xf32>, vector<16x32xf32> -> vector<16x32xf32>
      %209 = vector.broadcast %18 : vector<1x32xf32> to vector<16x32xf32>
      %210 = arith.addf %208, %209 : vector<16x32xf32>
      %211 = vector.shape_cast %210 : vector<16x32xf32> to vector<2x8x32xf32>
      %212 = arith.addf %172, %211 : vector<2x8x32xf32>
      %c0_81 = arith.constant 0 : index
      %c0_82 = arith.constant 0 : index
      %c0_83 = arith.constant 0 : index
      %213 = vector.load %arg22[%c0_81, %c0_82, %c0_83] : memref<2x8x32xf32, #tpu.memory_space<vmem>>, vector<2x8x32xf32>
      tpu.vector_store %arg22[%c0_81, %c0_82, %c0_83], %212 {strides = array<i32>} : memref<2x8x32xf32, #tpu.memory_space<vmem>>, vector<2x8x32xf32>,
    } else {
    }
    %c1_i32 = arith.constant 1 : i32
    %30 = arith.cmpi eq, %arg0, %c1_i32 : i32
    %31 = arith.extui %30 : i1 to i32
    %c0_i32_37 = arith.constant 0 : i32
    %32 = arith.cmpi ne, %31, %c0_i32_37 : i32
    scf.if %32 {
      %c0_41 = arith.constant 0 : index
      %c0_42 = arith.constant 0 : index
      %c0_43 = arith.constant 0 : index
      %39 = vector.load %arg22[%c0_41, %c0_42, %c0_43] : memref<2x8x32xf32, #tpu.memory_space<vmem>>, vector<2x8x32xf32>
      %c0_44 = arith.constant 0 : index
      %c0_45 = arith.constant 0 : index
      %40 = vector.load %arg15[%c0_44, %c0_45] : memref<1x32xf32, #tpu.memory_space<vmem>>, vector<1x32xf32>
      %c0_46 = arith.constant 0 : index
      %c0_47 = arith.constant 0 : index
      %41 = vector.load %arg16[%c0_46, %c0_47] : memref<1x32xf32, #tpu.memory_space<vmem>>, vector<1x32xf32>
      %cst = arith.constant dense<0.000000e+00> : vector<2x8xf32>
      %42 = vector.multi_reduction <add>, %39, %cst [2] : vector<2x8x32xf32> to vector<2x8xf32>
      %43 = vector.shape_cast %42 : vector<2x8xf32> to vector<2x8x1xf32>
      %cst_48 = arith.constant 3.200000e+01 : f32
      %44 = vector.broadcast %cst_48 : f32 to vector<2x8x1xf32>
      %45 = arith.divf %43, %44 : vector<2x8x1xf32>
      %46 = vector.broadcast %45 : vector<2x8x1xf32> to vector<2x8x32xf32>
      %47 = arith.subf %39, %46 : vector<2x8x32xf32>
      %48 = arith.mulf %47, %47 : vector<2x8x32xf32>
      %cst_49 = arith.constant dense<0.000000e+00> : vector<2x8xf32>
      %49 = vector.multi_reduction <add>, %48, %cst_49 [2] : vector<2x8x32xf32> to vector<2x8xf32>
      %50 = vector.shape_cast %49 : vector<2x8xf32> to vector<2x8x1xf32>
      %cst_50 = arith.constant 3.200000e+01 : f32
      %51 = vector.broadcast %cst_50 : f32 to vector<2x8x1xf32>
      %52 = arith.divf %50, %51 : vector<2x8x1xf32>
      %53 = vector.broadcast %45 : vector<2x8x1xf32> to vector<2x8x32xf32>
      %54 = arith.subf %39, %53 : vector<2x8x32xf32>
      %cst_51 = arith.constant 9.99999974E-6 : f32
      %55 = vector.broadcast %cst_51 : f32 to vector<2x8x1xf32>
      %56 = arith.addf %52, %55 : vector<2x8x1xf32>
      %57 = math.rsqrt %56 : vector<2x8x1xf32>
      %58 = vector.broadcast %57 : vector<2x8x1xf32> to vector<2x8x32xf32>
      %59 = arith.mulf %54, %58 : vector<2x8x32xf32>
      %60 = vector.shape_cast %40 : vector<1x32xf32> to vector<1x1x32xf32>
      %61 = vector.broadcast %60 : vector<1x1x32xf32> to vector<2x8x32xf32>
      %62 = arith.mulf %59, %61 : vector<2x8x32xf32>
      %63 = vector.shape_cast %41 : vector<1x32xf32> to vector<1x1x32xf32>
      %64 = vector.broadcast %63 : vector<1x1x32xf32> to vector<2x8x32xf32>
      %65 = arith.addf %62, %64 : vector<2x8x32xf32>
      %c0_52 = arith.constant 0 : index
      %c0_53 = arith.constant 0 : index
      %c0_54 = arith.constant 0 : index
      %66 = vector.load %arg22[%c0_52, %c0_53, %c0_54] : memref<2x8x32xf32, #tpu.memory_space<vmem>>, vector<2x8x32xf32>
      tpu.vector_store %arg22[%c0_52, %c0_53, %c0_54], %65 {strides = array<i32>} : memref<2x8x32xf32, #tpu.memory_space<vmem>>, vector<2x8x32xf32>,
    } else {
    }
    %c2_i32_38 = arith.constant 2 : i32
    %33 = arith.cmpi sge, %arg0, %c2_i32_38 : i32
    %34 = arith.extui %33 : i1 to i32
    %c0_i32_39 = arith.constant 0 : i32
    %35 = arith.cmpi ne, %34, %c0_i32_39 : i32
    scf.if %35 {
      %c0_41 = arith.constant 0 : index
      %c0_42 = arith.constant 0 : index
      %c0_43 = arith.constant 0 : index
      %39 = vector.load %arg22[%c0_41, %c0_42, %c0_43] : memref<2x8x32xf32, #tpu.memory_space<vmem>>, vector<2x8x32xf32>
      %40 = vector.shape_cast %39 : vector<2x8x32xf32> to vector<16x32xf32>
      %cst = arith.constant dense<0.000000e+00> : vector<16x96xf32>
      %41 = tpu.matmul %40, %4, %cst {dimension_numbers = #tpu.dot_dimension_numbers<[1], [0], [0], [1], [0, 0, 1, 1], [], []>} : vector<16x32xf32>, vector<32x96xf32>, vector<16x96xf32> -> vector<16x96xf32>
      %42 = vector.broadcast %6 : vector<1x96xf32> to vector<16x96xf32>
      %43 = arith.addf %41, %42 : vector<16x96xf32>
      %44 = vector.extract_strided_slice %43 {offsets = [0, 0], sizes = [16, 8], strides = [1, 1]} : vector<16x96xf32> to vector<16x8xf32>
      %45 = vector.shape_cast %44 : vector<16x8xf32> to vector<2x8x8xf32>
      %cst_44 = arith.constant 0.353553385 : f32
      %46 = vector.broadcast %cst_44 : f32 to vector<2x8x8xf32>
      %47 = arith.mulf %45, %46 : vector<2x8x8xf32>
      %48 = vector.extract_strided_slice %43 {offsets = [0, 32], sizes = [16, 8], strides = [1, 1]} : vector<16x96xf32> to vector<16x8xf32>
      %49 = vector.shape_cast %48 : vector<16x8xf32> to vector<2x8x8xf32>
      %50 = vector.extract_strided_slice %43 {offsets = [0, 64], sizes = [16, 8], strides = [1, 1]} : vector<16x96xf32> to vector<16x8xf32>
      %51 = vector.shape_cast %50 : vector<16x8xf32> to vector<2x8x8xf32>
      "tpu.trace_start"() <{level = 10 : i32, message = "btd,bsd->bts"}> : () -> ()
      %cst_45 = arith.constant dense<0.000000e+00> : vector<2x8x8xf32>
      %52 = tpu.matmul %47, %49, %cst_45 {dimension_numbers = #tpu.dot_dimension_numbers<[2], [2], [1], [1], [0, 0, 0, 1, 1, 1], [0], [0]>} : vector<2x8x8xf32>, vector<2x8x8xf32>, vector<2x8x8xf32> -> vector<2x8x8xf32>
      "tpu.trace_stop"() : () -> ()
      %cst_46 = arith.constant dense<0xFF800000> : vector<2x8xf32>
      %53 = vector.multi_reduction <maximumf>, %52, %cst_46 [2] : vector<2x8x8xf32> to vector<2x8xf32>
      %54 = vector.shape_cast %53 : vector<2x8xf32> to vector<2x8x1xf32>
      %55 = vector.broadcast %54 : vector<2x8x1xf32> to vector<2x8x8xf32>
      %56 = arith.subf %52, %55 : vector<2x8x8xf32>
      %57 = math.exp %56 : vector<2x8x8xf32>
      %cst_47 = arith.constant dense<0.000000e+00> : vector<2x8xf32>
      %58 = vector.multi_reduction <add>, %57, %cst_47 [2] : vector<2x8x8xf32> to vector<2x8xf32>
      %59 = vector.shape_cast %58 : vector<2x8xf32> to vector<2x8x1xf32>
      %60 = tpu.reciprocal %59 {approx = true} : vector<2x8x1xf32> -> vector<2x8x1xf32>
      %61 = vector.broadcast %60 : vector<2x8x1xf32> to vector<2x8x8xf32>
      %62 = arith.mulf %57, %61 : vector<2x8x8xf32>
      "tpu.trace_start"() <{level = 10 : i32, message = "bts,bsd->btd"}> : () -> ()
      %cst_48 = arith.constant dense<0.000000e+00> : vector<2x8x8xf32>
      %63 = tpu.matmul %62, %51, %cst_48 {dimension_numbers = #tpu.dot_dimension_numbers<[2], [1], [1], [2], [0, 0, 0, 1, 1, 2], [0], [0]>} : vector<2x8x8xf32>, vector<2x8x8xf32>, vector<2x8x8xf32> -> vector<2x8x8xf32>
      "tpu.trace_stop"() : () -> ()
      %64 = vector.shape_cast %63 : vector<2x8x8xf32> to vector<16x8xf32>
      %65 = vector.extract_strided_slice %43 {offsets = [0, 8], sizes = [16, 8], strides = [1, 1]} : vector<16x96xf32> to vector<16x8xf32>
      %66 = vector.shape_cast %65 : vector<16x8xf32> to vector<2x8x8xf32>
      %cst_49 = arith.constant 0.353553385 : f32
      %67 = vector.broadcast %cst_49 : f32 to vector<2x8x8xf32>
      %68 = arith.mulf %66, %67 : vector<2x8x8xf32>
      %69 = vector.extract_strided_slice %43 {offsets = [0, 40], sizes = [16, 8], strides = [1, 1]} : vector<16x96xf32> to vector<16x8xf32>
      %70 = vector.shape_cast %69 : vector<16x8xf32> to vector<2x8x8xf32>
      %71 = vector.extract_strided_slice %43 {offsets = [0, 72], sizes = [16, 8], strides = [1, 1]} : vector<16x96xf32> to vector<16x8xf32>
      %72 = vector.shape_cast %71 : vector<16x8xf32> to vector<2x8x8xf32>
      "tpu.trace_start"() <{level = 10 : i32, message = "btd,bsd->bts"}> : () -> ()
      %cst_50 = arith.constant dense<0.000000e+00> : vector<2x8x8xf32>
      %73 = tpu.matmul %68, %70, %cst_50 {dimension_numbers = #tpu.dot_dimension_numbers<[2], [2], [1], [1], [0, 0, 0, 1, 1, 1], [0], [0]>} : vector<2x8x8xf32>, vector<2x8x8xf32>, vector<2x8x8xf32> -> vector<2x8x8xf32>
      "tpu.trace_stop"() : () -> ()
      %cst_51 = arith.constant dense<0xFF800000> : vector<2x8xf32>
      %74 = vector.multi_reduction <maximumf>, %73, %cst_51 [2] : vector<2x8x8xf32> to vector<2x8xf32>
      %75 = vector.shape_cast %74 : vector<2x8xf32> to vector<2x8x1xf32>
      %76 = vector.broadcast %75 : vector<2x8x1xf32> to vector<2x8x8xf32>
      %77 = arith.subf %73, %76 : vector<2x8x8xf32>
      %78 = math.exp %77 : vector<2x8x8xf32>
      %cst_52 = arith.constant dense<0.000000e+00> : vector<2x8xf32>
      %79 = vector.multi_reduction <add>, %78, %cst_52 [2] : vector<2x8x8xf32> to vector<2x8xf32>
      %80 = vector.shape_cast %79 : vector<2x8xf32> to vector<2x8x1xf32>
      %81 = tpu.reciprocal %80 {approx = true} : vector<2x8x1xf32> -> vector<2x8x1xf32>
      %82 = vector.broadcast %81 : vector<2x8x1xf32> to vector<2x8x8xf32>
      %83 = arith.mulf %78, %82 : vector<2x8x8xf32>
      "tpu.trace_start"() <{level = 10 : i32, message = "bts,bsd->btd"}> : () -> ()
      %cst_53 = arith.constant dense<0.000000e+00> : vector<2x8x8xf32>
      %84 = tpu.matmul %83, %72, %cst_53 {dimension_numbers = #tpu.dot_dimension_numbers<[2], [1], [1], [2], [0, 0, 0, 1, 1, 2], [0], [0]>} : vector<2x8x8xf32>, vector<2x8x8xf32>, vector<2x8x8xf32> -> vector<2x8x8xf32>
      "tpu.trace_stop"() : () -> ()
      %85 = vector.shape_cast %84 : vector<2x8x8xf32> to vector<16x8xf32>
      %86 = vector.extract_strided_slice %43 {offsets = [0, 16], sizes = [16, 8], strides = [1, 1]} : vector<16x96xf32> to vector<16x8xf32>
      %87 = vector.shape_cast %86 : vector<16x8xf32> to vector<2x8x8xf32>
      %cst_54 = arith.constant 0.353553385 : f32
      %88 = vector.broadcast %cst_54 : f32 to vector<2x8x8xf32>
      %89 = arith.mulf %87, %88 : vector<2x8x8xf32>
      %90 = vector.extract_strided_slice %43 {offsets = [0, 48], sizes = [16, 8], strides = [1, 1]} : vector<16x96xf32> to vector<16x8xf32>
      %91 = vector.shape_cast %90 : vector<16x8xf32> to vector<2x8x8xf32>
      %92 = vector.extract_strided_slice %43 {offsets = [0, 80], sizes = [16, 8], strides = [1, 1]} : vector<16x96xf32> to vector<16x8xf32>
      %93 = vector.shape_cast %92 : vector<16x8xf32> to vector<2x8x8xf32>
      "tpu.trace_start"() <{level = 10 : i32, message = "btd,bsd->bts"}> : () -> ()
      %cst_55 = arith.constant dense<0.000000e+00> : vector<2x8x8xf32>
      %94 = tpu.matmul %89, %91, %cst_55 {dimension_numbers = #tpu.dot_dimension_numbers<[2], [2], [1], [1], [0, 0, 0, 1, 1, 1], [0], [0]>} : vector<2x8x8xf32>, vector<2x8x8xf32>, vector<2x8x8xf32> -> vector<2x8x8xf32>
      "tpu.trace_stop"() : () -> ()
      %cst_56 = arith.constant dense<0xFF800000> : vector<2x8xf32>
      %95 = vector.multi_reduction <maximumf>, %94, %cst_56 [2] : vector<2x8x8xf32> to vector<2x8xf32>
      %96 = vector.shape_cast %95 : vector<2x8xf32> to vector<2x8x1xf32>
      %97 = vector.broadcast %96 : vector<2x8x1xf32> to vector<2x8x8xf32>
      %98 = arith.subf %94, %97 : vector<2x8x8xf32>
      %99 = math.exp %98 : vector<2x8x8xf32>
      %cst_57 = arith.constant dense<0.000000e+00> : vector<2x8xf32>
      %100 = vector.multi_reduction <add>, %99, %cst_57 [2] : vector<2x8x8xf32> to vector<2x8xf32>
      %101 = vector.shape_cast %100 : vector<2x8xf32> to vector<2x8x1xf32>
      %102 = tpu.reciprocal %101 {approx = true} : vector<2x8x1xf32> -> vector<2x8x1xf32>
      %103 = vector.broadcast %102 : vector<2x8x1xf32> to vector<2x8x8xf32>
      %104 = arith.mulf %99, %103 : vector<2x8x8xf32>
      "tpu.trace_start"() <{level = 10 : i32, message = "bts,bsd->btd"}> : () -> ()
      %cst_58 = arith.constant dense<0.000000e+00> : vector<2x8x8xf32>
      %105 = tpu.matmul %104, %93, %cst_58 {dimension_numbers = #tpu.dot_dimension_numbers<[2], [1], [1], [2], [0, 0, 0, 1, 1, 2], [0], [0]>} : vector<2x8x8xf32>, vector<2x8x8xf32>, vector<2x8x8xf32> -> vector<2x8x8xf32>
      "tpu.trace_stop"() : () -> ()
      %106 = vector.shape_cast %105 : vector<2x8x8xf32> to vector<16x8xf32>
      %107 = vector.extract_strided_slice %43 {offsets = [0, 24], sizes = [16, 8], strides = [1, 1]} : vector<16x96xf32> to vector<16x8xf32>
      %108 = vector.shape_cast %107 : vector<16x8xf32> to vector<2x8x8xf32>
      %cst_59 = arith.constant 0.353553385 : f32
      %109 = vector.broadcast %cst_59 : f32 to vector<2x8x8xf32>
      %110 = arith.mulf %108, %109 : vector<2x8x8xf32>
      %111 = vector.extract_strided_slice %43 {offsets = [0, 56], sizes = [16, 8], strides = [1, 1]} : vector<16x96xf32> to vector<16x8xf32>
      %112 = vector.shape_cast %111 : vector<16x8xf32> to vector<2x8x8xf32>
      %113 = vector.extract_strided_slice %43 {offsets = [0, 88], sizes = [16, 8], strides = [1, 1]} : vector<16x96xf32> to vector<16x8xf32>
      %114 = vector.shape_cast %113 : vector<16x8xf32> to vector<2x8x8xf32>
      "tpu.trace_start"() <{level = 10 : i32, message = "btd,bsd->bts"}> : () -> ()
      %cst_60 = arith.constant dense<0.000000e+00> : vector<2x8x8xf32>
      %115 = tpu.matmul %110, %112, %cst_60 {dimension_numbers = #tpu.dot_dimension_numbers<[2], [2], [1], [1], [0, 0, 0, 1, 1, 1], [0], [0]>} : vector<2x8x8xf32>, vector<2x8x8xf32>, vector<2x8x8xf32> -> vector<2x8x8xf32>
      "tpu.trace_stop"() : () -> ()
      %cst_61 = arith.constant dense<0xFF800000> : vector<2x8xf32>
      %116 = vector.multi_reduction <maximumf>, %115, %cst_61 [2] : vector<2x8x8xf32> to vector<2x8xf32>
      %117 = vector.shape_cast %116 : vector<2x8xf32> to vector<2x8x1xf32>
      %118 = vector.broadcast %117 : vector<2x8x1xf32> to vector<2x8x8xf32>
      %119 = arith.subf %115, %118 : vector<2x8x8xf32>
      %120 = math.exp %119 : vector<2x8x8xf32>
      %cst_62 = arith.constant dense<0.000000e+00> : vector<2x8xf32>
      %121 = vector.multi_reduction <add>, %120, %cst_62 [2] : vector<2x8x8xf32> to vector<2x8xf32>
      %122 = vector.shape_cast %121 : vector<2x8xf32> to vector<2x8x1xf32>
      %123 = tpu.reciprocal %122 {approx = true} : vector<2x8x1xf32> -> vector<2x8x1xf32>
      %124 = vector.broadcast %123 : vector<2x8x1xf32> to vector<2x8x8xf32>
      %125 = arith.mulf %120, %124 : vector<2x8x8xf32>
      "tpu.trace_start"() <{level = 10 : i32, message = "bts,bsd->btd"}> : () -> ()
      %cst_63 = arith.constant dense<0.000000e+00> : vector<2x8x8xf32>
      %126 = tpu.matmul %125, %114, %cst_63 {dimension_numbers = #tpu.dot_dimension_numbers<[2], [1], [1], [2], [0, 0, 0, 1, 1, 2], [0], [0]>} : vector<2x8x8xf32>, vector<2x8x8xf32>, vector<2x8x8xf32> -> vector<2x8x8xf32>
      "tpu.trace_stop"() : () -> ()
      %127 = vector.shape_cast %126 : vector<2x8x8xf32> to vector<16x8xf32>
      %128 = tpu.concatenate %64, %85, %106, %127 in 1 : vector<16x8xf32>, vector<16x8xf32>, vector<16x8xf32>, vector<16x8xf32> -> vector<16x32xf32>
      %cst_64 = arith.constant dense<0.000000e+00> : vector<16x32xf32>
      %129 = tpu.matmul %128, %8, %cst_64 {dimension_numbers = #tpu.dot_dimension_numbers<[1], [0], [0], [1], [0, 0, 1, 1], [], []>} : vector<16x32xf32>, vector<32x32xf32>, vector<16x32xf32> -> vector<16x32xf32>
      %130 = vector.broadcast %10 : vector<1x32xf32> to vector<16x32xf32>
      %131 = arith.addf %129, %130 : vector<16x32xf32>
      %132 = vector.shape_cast %131 : vector<16x32xf32> to vector<2x8x32xf32>
      %133 = arith.addf %39, %132 : vector<2x8x32xf32>
      %cst_65 = arith.constant dense<0.000000e+00> : vector<2x8xf32>
      %134 = vector.multi_reduction <add>, %133, %cst_65 [2] : vector<2x8x32xf32> to vector<2x8xf32>
      %135 = vector.shape_cast %134 : vector<2x8xf32> to vector<2x8x1xf32>
      %cst_66 = arith.constant 3.200000e+01 : f32
      %136 = vector.broadcast %cst_66 : f32 to vector<2x8x1xf32>
      %137 = arith.divf %135, %136 : vector<2x8x1xf32>
      %138 = vector.broadcast %137 : vector<2x8x1xf32> to vector<2x8x32xf32>
      %139 = arith.subf %133, %138 : vector<2x8x32xf32>
      %140 = arith.mulf %139, %139 : vector<2x8x32xf32>
      %cst_67 = arith.constant dense<0.000000e+00> : vector<2x8xf32>
      %141 = vector.multi_reduction <add>, %140, %cst_67 [2] : vector<2x8x32xf32> to vector<2x8xf32>
      %142 = vector.shape_cast %141 : vector<2x8xf32> to vector<2x8x1xf32>
      %cst_68 = arith.constant 3.200000e+01 : f32
      %143 = vector.broadcast %cst_68 : f32 to vector<2x8x1xf32>
      %144 = arith.divf %142, %143 : vector<2x8x1xf32>
      %145 = vector.broadcast %137 : vector<2x8x1xf32> to vector<2x8x32xf32>
      %146 = arith.subf %133, %145 : vector<2x8x32xf32>
      %cst_69 = arith.constant 9.99999974E-6 : f32
      %147 = vector.broadcast %cst_69 : f32 to vector<2x8x1xf32>
      %148 = arith.addf %144, %147 : vector<2x8x1xf32>
      %149 = math.rsqrt %148 : vector<2x8x1xf32>
      %150 = vector.broadcast %149 : vector<2x8x1xf32> to vector<2x8x32xf32>
      %151 = arith.mulf %146, %150 : vector<2x8x32xf32>
      %152 = vector.shape_cast %20 : vector<1x32xf32> to vector<1x1x32xf32>
      %153 = vector.broadcast %152 : vector<1x1x32xf32> to vector<2x8x32xf32>
      %154 = arith.mulf %151, %153 : vector<2x8x32xf32>
      %155 = vector.shape_cast %22 : vector<1x32xf32> to vector<1x1x32xf32>
      %156 = vector.broadcast %155 : vector<1x1x32xf32> to vector<2x8x32xf32>
      %157 = arith.addf %154, %156 : vector<2x8x32xf32>
      %158 = vector.shape_cast %157 : vector<2x8x32xf32> to vector<16x32xf32>
      %cst_70 = arith.constant dense<0.000000e+00> : vector<16x128xf32>
      %159 = tpu.matmul %158, %12, %cst_70 {dimension_numbers = #tpu.dot_dimension_numbers<[1], [0], [0], [1], [0, 0, 1, 1], [], []>} : vector<16x32xf32>, vector<32x128xf32>, vector<16x128xf32> -> vector<16x128xf32>
      %160 = vector.broadcast %14 : vector<1x128xf32> to vector<16x128xf32>
      %161 = arith.addf %159, %160 : vector<16x128xf32>
      %cst_71 = arith.constant 5.000000e-01 : f32
      %162 = vector.broadcast %cst_71 : f32 to vector<16x128xf32>
      %163 = arith.mulf %162, %161 : vector<16x128xf32>
      %cst_72 = arith.constant 0.707106769 : f32
      %164 = vector.broadcast %cst_72 : f32 to vector<16x128xf32>
      %165 = arith.mulf %161, %164 : vector<16x128xf32>
      %cst_73 = arith.constant 0.000000e+00 : f32
      %166 = vector.broadcast %cst_73 : f32 to vector<16x128xf32>
      %167 = arith.cmpf oge, %165, %166 : vector<16x128xf32>
      %cst_74 = arith.constant 1.000000e+00 : f32
      %cst_75 = arith.constant -1.000000e+00 : f32
      %168 = vector.broadcast %cst_74 : f32 to vector<16x128xf32>
      %169 = vector.broadcast %cst_75 : f32 to vector<16x128xf32>
      %170 = arith.select %167, %168, %169 : vector<16x128xi1>, vector<16x128xf32>
      %171 = math.absf %165 : vector<16x128xf32>
      %cst_76 = arith.constant 0.327591091 : f32
      %172 = vector.broadcast %cst_76 : f32 to vector<16x128xf32>
      %173 = arith.mulf %172, %171 : vector<16x128xf32>
      %cst_77 = arith.constant 1.000000e+00 : f32
      %174 = vector.broadcast %cst_77 : f32 to vector<16x128xf32>
      %175 = arith.addf %174, %173 : vector<16x128xf32>
      %cst_78 = arith.constant 1.000000e+00 : f32
      %176 = vector.broadcast %cst_78 : f32 to vector<16x128xf32>
      %177 = arith.divf %176, %175 : vector<16x128xf32>
      %cst_79 = arith.constant 1.06140542 : f32
      %178 = vector.broadcast %cst_79 : f32 to vector<16x128xf32>
      %179 = arith.mulf %178, %177 : vector<16x128xf32>
      %cst_80 = arith.constant -1.45315206 : f32
      %180 = vector.broadcast %cst_80 : f32 to vector<16x128xf32>
      %181 = arith.addf %179, %180 : vector<16x128xf32>
      %182 = arith.mulf %181, %177 : vector<16x128xf32>
      %cst_81 = arith.constant 1.42141378 : f32
      %183 = vector.broadcast %cst_81 : f32 to vector<16x128xf32>
      %184 = arith.addf %182, %183 : vector<16x128xf32>
      %185 = arith.mulf %184, %177 : vector<16x128xf32>
      %cst_82 = arith.constant -0.284496725 : f32
      %186 = vector.broadcast %cst_82 : f32 to vector<16x128xf32>
      %187 = arith.addf %185, %186 : vector<16x128xf32>
      %188 = arith.mulf %187, %177 : vector<16x128xf32>
      %cst_83 = arith.constant 0.254829586 : f32
      %189 = vector.broadcast %cst_83 : f32 to vector<16x128xf32>
      %190 = arith.addf %188, %189 : vector<16x128xf32>
      %191 = arith.mulf %190, %177 : vector<16x128xf32>
      %cst_84 = arith.constant 0.000000e+00 : f32
      %192 = vector.broadcast %cst_84 : f32 to vector<16x128xf32>
      %193 = arith.subf %192, %171 : vector<16x128xf32>
      %194 = arith.mulf %193, %171 : vector<16x128xf32>
      %195 = math.exp %194 : vector<16x128xf32>
      %196 = arith.mulf %191, %195 : vector<16x128xf32>
      %cst_85 = arith.constant 1.000000e+00 : f32
      %197 = vector.broadcast %cst_85 : f32 to vector<16x128xf32>
      %198 = arith.subf %197, %196 : vector<16x128xf32>
      %199 = arith.mulf %170, %198 : vector<16x128xf32>
      %cst_86 = arith.constant 1.000000e+00 : f32
      %200 = vector.broadcast %cst_86 : f32 to vector<16x128xf32>
      %201 = arith.addf %200, %199 : vector<16x128xf32>
      %202 = arith.mulf %163, %201 : vector<16x128xf32>
      %cst_87 = arith.constant dense<0.000000e+00> : vector<16x32xf32>
      %203 = tpu.matmul %202, %16, %cst_87 {dimension_numbers = #tpu.dot_dimension_numbers<[1], [0], [0], [1], [0, 0, 1, 1], [], []>} : vector<16x128xf32>, vector<128x32xf32>, vector<16x32xf32> -> vector<16x32xf32>
      %204 = vector.broadcast %18 : vector<1x32xf32> to vector<16x32xf32>
      %205 = arith.addf %203, %204 : vector<16x32xf32>
      %206 = vector.shape_cast %205 : vector<16x32xf32> to vector<2x8x32xf32>
      %207 = arith.addf %157, %206 : vector<2x8x32xf32>
      %cst_88 = arith.constant dense<0.000000e+00> : vector<2x8xf32>
      %208 = vector.multi_reduction <add>, %207, %cst_88 [2] : vector<2x8x32xf32> to vector<2x8xf32>
      %209 = vector.shape_cast %208 : vector<2x8xf32> to vector<2x8x1xf32>
      %cst_89 = arith.constant 3.200000e+01 : f32
      %210 = vector.broadcast %cst_89 : f32 to vector<2x8x1xf32>
      %211 = arith.divf %209, %210 : vector<2x8x1xf32>
      %212 = vector.broadcast %211 : vector<2x8x1xf32> to vector<2x8x32xf32>
      %213 = arith.subf %207, %212 : vector<2x8x32xf32>
      %214 = arith.mulf %213, %213 : vector<2x8x32xf32>
      %cst_90 = arith.constant dense<0.000000e+00> : vector<2x8xf32>
      %215 = vector.multi_reduction <add>, %214, %cst_90 [2] : vector<2x8x32xf32> to vector<2x8xf32>
      %216 = vector.shape_cast %215 : vector<2x8xf32> to vector<2x8x1xf32>
      %cst_91 = arith.constant 3.200000e+01 : f32
      %217 = vector.broadcast %cst_91 : f32 to vector<2x8x1xf32>
      %218 = arith.divf %216, %217 : vector<2x8x1xf32>
      %219 = vector.broadcast %211 : vector<2x8x1xf32> to vector<2x8x32xf32>
      %220 = arith.subf %207, %219 : vector<2x8x32xf32>
      %cst_92 = arith.constant 9.99999974E-6 : f32
      %221 = vector.broadcast %cst_92 : f32 to vector<2x8x1xf32>
      %222 = arith.addf %218, %221 : vector<2x8x1xf32>
      %223 = math.rsqrt %222 : vector<2x8x1xf32>
      %224 = vector.broadcast %223 : vector<2x8x1xf32> to vector<2x8x32xf32>
      %225 = arith.mulf %220, %224 : vector<2x8x32xf32>
      %226 = vector.shape_cast %24 : vector<1x32xf32> to vector<1x1x32xf32>
      %227 = vector.broadcast %226 : vector<1x1x32xf32> to vector<2x8x32xf32>
      %228 = arith.mulf %225, %227 : vector<2x8x32xf32>
      %229 = vector.shape_cast %26 : vector<1x32xf32> to vector<1x1x32xf32>
      %230 = vector.broadcast %229 : vector<1x1x32xf32> to vector<2x8x32xf32>
      %231 = arith.addf %228, %230 : vector<2x8x32xf32>
      %c0_93 = arith.constant 0 : index
      %c0_94 = arith.constant 0 : index
      %c0_95 = arith.constant 0 : index
      %232 = vector.load %arg22[%c0_93, %c0_94, %c0_95] : memref<2x8x32xf32, #tpu.memory_space<vmem>>, vector<2x8x32xf32>
      tpu.vector_store %arg22[%c0_93, %c0_94, %c0_95], %231 {strides = array<i32>} : memref<2x8x32xf32, #tpu.memory_space<vmem>>, vector<2x8x32xf32>,
    } else {
    }
    %c5_i32 = arith.constant 5 : i32
    %36 = arith.cmpi eq, %arg0, %c5_i32 : i32
    %37 = arith.extui %36 : i1 to i32
    %c0_i32_40 = arith.constant 0 : i32
    %38 = arith.cmpi ne, %37, %c0_i32_40 : i32
    scf.if %38 {
      %39 = tpu.iota {dimensions = array<i32: 0>} : vector<8x1xi32>
      %c0_41 = arith.constant 0 : index
      %40 = memref.load %arg1[%c0_41] : memref<2xi32, #tpu.memory_space<smem>>
      %41 = vector.broadcast %40 : i32 to vector<8x1xi32>
      %42 = arith.cmpi eq, %39, %41 : vector<8x1xi32>
      %43 = arith.extui %42 : vector<8x1xi1> to vector<8x1xi32>
      %44 = arith.sitofp %43 : vector<8x1xi32> to vector<8x1xf32>
      %c0_42 = arith.constant 0 : index
      %c0_43 = arith.constant 0 : index
      %c0_44 = arith.constant 0 : index
      %45 = vector.load %arg22[%c0_42, %c0_43, %c0_44] : memref<2x8x32xf32, #tpu.memory_space<vmem>>, vector<1x8x32xf32>
      %46 = vector.shape_cast %45 : vector<1x8x32xf32> to vector<8x32xf32>
      %47 = vector.broadcast %44 : vector<8x1xf32> to vector<8x32xf32>
      %48 = arith.mulf %47, %46 : vector<8x32xf32>
      %cst = arith.constant dense<0.000000e+00> : vector<32xf32>
      %49 = vector.multi_reduction <add>, %48, %cst [0] : vector<8x32xf32> to vector<32xf32>
      %50 = vector.shape_cast %49 : vector<32xf32> to vector<1x32xf32>
      %51 = tpu.iota {dimensions = array<i32: 0>} : vector<8x1xi32>
      %c1 = arith.constant 1 : index
      %52 = memref.load %arg1[%c1] : memref<2xi32, #tpu.memory_space<smem>>
      %53 = vector.broadcast %52 : i32 to vector<8x1xi32>
      %54 = arith.cmpi eq, %51, %53 : vector<8x1xi32>
      %55 = arith.extui %54 : vector<8x1xi1> to vector<8x1xi32>
      %56 = arith.sitofp %55 : vector<8x1xi32> to vector<8x1xf32>
      %c1_45 = arith.constant 1 : index
      %c0_46 = arith.constant 0 : index
      %c0_47 = arith.constant 0 : index
      %57 = vector.load %arg22[%c1_45, %c0_46, %c0_47] : memref<2x8x32xf32, #tpu.memory_space<vmem>>, vector<1x8x32xf32>
      %58 = vector.shape_cast %57 : vector<1x8x32xf32> to vector<8x32xf32>
      %59 = vector.broadcast %56 : vector<8x1xf32> to vector<8x32xf32>
      %60 = arith.mulf %59, %58 : vector<8x32xf32>
      %cst_48 = arith.constant dense<0.000000e+00> : vector<32xf32>
      %61 = vector.multi_reduction <add>, %60, %cst_48 [0] : vector<8x32xf32> to vector<32xf32>
      %62 = vector.shape_cast %61 : vector<32xf32> to vector<1x32xf32>
      %63 = tpu.concatenate %50, %62 in 0 : vector<1x32xf32>, vector<1x32xf32> -> vector<2x32xf32>
      %c0_49 = arith.constant 0 : index
      %c0_50 = arith.constant 0 : index
      %64 = vector.load %arg17[%c0_49, %c0_50] : memref<1x32xf32, #tpu.memory_space<vmem>>, vector<1x32xf32>
      %c0_51 = arith.constant 0 : index
      %c0_52 = arith.constant 0 : index
      %65 = vector.load %arg18[%c0_51, %c0_52] : memref<1x32xf32, #tpu.memory_space<vmem>>, vector<1x32xf32>
      %cst_53 = arith.constant dense<0.000000e+00> : vector<2xf32>
      %66 = vector.multi_reduction <add>, %63, %cst_53 [1] : vector<2x32xf32> to vector<2xf32>
      %67 = vector.shape_cast %66 : vector<2xf32> to vector<2x1xf32>
      %cst_54 = arith.constant 3.200000e+01 : f32
      %68 = vector.broadcast %cst_54 : f32 to vector<2x1xf32>
      %69 = arith.divf %67, %68 : vector<2x1xf32>
      %70 = vector.broadcast %69 : vector<2x1xf32> to vector<2x32xf32>
      %71 = arith.subf %63, %70 : vector<2x32xf32>
      %72 = arith.mulf %71, %71 : vector<2x32xf32>
      %cst_55 = arith.constant dense<0.000000e+00> : vector<2xf32>
      %73 = vector.multi_reduction <add>, %72, %cst_55 [1] : vector<2x32xf32> to vector<2xf32>
      %74 = vector.shape_cast %73 : vector<2xf32> to vector<2x1xf32>
      %cst_56 = arith.constant 3.200000e+01 : f32
      %75 = vector.broadcast %cst_56 : f32 to vector<2x1xf32>
      %76 = arith.divf %74, %75 : vector<2x1xf32>
      %77 = vector.broadcast %69 : vector<2x1xf32> to vector<2x32xf32>
      %78 = arith.subf %63, %77 : vector<2x32xf32>
      %cst_57 = arith.constant 9.99999974E-6 : f32
      %79 = vector.broadcast %cst_57 : f32 to vector<2x1xf32>
      %80 = arith.addf %76, %79 : vector<2x1xf32>
      %81 = math.rsqrt %80 : vector<2x1xf32>
      %82 = vector.broadcast %81 : vector<2x1xf32> to vector<2x32xf32>
      %83 = arith.mulf %78, %82 : vector<2x32xf32>
      %84 = vector.broadcast %64 : vector<1x32xf32> to vector<2x32xf32>
      %85 = arith.mulf %83, %84 : vector<2x32xf32>
      %86 = vector.broadcast %65 : vector<1x32xf32> to vector<2x32xf32>
      %87 = arith.addf %85, %86 : vector<2x32xf32>
      %c0_58 = arith.constant 0 : index
      %c0_59 = arith.constant 0 : index
      %88 = vector.load %arg19[%c0_58, %c0_59] : memref<32x128xf32, #tpu.memory_space<vmem>>, vector<32x128xf32>
      %cst_60 = arith.constant dense<0.000000e+00> : vector<2x128xf32>
      %89 = tpu.matmul %87, %88, %cst_60 {dimension_numbers = #tpu.dot_dimension_numbers<[1], [0], [0], [1], [0, 0, 1, 1], [], []>} : vector<2x32xf32>, vector<32x128xf32>, vector<2x128xf32> -> vector<2x128xf32>
      %c0_61 = arith.constant 0 : index
      %c0_62 = arith.constant 0 : index
      %90 = vector.load %arg20[%c0_61, %c0_62] : memref<1x128xf32, #tpu.memory_space<vmem>>, vector<1x128xf32>
      %91 = vector.broadcast %90 : vector<1x128xf32> to vector<2x128xf32>
      %92 = arith.addf %89, %91 : vector<2x128xf32>
      %c0_63 = arith.constant 0 : index
      %c0_64 = arith.constant 0 : index
      %93 = vector.load %arg21[%c0_63, %c0_64] : memref<2x128xf32, #tpu.memory_space<vmem>>, vector<2x128xf32>
      tpu.vector_store %arg21[%c0_63, %c0_64], %92 {strides = array<i32>} : memref<2x128xf32, #tpu.memory_space<vmem>>, vector<2x128xf32>,
    } else {
    }
    return
  }
  func.func @transform_0(%arg0: i32, %arg1: memref<2xi32, #tpu.memory_space<smem>>) -> (i32, i32, i32) {
    %c0_i32 = arith.constant 0 : i32
    %c0_i32_0 = arith.constant 0 : i32
    %c0_i32_1 = arith.constant 0 : i32
    %c0_i32_2 = arith.constant 0 : i32
    return %c0_i32, %c0_i32_0, %c0_i32_1 : i32, i32, i32
  }
  func.func @transform_1(%arg0: i32, %arg1: memref<2xi32, #tpu.memory_space<smem>>) -> (i32, i32, i32) {
    %c0_i32 = arith.constant 0 : i32
    %c0_i32_0 = arith.constant 0 : i32
    %c0_i32_1 = arith.constant 0 : i32
    return %arg0, %c0_i32, %c0_i32_0 : i32, i32, i32
  }
  func.func @transform_2(%arg0: i32, %arg1: memref<2xi32, #tpu.memory_space<smem>>) -> (i32, i32, i32) {
    %c0_i32 = arith.constant 0 : i32
    %c0_i32_0 = arith.constant 0 : i32
    %c0_i32_1 = arith.constant 0 : i32
    return %arg0, %c0_i32, %c0_i32_0 : i32, i32, i32
  }
  func.func @transform_3(%arg0: i32, %arg1: memref<2xi32, #tpu.memory_space<smem>>) -> (i32, i32, i32) {
    %c0_i32 = arith.constant 0 : i32
    %c0_i32_0 = arith.constant 0 : i32
    %c0_i32_1 = arith.constant 0 : i32
    return %arg0, %c0_i32, %c0_i32_0 : i32, i32, i32
  }
  func.func @transform_4(%arg0: i32, %arg1: memref<2xi32, #tpu.memory_space<smem>>) -> (i32, i32, i32) {
    %c0_i32 = arith.constant 0 : i32
    %c0_i32_0 = arith.constant 0 : i32
    %c0_i32_1 = arith.constant 0 : i32
    return %arg0, %c0_i32, %c0_i32_0 : i32, i32, i32
  }
  func.func @transform_5(%arg0: i32, %arg1: memref<2xi32, #tpu.memory_space<smem>>) -> (i32, i32, i32) {
    %c0_i32 = arith.constant 0 : i32
    %c0_i32_0 = arith.constant 0 : i32
    %c0_i32_1 = arith.constant 0 : i32
    return %arg0, %c0_i32, %c0_i32_0 : i32, i32, i32
  }
  func.func @transform_6(%arg0: i32, %arg1: memref<2xi32, #tpu.memory_space<smem>>) -> (i32, i32, i32) {
    %c0_i32 = arith.constant 0 : i32
    %c0_i32_0 = arith.constant 0 : i32
    %c0_i32_1 = arith.constant 0 : i32
    return %arg0, %c0_i32, %c0_i32_0 : i32, i32, i32
  }
  func.func @transform_7(%arg0: i32, %arg1: memref<2xi32, #tpu.memory_space<smem>>) -> (i32, i32, i32) {
    %c0_i32 = arith.constant 0 : i32
    %c0_i32_0 = arith.constant 0 : i32
    %c0_i32_1 = arith.constant 0 : i32
    return %arg0, %c0_i32, %c0_i32_0 : i32, i32, i32
  }
  func.func @transform_8(%arg0: i32, %arg1: memref<2xi32, #tpu.memory_space<smem>>) -> (i32, i32, i32) {
    %c0_i32 = arith.constant 0 : i32
    %c0_i32_0 = arith.constant 0 : i32
    %c0_i32_1 = arith.constant 0 : i32
    return %arg0, %c0_i32, %c0_i32_0 : i32, i32, i32
  }
  func.func @transform_9(%arg0: i32, %arg1: memref<2xi32, #tpu.memory_space<smem>>) -> (i32, i32, i32) {
    %c0_i32 = arith.constant 0 : i32
    %c0_i32_0 = arith.constant 0 : i32
    %c0_i32_1 = arith.constant 0 : i32
    return %arg0, %c0_i32, %c0_i32_0 : i32, i32, i32
  }
  func.func @transform_10(%arg0: i32, %arg1: memref<2xi32, #tpu.memory_space<smem>>) -> (i32, i32, i32) {
    %c0_i32 = arith.constant 0 : i32
    %c0_i32_0 = arith.constant 0 : i32
    %c0_i32_1 = arith.constant 0 : i32
    return %arg0, %c0_i32, %c0_i32_0 : i32, i32, i32
  }
  func.func @transform_11(%arg0: i32, %arg1: memref<2xi32, #tpu.memory_space<smem>>) -> (i32, i32, i32) {
    %c0_i32 = arith.constant 0 : i32
    %c0_i32_0 = arith.constant 0 : i32
    %c0_i32_1 = arith.constant 0 : i32
    return %arg0, %c0_i32, %c0_i32_0 : i32, i32, i32
  }
  func.func @transform_12(%arg0: i32, %arg1: memref<2xi32, #tpu.memory_space<smem>>) -> (i32, i32, i32) {
    %c0_i32 = arith.constant 0 : i32
    %c0_i32_0 = arith.constant 0 : i32
    %c0_i32_1 = arith.constant 0 : i32
    return %arg0, %c0_i32, %c0_i32_0 : i32, i32, i32
  }
  func.func @transform_13(%arg0: i32, %arg1: memref<2xi32, #tpu.memory_space<smem>>) -> (i32, i32) {
    %c0_i32 = arith.constant 0 : i32
    %c0_i32_0 = arith.constant 0 : i32
    %c0_i32_1 = arith.constant 0 : i32
    return %c0_i32, %c0_i32_0 : i32, i32
  }
  func.func @transform_14(%arg0: i32, %arg1: memref<2xi32, #tpu.memory_space<smem>>) -> (i32, i32) {
    %c0_i32 = arith.constant 0 : i32
    %c0_i32_0 = arith.constant 0 : i32
    %c0_i32_1 = arith.constant 0 : i32
    return %c0_i32, %c0_i32_0 : i32, i32
  }
  func.func @transform_15(%arg0: i32, %arg1: memref<2xi32, #tpu.memory_space<smem>>) -> (i32, i32) {
    %c0_i32 = arith.constant 0 : i32
    %c0_i32_0 = arith.constant 0 : i32
    %c0_i32_1 = arith.constant 0 : i32
    return %c0_i32, %c0_i32_0 : i32, i32
  }
  func.func @transform_16(%arg0: i32, %arg1: memref<2xi32, #tpu.memory_space<smem>>) -> (i32, i32) {
    %c0_i32 = arith.constant 0 : i32
    %c0_i32_0 = arith.constant 0 : i32
    %c0_i32_1 = arith.constant 0 : i32
    return %c0_i32, %c0_i32_0 : i32, i32
  }
  func.func @transform_17(%arg0: i32, %arg1: memref<2xi32, #tpu.memory_space<smem>>) -> (i32, i32) {
    %c0_i32 = arith.constant 0 : i32
    %c0_i32_0 = arith.constant 0 : i32
    %c0_i32_1 = arith.constant 0 : i32
    return %c0_i32, %c0_i32_0 : i32, i32
  }
  func.func @transform_18(%arg0: i32, %arg1: memref<2xi32, #tpu.memory_space<smem>>) -> (i32, i32) {
    %c0_i32 = arith.constant 0 : i32
    %c0_i32_0 = arith.constant 0 : i32
    %c0_i32_1 = arith.constant 0 : i32
    return %c0_i32, %c0_i32_0 : i32, i32
  }
  func.func @transform_19(%arg0: i32, %arg1: memref<2xi32, #tpu.memory_space<smem>>) -> (i32, i32) {
    %c0_i32 = arith.constant 0 : i32
    %c0_i32_0 = arith.constant 0 : i32
    %c0_i32_1 = arith.constant 0 : i32
    return %c0_i32, %c0_i32_0 : i32, i32
  }
}

</mosaic_0001>

<bundles_post_ra>
// kernel: tpu_custom_call.1
= control target key start
LH: loop header
LB: loop body
LE: loop exit
PB: predicated region body
PF: predicated region fallthrough
CT: control target
= control target key end

     0   :  { %9 = vsyncpa [#allocation5], 0  ;;  %s642_s0 = inlined_call_operand.<no memory space> [shape: s32[1], index: 0, kind: input, shape index: {}]   ;;  %s643_s1 = inlined_call_operand.hbm [shape: f32[8,128], index: 1, kind: input, shape index: {}]   ;;  %s644_s2 = inlined_call_operand.hbm [shape: f32[16,128], index: 2, kind: input, shape index: {}]   ;;  %s645_s3 = inlined_call_operand.hbm [shape: f32[16,128], index: 3, kind: output, shape index: {}]  }
   0x1   :  { %10 = vsyncpa [#allocation8], 0 }
   0x2   :  { %12 = vsyncpa [#allocation8 + $0x1], 0 }
   0x3   :  { %13 = vsyncpa [#allocation6], 0 }
   0x4   :  { %15 = vsyncpa [#allocation6 + $0x1], 0  ;;  %s504_s12 = smov 0   ;;  %s506_s13 = smov 0  }
   0x5   :  { %s508_s14 = smov 0   ;;  %s510_s0 = smov 0  }
   0x6 LB: > { %s525_s15 = sadd.s32 4294967295, %s481_s0   ;;  %s280_s16 = sadd.s32 4294967294, %s481_s0   ;;  %s481_s0 = sphi %s510_s0, %s655_s0   ;;  %s477_s14 = sphi %s508_s14, %s654_s14   ;;  %s473_s13 = sphi %s506_s13, %s653_s13   ;;  %s469_s12 = sphi %s504_s12, %s652_s12  }
   0x7   : > { %p62_p0 = scmp.ne.s32.totalorder %s473_s13, %s469_s12  ;;  %p63_p1 = scmp.eq.s32.totalorder %s525_s15, 0 }
   0x8   : > { %p86_p2 = scmp.eq.s32.totalorder %s525_s15, 1  ;;  %p92_p3 = scmp.eq.s32.totalorder %s280_s16, 1 }
   0x9   : > { %p534_p4 = por %p63_p1, %p62_p0  ;;  %p281_p5 = scmp.ge.s32.totalorder %s481_s0, 1 }
   0xa   : > { %p539_p6 = por %p92_p3, %p62_p0  ;;  %p99_p7 = scmp.lt.s32.totalorder %s481_s0, 3 }
   0xb   : > { %s111_s21 = sshll.u32 %s643_s1, 4  ;;  %s483_s23 = smov [#allocation4]   ;;  %s112_s21 = int_to_ptr.hbm [resolvable:$true] %s111_s21 }
   0xc   : > { %p547_p8 = pnand %p281_p5, %p99_p7  ;;  %s113_s24 = sshll.u32 %s483_s23, 4  ;;  %s114_s24 = int_to_ptr.vmem [resolvable:$true] %s113_s24 }
   0xd   : > { %s557_s25 = sadd.s32 1, %s481_s0   ;;  %s49_s26 = sadd.s32 1, %s477_s14 }
   0xe   : > { %p302_p10 = pneg %p547_p8  ;;  %s46_s27 = ssub.s32 %s481_s0, %s557_s25 }
   0xf   : > { %p47_p12 = scmp.eq.s32.totalorder %s46_s27, 0  ;;  %p56_p13 = scmp.ne.s32.totalorder %s477_s14, %s473_s13 }
  0x10   : > { %p303_p11 = pnand %p302_p10, %p63_p1  ;;  %p57_p0 = scmp.eq.s32.totalorder %s481_s0, 0 }
  0x11   : > { %s566_s28 = scalar_select %p47_p12, %s477_s14, %s49_s26  }
  0x12   : > { %305 = dma.hbm_to_vmem [thread:$0]  (!%p303_p11), %s112_s21, 128, %s114_s24, [#allocation5]  }
  0x13   : > { %p570_p3 = por %p86_p2, %p56_p13  ;;  %p315_p5 = scmp.lt.s32.totalorder %s481_s0, 2 }
  0x14   : > { %s124_s30 = sand.u32 1, %s477_s14   ;;  %s285_s4 = sshll.u32 %s481_s0, 3 }
  0x15   : > { %p58_p7 = por %p57_p0, %p56_p13  ;;  %s284_s5 = sshll.u32 %s124_s30, 3 }
  0x16   : > { %s132_s8 = scalar_lea.hbm %s644_s2, %s285_s4  ;;  %s128_s10 = scalar_lea.vmem [#allocation7], %s284_s5 }
  0x17   : > { %s134_s9 = sshll.u32 %s132_s8, 4  ;;  %s136_s11 = sshll.u32 %s128_s10, 4  ;;  %s135_s9 = int_to_ptr.hbm [resolvable:$true] %s134_s9  ;;  %s137_s11 = int_to_ptr.vmem [resolvable:$true] %s136_s11 }
  0x18   : > { %p580_p10 = pnand %p315_p5, %p58_p7  ;;  %s125_s19 = scalar_lea.sflag [#allocation8], %s124_s30 }
  0x19   : > { %s381_s20 = sshra.s32 %s135_s9, 4  ;;  %s388_s26 = scalar_lea.hbm %s644_s2, 16  ;;  %s382_s20 = int_to_ptr.hbm [resolvable:$true] %s381_s20 }
  0x1a   : > { %s383_s21 = scalar_lea.hbm %s382_s20, 8  ;;  %p385_p11 = pneg %p580_p10 }
  0x1b   : > { %p384_p2 = scmp.ne.s32.totalorder %s382_s20, %s383_s21  ;;  %p389_p0 = scmp.lt.s32.totalorder %s382_s20, %s644_s2 }
  0x1c   : > { %p390_p5 = scmp.lt.s32.totalorder %s388_s26, %s383_s21 }
  0x1d   : > { %p386_p12 = pnand %p385_p11, %p384_p2 }
  0x1e   : > { %p391_p7 = por %p390_p5, %p389_p0 }
  0x1f   : > { %p387_p13 = pneg %p386_p12 }
  0x21   : > { %p392_p9 = pnand %p391_p7, %p387_p13 }
  0x23   : > { %395 = shalt.err (!%p392_p9)
}
  0x24   : > { %309 = dma.hbm_to_vmem [thread:$0]  (!%p580_p10), %s135_s9, 128, %s137_s11, %s125_s19  }
  0x25   : > { %145 = sbr.rel (%p547_p8) target bundleno = 62 (0x3e), region = 28 }
  0x2a   : > { %456 = dma.done.wait (%p63_p1), [#allocation5], 128  }
  0x2b   : > { %458 = vsyncadd (%p63_p1), [#allocation5], 4294967168  ;;  %s601_s30 = sand.u32 1, %s473_s13  }
  0x2c   : > { %s288_s5 = sshll.u32 %s601_s30, 3  ;;  %s153_s6 = scalar_lea.sflag [#allocation8], %s601_s30 }
  0x2d   : > { %s156_s7 = scalar_lea.vmem [#allocation7], %s288_s5 }
  0x2e   : > { %460 = dma.done.wait (%p534_p4), %s153_s6, 128  }
  0x2f   : > { %462 = vsyncadd (%p534_p4), %s153_s6, 4294967168  ;;  %s291_s22 = sshll.u32 %s525_s15, 3  ;;  %s177_s11 = scalar_lea.vmem [#allocation9], %s288_s5  ;;  %v178_v0 = vld [vmem:[#allocation4] sm:$0xff]  ;;  %v179_v1 = vld [vmem:[%s156_s7] sm:$0xff] }
  0x30   : > { %s193_s10 = scalar_lea.hbm %s645_s3, %s291_s22  ;;  %s195_s16 = sshll.u32 %s177_s11, 4  ;;  %v180_v2 = vadd.f32 %v179_v1, %v178_v0  ;;  %s196_s16 = int_to_ptr.vmem [resolvable:$true] %s195_s16 }
  0x31   : > { %s197_s19 = sshll.u32 %s193_s10, 4  ;;  %s183_s20 = scalar_lea.sflag [#allocation6], %s601_s30  ;;  %s198_s19 = int_to_ptr.hbm [resolvable:$true] %s197_s19 }
  0x32   : > { %181 = vst [vmem:[%s177_s11] sm:$0xff] %v180_v2  ;;  %s425_s17 = sshra.s32 %s198_s19, 4  ;;  %s431_s24 = scalar_lea.hbm %s645_s3, 16  ;;  %s426_s17 = int_to_ptr.hbm [resolvable:$true] %s425_s17 }
  0x33   : > { %s427_s21 = scalar_lea.hbm %s426_s17, 8  ;;  %p432_p9 = scmp.lt.s32.totalorder %s426_s17, %s645_s3 }
  0x34   : > { %p428_p1 = scmp.ne.s32.totalorder %s426_s17, %s427_s21  ;;  %p433_p10 = scmp.lt.s32.totalorder %s431_s24, %s427_s21 }
  0x36   : > { %p429_p4 = pnand %p428_p1, %p570_p3  ;;  %p434_p2 = por %p433_p10, %p432_p9 }
  0x38   : > { %p430_p8 = pneg %p429_p4 }
  0x3a   : > { %p435_p11 = pnand %p434_p2, %p430_p8 }
  0x3c   : > { %438 = shalt.err (!%p435_p11)
}
  0x3d   : > { %300 = dma.vmem_to_hbm [thread:$0]  (%p570_p3), %s196_s16, 128, %s198_s19, %s183_s20  }
  0x3e PF: > { %s209_s4 = sand.u32 1, %s469_s12   ;;  %p651_p12 = scmp.ge.s32.totalorder %s481_s0, 2 }
  0x3f   : > { %s210_s30 = scalar_lea.sflag [#allocation6], %s209_s4 }
  0x40   : > { %p311_p13 = pnand %p651_p12, %p539_p6 }
  0x42   : > { %p312_p0 = pneg %p311_p13 }
  0x44   : > { %464 = dma.done.wait (%p312_p0), %s210_s30, 128  }
  0x45   : > { %466 = vsyncadd (%p312_p0), %s210_s30, 4294967168  ;;  %p18_p5 = scmp.ge.s32.totalorder %s557_s25, 4   ;;  %s652_s12 = smov %s473_s13 }
  0x46   : > { %s653_s13 = smov %s477_s14  ;;  %s654_s14 = smov %s566_s28 }
  0x47   : > { %s655_s0 = smov %s557_s25  ;;  %20 = sbr.rel (!%p18_p5) target bundleno = 6 (0x6), region = 78 }
  0x4c   :  { %216 = vsyncpa [#allocation5], 1 }
  0x4d   :  { %218 = vsyncpa [#allocation5 + $0x1], 1 }
  0x4e   :  { %219 = vsyncpa [#allocation8], 1 }
  0x4f   :  { %221 = vsyncpa [#allocation8 + $0x1], 1 }
  0x50   :  { %222 = vsyncpa [#allocation6], 1 }
  0x51   :  { %224 = vsyncpa [#allocation6 + $0x1], 1 }

// kernel: text_encoder_forward.1
= control target key start
LH: loop header
LB: loop body
LE: loop exit
PB: predicated region body
PF: predicated region fallthrough
CT: control target
= control target key end

     0   :  { %s3170_s24 = smov [#allocation4]   ;;  %s3886_s0 = inlined_call_operand.vmem [shape: s32[2], index: 0, kind: input, shape index: {}]   ;;  %s3887_s1 = inlined_call_operand.vmem [shape: f32[2,8,32], index: 1, kind: input, shape index: {}]   ;;  %s3888_s2 = inlined_call_operand.vmem [shape: f32[6,32,96], index: 2, kind: input, shape index: {}]   ;;  %s3889_s3 = inlined_call_operand.vmem [shape: f32[6,1,96], index: 3, kind: input, shape index: {}]   ;;  %s3890_s4 = inlined_call_operand.vmem [shape: f32[6,32,32], index: 4, kind: input, shape index: {}]   ;;  %s3891_s5 = inlined_call_operand.vmem [shape: f32[6,1,32], index: 5, kind: input, shape index: {}]   ;;  %s3892_s6 = inlined_call_operand.vmem [shape: f32[6,32,128], index: 6, kind: input, shape index: {}]   ;;  %s3893_s7 = inlined_call_operand.vmem [shape: f32[6,1,128], index: 7, kind: input, shape index: {}]   ;;  %s3894_s8 = inlined_call_operand.vmem [shape: f32[6,128,32], index: 8, kind: input, shape index: {}]   ;;  %s3895_s9 = inlined_call_operand.vmem [shape: f32[6,1,32], index: 9, kind: input, shape index: {}]   ;;  %s3896_s10 = inlined_call_operand.vmem [shape: f32[6,1,32], index: 10, kind: input, shape index: {}]   ;;  %s3897_s11 = inlined_call_operand.vmem [shape: f32[6,1,32], index: 11, kind: input, shape index: {}]   ;;  %s3898_s12 = inlined_call_operand.vmem [shape: f32[6,1,32], index: 12, kind: input, shape index: {}]   ;;  %s3899_s13 = inlined_call_operand.vmem [shape: f32[6,1,32], index: 13, kind: input, shape index: {}]   ;;  %s3900_s14 = inlined_call_operand.vmem [shape: f32[1,32], index: 14, kind: input, shape index: {}]   ;;  %s3901_s15 = inlined_call_operand.vmem [shape: f32[1,32], index: 15, kind: input, shape index: {}]   ;;  %s3902_s16 = inlined_call_operand.vmem [shape: f32[1,32], index: 16, kind: input, shape index: {}]   ;;  %s3903_s17 = inlined_call_operand.vmem [shape: f32[1,32], index: 17, kind: input, shape index: {}]   ;;  %s3904_s18 = inlined_call_operand.vmem [shape: f32[32,128], index: 18, kind: input, shape index: {}]   ;;  %s3905_s19 = inlined_call_operand.vmem [shape: f32[1,128], index: 19, kind: input, shape index: {}]   ;;  %s3906_s20 = inlined_call_operand.hbm [shape: f32[2,128], index: 20, kind: output, shape index: {}]  }
   0x1   :  { %3911 = sst [smem:[#allocation11_spill]] %s3886_s0 }
   0x2   :  { %3912 = sst [smem:[#allocation12_spill]] %s3887_s1 }
   0x3   :  { %3913 = sst [smem:[#allocation13_spill]] %s3888_s2 }
   0x4   :  { %3914 = sst [smem:[#allocation14_spill]] %s3889_s3 }
   0x5   :  { %3915 = sst [smem:[#allocation15_spill]] %s3890_s4 }
   0x6   :  { %3916 = sst [smem:[#allocation16_spill]] %s3891_s5 }
   0x7   :  { %3917 = sst [smem:[#allocation17_spill]] %s3892_s6 }
   0x8   :  { %3918 = sst [smem:[#allocation18_spill]] %s3900_s14 }
   0x9   :  { %3919 = sst [smem:[#allocation19_spill]] %s3901_s15 }
   0xa   :  { %3920 = sst [smem:[#allocation20_spill]] %s3902_s16 }
   0xb   :  { %3921 = sst [smem:[#allocation21_spill]] %s3903_s17 }
   0xc   :  { %3922 = sst [smem:[#allocation22_spill]] %s3904_s18 }
   0xd   :  { %3923 = sst [smem:[#allocation23_spill]] %s3905_s19 }
   0xe   :  { %3924 = sst [smem:[#allocation24_spill]] %s3906_s20 }
   0xf   :  { %s3925_s23 = sld [smem:[#allocation11_spill]] }
  0x15   :  { %s26_s14 = sshll.u32 %s3925_s23, 4  ;;  %s27_s14 = int_to_ptr.vmem [resolvable:$true] %s26_s14 }
  0x16   :  { %29 = dma.vmem_to_smem %s27_s14, 16, %s3170_s24, [#allocation3] }
  0x17   :  { %3160 = dma.done.wait [#allocation3], 16 }
  0x18   :  { %3161 = vsyncadd [#allocation3], 4294967280 }
  0x19   :  { %32 = sfence }
  0x1a   :  { %33 = vsyncpa [#allocation6], 0  ;;  %s3315_s2 = smov 0  }
  0x1b LB: > { %3926 = sst [smem:[#allocation9_spill]] %s3168_s2  ;;  %s3321_s25 = sadd.s32 4294967295, %s3168_s2   ;;  %s3168_s2 = sphi %s3315_s2, %s39_s2  }
  0x1c   : > { %3927 = sst [smem:[#allocation10_spill]] %s3321_s25  ;;  %p2864_p0 = scmp.ge.s32.totalorder %s3168_s2, 1 }
  0x1d   : > { %p636_p1 = scmp.lt.s32.totalorder %s3168_s2, 7 }
  0x1f   : > { %p637_p2 = pnand %p2864_p0, %p636_p1 }
  0x20   : > { %p726_p3 = scmp.lt.s32.totalorder (!%p637_p2), %s3321_s25, 5  ;;  %s3928_s28 = sld [smem:[#allocation14_spill]] (!%p637_p2) }
  0x21   : > { %640 = sbr.rel (%p637_p2) target bundleno = 6230 (0x1856), region = 96  ;;  %s3929_s0 = sld [smem:[#allocation13_spill]] (!%p637_p2) }
  0x22   : > { %s3930_s23 = sld [smem:[#allocation15_spill]] (!%p637_p2) }
  0x23   : > { %s3931_s5 = sld [smem:[#allocation16_spill]] (!%p637_p2) }
  0x24   : > { %s3932_s6 = sld [smem:[#allocation17_spill]] (!%p637_p2) }
  0x25   : > { %s3933_s29 = sld [smem:[#allocation10_spill]] (!%p637_p2) }
  0x26   : > { %s3327_s14 = scalar_select %p726_p3, %s3321_s25, 5 }
  0x28   : > { %s2946_s3 = sshll.u32 %s3327_s14, 5  ;;  %s733_s4 = scalar_lea.vmem %s3928_s28, %s3327_s14 }
  0x29   : > { %s730_s21 = scalar_lea.vmem %s3929_s0, %s2946_s3  ;;  %s738_s24 = scalar_lea.vmem %s3930_s23, %s2946_s3 }
  0x2a   : > { %s741_s19 = scalar_lea.vmem %s3931_s5, %s3327_s14  ;;  %s746_s18 = scalar_lea.vmem %s3932_s6, %s2946_s3 }
  0x2b   : > { %s749_s26 = scalar_lea.vmem %s3893_s7, %s3327_s14  ;;  %s2949_s27 = sshll.u32 %s3327_s14, 7 }
  0x2c   : > { %s3355_s30 = scalar_lea.vmem %s3894_s8, %s2949_s27  ;;  %s760_s23 = scalar_lea.vmem %s3896_s10, %s3327_s14 }
  0x2d   : > { %s763_s3 = scalar_lea.vmem %s3897_s11, %s3327_s14  ;;  %s766_s5 = scalar_lea.vmem %s3898_s12, %s3327_s14 }
  0x2e   : > { %s769_s27 = scalar_lea.vmem %s3899_s13, %s3327_s14  ;;  %p2873_p4 = scmp.ne.s32.totalorder %s3933_s29, 0 }
  0x2f   : > { %s3934_s22 = sld [smem:[#allocation12_spill]] (!%p2873_p4) }
  0x30   : > { %773 = sbr.rel (%p2873_p4) target bundleno = 56 (0x38), region = 100 }
  0x35   : > { %v774_v0 = vld [vmem:[%s3934_s22] sm:$0xff]  ;;  %vm776_vm0 = vcmask 261120   ;;  %v775_v1 = vld [vmem:[%s3934_s22 + $0x8] sm:$0xff] }
  0x36   : > { %777 = vst.msk [vmem:[#allocation2] sm:$0xff] %vm776_vm0, %v774_v0 }
  0x37   : > { %778 = vst.msk [vmem:[#allocation2 + $0x8] sm:$0xff] %vm776_vm0, %v775_v1 }
  0x38 PF: > { %v3384_v2 = vld [vmem:[%s730_s21] sm:$0xff]  ;;  %v3386_v3 = vld [vmem:[%s730_s21 + $0x8] sm:$0xff]  ;;  %v3388_v4 = vld [vmem:[%s730_s21 + $0x10] sm:$0xff] }
  0x39   : > { %v3390_v5 = vld [vmem:[%s730_s21 + $0x18] sm:$0xff]  ;;  %v3392_v6 = vld [vmem:[%s733_s4] sm:$0x1]  ;;  %v3396_v8 = vld [vmem:[%s738_s24 + $0x8] sm:$0xff] }
  0x3a   : > { %v3394_v7 = vld [vmem:[%s738_s24] sm:$0xff]  ;;  %v3398_v9 = vld [vmem:[%s738_s24 + $0x10] sm:$0xff]  ;;  %v3400_v10 = vld [vmem:[%s738_s24 + $0x18] sm:$0xff] }
  0x3b   : > { %v3402_v11 = vld [vmem:[%s741_s19] sm:$0x1]  ;;  %v3406_v13 = vld [vmem:[%s746_s18 + $0x8] sm:$0xff]  ;;  %v3408_v14 = vld [vmem:[%s746_s18 + $0x10] sm:$0xff]  ;;  %s3935_s19 = scalar_lea.vmem %s3895_s9, %s3327_s14 }
  0x3c   : > { %v3404_v12 = vld [vmem:[%s746_s18] sm:$0xff]  ;;  %v3410_v15 = vld [vmem:[%s746_s18 + $0x18] sm:$0xff]  ;;  %v3418_v18 = vld [vmem:[%s3355_s30 + $0x8] sm:$0xff] }
  0x3d   : > { %v3412_v16 = vld [vmem:[%s749_s26] sm:$0x1]  ;;  %v3421_v19 = vld [vmem:[%s3355_s30 + $0x10] sm:$0xff]  ;;  %v3424_v20 = vld [vmem:[%s3355_s30 + $0x18] sm:$0xff] }
  0x3e   : > { %v3415_v17 = vld [vmem:[%s3355_s30] sm:$0xff]  ;;  %v3430_v22 = vld [vmem:[%s3355_s30 + $0x28] sm:$0xff]  ;;  %v3433_v23 = vld [vmem:[%s3355_s30 + $0x30] sm:$0xff] }
  0x3f   : > { %v3427_v21 = vld [vmem:[%s3355_s30 + $0x20] sm:$0xff]  ;;  %v3436_v24 = vld [vmem:[%s3355_s30 + $0x38] sm:$0xff]  ;;  %v3442_v26 = vld [vmem:[%s3355_s30 + $0x48] sm:$0xff] }
  0x40   : > { %v3439_v25 = vld [vmem:[%s3355_s30 + $0x40] sm:$0xff]  ;;  %v3445_v27 = vld [vmem:[%s3355_s30 + $0x50] sm:$0xff]  ;;  %v3448_v28 = vld [vmem:[%s3355_s30 + $0x58] sm:$0xff] }
  0x41   : > { %v3451_v29 = vld [vmem:[%s3355_s30 + $0x60] sm:$0xff]  ;;  %v3454_v30 = vld [vmem:[%s3355_s30 + $0x68] sm:$0xff]  ;;  %v3457_v31 = vld [vmem:[%s3355_s30 + $0x70] sm:$0xff] }
  0x42   : > { %v3460_v32 = vld [vmem:[%s3355_s30 + $0x78] sm:$0xff]  ;;  %v3467_v33 = vld [vmem:[%s3935_s19] sm:$0x1] }
  0x43   : > { %v3474_v34 = vld [vmem:[%s760_s23] sm:$0x1]  ;;  %s3936_s23 = sld [smem:[#allocation10_spill]] }
  0x44   : > { %v3481_v35 = vld [vmem:[%s763_s3] sm:$0x1] }
  0x45   : > { %v3488_v36 = vld [vmem:[%s766_s5] sm:$0x1] }
  0x46   : > { %v3495_v37 = vld [vmem:[%s769_s27] sm:$0x1] }
  0x49   : > { %p2874_p5 = scmp.ge.s32.totalorder %s3936_s23, 2 }
  0x4a   : > { %s3172_s5 = smov (!%p2874_p5), 96   ;;  %s3174_s14 = smov (!%p2874_p5), 64  }
  0x4b   : > { %818 = sbr.rel (%p2874_p5) target bundleno = 2755 (0xac3), region = 104  ;;  %s3175_s3 = smov (!%p2874_p5), 88  }
  0x4c   : > { %s3176_s25 = smov (!%p2874_p5), 120   ;;  %s3177_s28 = smov (!%p2874_p5), 56  }
  0x4d   : > { %s3178_s27 = smov (!%p2874_p5), 80   ;;  %s3179_s29 = smov (!%p2874_p5), 104  }
  0x4e   : > { %s3180_s0 = smov (!%p2874_p5), 112   ;;  %s3181_s1 = smov (!%p2874_p5), 72  }
  0x4f   : > { %s3182_s20 = smov (!%p2874_p5), 48   ;;  %s3183_s2 = smov (!%p2874_p5), 40  }
  0x50   : > { %v3498_v38 = vld [vmem:[#allocation2] sm:$0xff]  ;;  %vm821_vm1 = vcmask 261120   ;;  %904 = vmatpush.msra.mxu0 %v3390_v5  ;;  %v3504_v40 = vld [vmem:[#allocation2 + $0x8] sm:$0xff]  ;;  %v3171_v42 = vmov 32.0   ;;  %vm926_vm9 = vcmask 64512   ;;  %s3184_s6 = smov 8  }
  0x51   : > { %v822_v39 = vsel %vm821_vm1, %v3498_v38, 0.0  ;;  %v825_v41 = vsel %vm821_vm1, %v3504_v40, 0.0  ;;  %3001 = vrcp.f32 %v3171_v42  ;;  %s3185_s18 = smov 16   ;;  %s3186_s19 = smov 24   ;;  %vm1470_vm11 = vcmask 130048  }
  0x52   : > { %823 = vadd.xlane.f32.xlu0 %v822_v39  ;;  %905 = vmatpush.msra.mxu0 %v3388_v4  ;;  %vm1473_vm12 = vcmask 195584  }
  0x54   : > { %906 = vmatpush.msra.mxu0 %v3386_v3 }
  0x56   : > { %907 = vmatpush.msra.mxu0 %v3384_v2 }
  0x57   : > { %v3002_v43 = vpop.eup %3001 }
  0x58   : > { %v829_v44 = vmul.f32 32.0, %v3002_v43  ;;  %vm833_vm2 = vweird.f32 %v3002_v43 }
  0x5a   : > { %826 = vadd.xlane.f32.xlu0 %v825_v41  ;;  %v830_v45 = vsub.f32 1.0, %v829_v44 }
  0x5c   : > { %v831_v46 = vmul.f32 %v3002_v43, %v830_v45 }
  0x5e   : > { %v832_v47 = vadd.f32 %v3002_v43, %v831_v46 }
  0x60   : > { %v3510_v48 = vsel %vm833_vm2, %v3002_v43, %v832_v47  ;;  %v874_v47 = vperm.slane %v3474_v34, 0 }
  0xc5   : > { %v824_v49 = vpop.xlane.xlu0 %823 }
  0xc6   : > { %v835_v50 = vmul.f32 %v3510_v48, %v824_v49 }
  0xc8   : > { %v837_v51 = vsub.f32 %v3498_v38, %v835_v50 }
  0xca   : > { %v839_v52 = vmul.f32 %v837_v51, %v837_v51 }
  0xcc   : > { %v841_v53 = vsel %vm821_vm1, %v839_v52, 0.0 }
  0xcd   : > { %842 = vadd.xlane.f32.xlu1 %v841_v53  ;;  %v827_v54 = vpop.xlane.xlu0 %826  ;;  %v879_v53 = vperm.slane %v3481_v35, 0 }
  0xce   : > { %v836_v55 = vmul.f32 %v3510_v48, %v827_v54 }
  0xd0   : > { %v838_v56 = vsub.f32 %v3504_v40, %v836_v55 }
  0xd2   : > { %v840_v57 = vmul.f32 %v838_v56, %v838_v56 }
  0xd4   : > { %v844_v58 = vsel %vm821_vm1, %v840_v57, 0.0 }
  0xd5   : > { %845 = vadd.xlane.f32.xlu1 %v844_v58 }
 0x140   : > { %v843_v59 = vpop.xlane.xlu1 %842 }
 0x141   : > { %v847_v60 = vmul.f32 %v843_v59, %v3510_v48 }
 0x143   : > { %v849_v61 = vadd.f32 1e-05, %v847_v60 }
 0x145   : > { %3003 = vrsqrt.f32 %v849_v61  ;;  %vm857_vm4 = vweird.f32 %v849_v61 }
 0x148   : > { %v846_v62 = vpop.xlane.xlu1 %845 }
 0x149   : > { %v848_v63 = vmul.f32 %v846_v62, %v3510_v48 }
 0x14b   : > { %v3004_v0 = vpop.eup %3003  ;;  %v850_v1 = vadd.f32 1e-05, %v848_v63 }
 0x14c   : > { %v852_v39 = vmul.f32 %v3004_v0, %v849_v61  ;;  %vm858_vm3 = vweird.f32 %v3004_v0 }
 0x14d   : > { %3005 = vrsqrt.f32 %v850_v1  ;;  %vm859_vm5 = vmor %vm857_vm4, %vm858_vm3  ;;  %vm867_vm7 = vweird.f32 %v850_v1 }
 0x14e   : > { %v853_v41 = vmul.f32 %v3004_v0, %v852_v39 }
 0x150   : > { %v854_v42 = vmul.f32 0.5, %v853_v41 }
 0x152   : > { %v855_v43 = vsub.f32 1.5, %v854_v42 }
 0x153   : > { %v3006_v44 = vpop.eup %3005 }
 0x154   : > { %v856_v45 = vmul.f32 %v3004_v0, %v855_v43  ;;  %v862_v46 = vmul.f32 %v3006_v44, %v850_v1  ;;  %vm868_vm6 = vweird.f32 %v3006_v44 }
 0x155   : > { %vm869_vm8 = vmor %vm867_vm7, %vm868_vm6 }
 0x156   : > { %v860_v49 = vsel %vm859_vm5, %v3004_v0, %v856_v45  ;;  %v863_v50 = vmul.f32 %v3006_v44, %v862_v46  ;;  %v915_v45 = vlaneseq }
 0x157   : > { %v871_v52 = vmul.f32 %v860_v49, %v837_v51  ;;  %v884_v51 = vperm.slane %v3392_v6, 0  ;;  %v3173_v49 = vmov -1e+30  }
 0x158   : > { %v864_v54 = vmul.f32 0.5, %v863_v50  ;;  %v916_v46 = vshrl.u32 %v915_v45, 7 }
 0x159   : > { %v876_v55 = vmul.f32 %v874_v47, %v871_v52 }
 0x15a   : > { %v865_v57 = vsub.f32 1.5, %v864_v54 }
 0x15b   : > { %v881_v58 = vadd.f32 %v879_v53, %v876_v55 }
 0x15c   : > { %v866_v59 = vmul.f32 %v3006_v44, %v865_v57 }
 0x15d   : > { %2875 = vmatmul.msk.f32.vlgmr.msra.gmra.mxu0 %vm821_vm1, %v881_v58 }
 0x15e   : > { %v870_v60 = vsel %vm869_vm8, %v3006_v44, %v866_v59 }
 0x15f   : > { %v872_v61 = vmul.f32 %v870_v60, %v838_v56 }
 0x161   : > { %v877_v62 = vmul.f32 %v874_v47, %v872_v61  ;;  %v918_v47 = vand.u32 127, %v915_v45 }
 0x163   : > { %v882_v63 = vadd.f32 %v879_v53, %v877_v62  ;;  %vm919_vm10 = vcmp.le.s32.totalorder %v918_v47, %v916_v46 }
 0x164   : > { %v3543_v50 = vsel %vm919_vm10, 0.0, %v3173_v49 }
 0x165   : > { %2876 = vmatmul.msk.f32.gmra.mxu0 %vm821_vm1, %v882_v63 }
 0x1da   : > { %v909_v0 = vpop.f32.mrf.mxu0 }
 0x1db   : > { %v3525_v39 = vadd.f32 %v909_v0, %v884_v51 }
 0x1dd   : > { %924 = vrot.lane.b32.xlu2 %v3525_v39, %s3172_s5  ;;  %v3533_v56 = vmul.f32 0.35355338, %v3525_v39 }
 0x1e2   : > { %v912_v41 = vpop.f32.mrf.mxu0 }
 0x1e3   : > { %v3528_v42 = vadd.f32 %v912_v41, %v884_v51 }
 0x1e5   : > { %953 = vrot.lane.b32.xlu2 %v3528_v42, %s3172_s5  ;;  %v3539_v44 = vmul.f32 0.35355338, %v3528_v42 }
 0x237   : > { %v925_v1 = vpop.permute.xlu2 %924 }
 0x238   : > { %2877 = vmatpush.xpose.msk.msra.mxu1 %vm926_vm9, %v925_v1 }
 0x23b   : > { %2878 = vmatmul.msk.f32.vlgmr.msra.gmra.mxu1 %vm926_vm9, %v3533_v56 }
 0x23f   : > { %v954_v43 = vpop.permute.xlu2 %953 }
 0x240   : > { %2879 = vmatpush.xpose.msk.msra.mxu2 %vm926_vm9, %v954_v43 }
 0x243   : > { %2880 = vmatmul.msk.f32.vlgmr.msra.gmra.mxu2 %vm926_vm9, %v3539_v44 }
 0x2b8   : > { %v949_v52 = vpop.f32.mrf.mxu1 }
 0x2b9   : > { %v950_v53 = vadd.f32 %v949_v52, %v3543_v50 }
 0x2bb   : > { %v980_v54 = vsel %vm926_vm9, %v950_v53, -inf }
 0x2bc   : > { %981 = vmax.xlane.f32.xlu0 %v980_v54 }
 0x2c6   : > { %v977_v55 = vpop.f32.mrf.mxu2 }
 0x2c7   : > { %v978_v57 = vadd.f32 %v977_v55, %v3543_v50 }
 0x2c9   : > { %v983_v58 = vsel %vm926_vm9, %v978_v57, -inf }
 0x2ca   : > { %984 = vmax.xlane.f32.xlu1 %v983_v58 }
 0x2d0   : > { %1028 = vrot.lane.b32.xlu0 %v3528_v42, %s3174_s14 }
 0x2e3   : > { %1002 = vrot.lane.b32.xlu1 %v3525_v39, %s3174_s14 }
 0x2eb   : > { %1056 = vrot.lane.b32.xlu1 %v3525_v39, %s3175_s3 }
 0x32f   : > { %v982_v59 = vpop.xlane.xlu0 %981 }
 0x330   : > { %v986_v60 = vsub.f32 %v950_v53, %v982_v59 }
 0x332   : > { %v988_v61 = vmul.f32 1.442695, %v986_v60 }
 0x334   : > { %3007 = vpow2.f32 %v988_v61 }
 0x33a   : > { %v3008_v62 = vpop.eup %3007 }
 0x33b   : > { %v992_v63 = vsel %vm926_vm9, %v3008_v62, 0.0 }
 0x33c   : > { %993 = vadd.xlane.f32.xlu2 %v992_v63 }
 0x33d   : > { %v985_v51 = vpop.xlane.xlu1 %984 }
 0x33e   : > { %v987_v0 = vsub.f32 %v978_v57, %v985_v51 }
 0x340   : > { %v990_v41 = vmul.f32 1.442695, %v987_v0 }
 0x342   : > { %3009 = vpow2.f32 %v990_v41  ;;  %v1029_v46 = vpop.permute.xlu0 %1028 }
 0x348   : > { %v3010_v1 = vpop.eup %3009 }
 0x349   : > { %v995_v43 = vsel %vm926_vm9, %v3010_v1, 0.0 }
 0x34a   : > { %996 = vadd.xlane.f32.xlu0 %v995_v43 }
 0x354   : > { %1084 = vrot.lane.b32.xlu2 %v3528_v42, %s3175_s3 }
 0x355   : > { %v1003_v45 = vpop.permute.xlu1 %1002 }
 0x356   : > { %1023 = vmatpush.msrb.mxu1 %v1003_v45 }
 0x358   : > { %1049 = vmatpush.msra.mxu1 %v1029_v46 }
 0x35c   : > { %1082 = vrot.lane.b32.xlu2 %v3539_v44, %s3176_s25 }
 0x35d   : > { %v1057_v54 = vpop.permute.xlu1 %1056 }
 0x35e   : > { %1054 = vrot.lane.b32.xlu0 %v3533_v56, %s3176_s25 }
 0x364   : > { %1132 = vrot.lane.b32.xlu2 %v3525_v39, %s3177_s28 }
 0x36c   : > { %1186 = vrot.lane.b32.xlu2 %v3525_v39, %s3178_s27 }
 0x374   : > { %1314 = vrot.lane.b32.xlu2 %v3533_v56, %s3179_s29 }
 0x37c   : > { %1214 = vrot.lane.b32.xlu2 %v3528_v42, %s3178_s27 }
 0x384   : > { %1212 = vrot.lane.b32.xlu2 %v3539_v44, %s3180_s0 }
 0x3af   : > { %v994_v47 = vpop.xlane.xlu2 %993 }
 0x3b0   : > { %3011 = vrcp.f32 %v994_v47 }
 0x3b6   : > { %v3012_v49 = vpop.eup %3011 }
 0x3b7   : > { %v1085_v52 = vpop.permute.xlu2 %1084  ;;  %v1000_v53 = vmul.f32 %v3012_v49, %v3008_v62 }
 0x3b8   : > { %2885 = vmatpush.xpose.msk.msrb.mxu2 %vm926_vm9, %v1085_v52 }
 0x3b9   : > { %2881 = vmatmul.msk.f32.vlgmr.msrb.gmra.mxu1 %vm926_vm9, %v1000_v53 }
 0x3ba   : > { %2883 = vmatpush.xpose.msk.msrb.mxu1 %vm926_vm9, %v1057_v54 }
 0x3bd   : > { %v997_v55 = vpop.xlane.xlu0 %996 }
 0x3be   : > { %3013 = vrcp.f32 %v997_v55 }
 0x3bf   : > { %v1083_v57 = vpop.permute.xlu2 %1082 }
 0x3c0   : > { %2886 = vmatmul.msk.f32.vlgmr.msrb.gmra.mxu2 %vm926_vm9, %v1083_v57 }
 0x3c4   : > { %v3014_v58 = vpop.eup %3013 }
 0x3c5   : > { %v1001_v59 = vmul.f32 %v3014_v58, %v3010_v1 }
 0x3c7   : > { %v1133_v60 = vpop.permute.xlu2 %1132  ;;  %2882 = vmatmul.msk.f32.vlgmr.msra.gmra.mxu1 %vm926_vm9, %v1001_v59 }
 0x3c8   : > { %1153 = vmatpush.msra.mxu2 %v1133_v60 }
 0x3cf   : > { %v1187_v61 = vpop.permute.xlu2 %1186 }
 0x3d0   : > { %2889 = vmatpush.xpose.msk.msrb.mxu2 %vm926_vm9, %v1187_v61  ;;  %v1055_v62 = vpop.permute.xlu0 %1054 }
 0x3d1   : > { %2884 = vmatmul.msk.f32.vlgmr.msrb.gmra.mxu1 %vm926_vm9, %v1055_v62 }
 0x3d7   : > { %v1315_v63 = vpop.permute.xlu2 %1314 }
 0x3df   : > { %v1215_v51 = vpop.permute.xlu2 %1214 }
 0x3e0   : > { %2891 = vmatpush.xpose.msk.msrb.mxu0 %vm926_vm9, %v1215_v51 }
 0x3e7   : > { %v1213_v0 = vpop.permute.xlu2 %1212 }
 0x3e8   : > { %2892 = vmatmul.msk.f32.vlgmr.msrb.gmra.mxu0 %vm926_vm9, %v1213_v0 }
 0x436   : > { %v3574_v41 = vpop.f32.mrf.mxu1 }
 0x443   : > { %v1107_v55 = vpop.f32.mrf.mxu2 }
 0x444   : > { %v3576_v1 = vpop.f32.mrf.mxu1  ;;  %v1108_v57 = vadd.f32 %v1107_v55, %v3543_v50 }
 0x44e   : > { %v1079_v43 = vpop.f32.mrf.mxu1 }
 0x44f   : > { %v1080_v45 = vadd.f32 %v1079_v43, %v3543_v50 }
 0x451   : > { %v1110_v46 = vsel %vm926_vm9, %v1080_v45, -inf }
 0x452   : > { %1111 = vmax.xlane.f32.xlu1 %v1110_v46 }
 0x465   : > { %v1237_v43 = vpop.f32.mrf.mxu0 }
 0x46b   : > { %1184 = vrot.lane.b32.xlu1 %v3533_v56, %s3180_s0  ;;  %v1113_v56 = vsel %vm926_vm9, %v1108_v57, -inf }
 0x473   : > { %1342 = vrot.lane.b32.xlu1 %v3539_v44, %s3179_s29 }
 0x4c5   : > { %v1112_v47 = vpop.xlane.xlu1 %1111 }
 0x4c6   : > { %v1116_v49 = vsub.f32 %v1080_v45, %v1112_v47 }
 0x4c8   : > { %v1118_v52 = vmul.f32 1.442695, %v1116_v49 }
 0x4ca   : > { %3015 = vpow2.f32 %v1118_v52 }
 0x4d0   : > { %v3016_v53 = vpop.eup %3015 }
 0x4d1   : > { %v1122_v54 = vsel %vm926_vm9, %v3016_v53, 0.0 }
 0x4d2   : > { %1123 = vadd.xlane.f32.xlu0 %v1122_v54 }
 0x4dd   : > { %v1185_v60 = vpop.permute.xlu1 %1184 }
 0x4e5   : > { %v1343_v51 = vpop.permute.xlu1 %1342 }
 0x4e6   : > { %1316 = vrot.lane.b32.xlu0 %v3525_v39, %s3181_s1 }
 0x4ee   : > { %1344 = vrot.lane.b32.xlu0 %v3528_v42, %s3181_s1 }
 0x518   : > { %1114 = vmax.xlane.f32.xlu0 %v1113_v56 }
 0x545   : > { %v1124_v44 = vpop.xlane.xlu0 %1123 }
 0x546   : > { %3017 = vrcp.f32 %v1124_v44 }
 0x54c   : > { %v3018_v58 = vpop.eup %3017 }
 0x54d   : > { %v1130_v59 = vmul.f32 %v3018_v58, %v3016_v53  ;;  %v1238_v53 = vadd.f32 %v1237_v43, %v3543_v50 }
 0x54f   : > { %2887 = vmatmul.msk.f32.vlgmr.msra.gmra.mxu2 %vm926_vm9, %v1130_v59 }
 0x557   : > { %2890 = vmatmul.msk.f32.vlgmr.msrb.gmra.mxu2 %vm926_vm9, %v1185_v60 }
 0x558   : > { %v1317_v61 = vpop.permute.xlu0 %1316 }
 0x559   : > { %2895 = vmatpush.xpose.msk.msra.mxu2 %vm926_vm9, %v1317_v61 }
 0x55d   : > { %1497 = vmatpush.msrb.mxu2 %v3400_v10 }
 0x55f   : > { %1498 = vmatpush.msrb.mxu2 %v3398_v9 }
 0x560   : > { %2896 = vmatmul.msk.f32.vlgmr.msra.gmra.mxu2 %vm926_vm9, %v1315_v63  ;;  %v1345_v62 = vpop.permute.xlu0 %1344 }
 0x561   : > { %1499 = vmatpush.msrb.mxu2 %v3396_v8  ;;  %2897 = vmatpush.xpose.msk.msra.mxu0 %vm926_vm9, %v1345_v62 }
 0x563   : > { %1500 = vmatpush.msrb.mxu2 %v3394_v7 }
 0x564   : > { %2898 = vmatmul.msk.f32.vlgmr.msra.gmra.mxu0 %vm926_vm9, %v1343_v51 }
 0x565   : > { %1585 = vmatpush.msrb.mxu0 %v3410_v15 }
 0x567   : > { %1586 = vmatpush.msrb.mxu0 %v3408_v14 }
 0x569   : > { %1587 = vmatpush.msrb.mxu0 %v3406_v13 }
 0x56b   : > { %1588 = vmatpush.msrb.mxu0 %v3404_v12 }
 0x58b   : > { %v1115_v45 = vpop.xlane.xlu0 %1114 }
 0x58c   : > { %v1117_v47 = vsub.f32 %v1108_v57, %v1115_v45  ;;  %v1243_v57 = vsel %vm926_vm9, %v1238_v53, -inf }
 0x58e   : > { %v1120_v52 = vmul.f32 1.442695, %v1117_v47 }
 0x590   : > { %3019 = vpow2.f32 %v1120_v52 }
 0x596   : > { %v3020_v60 = vpop.eup %3019 }
 0x597   : > { %v1125_v61 = vsel %vm926_vm9, %v3020_v60, 0.0 }
 0x5d2   : > { %v1155_v0 = vpop.f32.mrf.mxu2 }
 0x5da   : > { %v1209_v63 = vpop.f32.mrf.mxu2 }
 0x5db   : > { %v1210_v46 = vadd.f32 %v1209_v63, %v3543_v50 }
 0x5dd   : > { %v1240_v49 = vsel %vm926_vm9, %v1210_v46, -inf }
 0x5de   : > { %1241 = vmax.xlane.f32.xlu2 %v1240_v49 }
 0x5e1   : > { %v1367_v54 = vpop.f32.mrf.mxu0 }
 0x5e2   : > { %v1368_v55 = vadd.f32 %v1367_v54, %v3543_v50 }
 0x5e3   : > { %v1339_v56 = vpop.f32.mrf.mxu2 }
 0x5e4   : > { %v1340_v44 = vadd.f32 %v1339_v56, %v3543_v50  ;;  %v1373_v58 = vsel %vm926_vm9, %v1368_v55, -inf }
 0x5e5   : > { %1374 = vmax.xlane.f32.xlu0 %v1373_v58 }
 0x5e6   : > { %v1370_v59 = vsel %vm926_vm9, %v1340_v44, -inf  ;;  %1244 = vmax.xlane.f32.xlu2 %v1243_v57 }
 0x5e7   : > { %1371 = vmax.xlane.f32.xlu1 %v1370_v59 }
 0x5ee   : > { %1126 = vadd.xlane.f32.xlu2 %v1125_v61 }
 0x5f9   : > { %1158 = vrot.lane.b32.xlu0 %v3528_v42, %s3177_s28 }
 0x601   : > { %1288 = vrot.lane.b32.xlu0 %v3528_v42, %s3182_s20 }
 0x651   : > { %v1242_v50 = vpop.xlane.xlu2 %1241 }
 0x652   : > { %v1246_v62 = vsub.f32 %v1210_v46, %v1242_v50 }
 0x654   : > { %v1248_v51 = vmul.f32 1.442695, %v1246_v62 }
 0x656   : > { %3021 = vpow2.f32 %v1248_v51 }
 0x658   : > { %v1375_v59 = vpop.xlane.xlu0 %1374 }
 0x659   : > { %v1245_v43 = vpop.xlane.xlu2 %1244 }
 0x65a   : > { %v1372_v45 = vpop.xlane.xlu1 %1371  ;;  %v1247_v63 = vsub.f32 %v1238_v53, %v1245_v43  ;;  %v1377_v43 = vsub.f32 %v1368_v55, %v1375_v59 }
 0x65b   : > { %v1376_v47 = vsub.f32 %v1340_v44, %v1372_v45 }
 0x65c   : > { %v3022_v49 = vpop.eup %3021  ;;  %v1250_v52 = vmul.f32 1.442695, %v1247_v63  ;;  %v1380_v45 = vmul.f32 1.442695, %v1377_v43 }
 0x65d   : > { %v1378_v54 = vmul.f32 1.442695, %v1376_v47  ;;  %v1252_v56 = vsel %vm926_vm9, %v3022_v49, 0.0 }
 0x65e   : > { %3023 = vpow2.f32 %v1250_v52  ;;  %1253 = vadd.xlane.f32.xlu1 %v1252_v56 }
 0x65f   : > { %3025 = vpow2.f32 %v1378_v54 }
 0x661   : > { %v1127_v58 = vpop.xlane.xlu2 %1126 }
 0x662   : > { %3027 = vrcp.f32 %v1127_v58 }
 0x663   : > { %3029 = vpow2.f32 %v1380_v45 }
 0x664   : > { %v3024_v57 = vpop.eup %3023 }
 0x665   : > { %v3026_v61 = vpop.eup %3025  ;;  %v1255_v46 = vsel %vm926_vm9, %v3024_v57, 0.0 }
 0x666   : > { %1256 = vadd.xlane.f32.xlu2 %v1255_v46  ;;  %v1382_v50 = vsel %vm926_vm9, %v3026_v61, 0.0 }
 0x667   : > { %1383 = vadd.xlane.f32.xlu0 %v1382_v50 }
 0x668   : > { %v3028_v53 = vpop.eup %3027 }
 0x669   : > { %v1131_v44 = vmul.f32 %v3028_v53, %v3020_v60  ;;  %v3030_v60 = vpop.eup %3029 }
 0x66a   : > { %v1385_v63 = vsel %vm926_vm9, %v3030_v60, 0.0 }
 0x66b   : > { %v1159_v62 = vpop.permute.xlu0 %1158 }
 0x66c   : > { %1179 = vmatpush.msra.mxu1 %v1159_v62 }
 0x66d   : > { %2888 = vmatmul.msk.f32.vlgmr.msra.gmra.mxu1 %vm926_vm9, %v1131_v44 }
 0x673   : > { %v1289_v51 = vpop.permute.xlu0 %1288 }
 0x674   : > { %1309 = vmatpush.msrb.mxu1 %v1289_v51 }
 0x677   : > { %1262 = vrot.lane.b32.xlu1 %v3525_v39, %s3182_s20 }
 0x67b   : > { %1418 = vrot.lane.b32.xlu0 %v3528_v42, %s3183_s2 }
 0x67e   : > { %1392 = vrot.lane.b32.xlu2 %v3525_v39, %s3183_s2 }
 0x686   : > { %1446 = vrot.lane.b32.xlu2 %v1155_v0, %s3184_s6 }
 0x6a1   : > { %1386 = vadd.xlane.f32.xlu1 %v1385_v63 }
 0x6d1   : > { %v1254_v52 = vpop.xlane.xlu1 %1253 }
 0x6d9   : > { %v1257_v47 = vpop.xlane.xlu2 %1256 }
 0x6da   : > { %3031 = vrcp.f32 %v1257_v47  ;;  %v1384_v42 = vpop.xlane.xlu0 %1383 }
 0x6db   : > { %3033 = vrcp.f32 %v1254_v52 }
 0x6dc   : > { %3035 = vrcp.f32 %v1384_v42 }
 0x6e0   : > { %v3032_v54 = vpop.eup %3031 }
 0x6e1   : > { %v1261_v56 = vmul.f32 %v3032_v54, %v3024_v57  ;;  %v3034_v39 = vpop.eup %3033  ;;  %v1393_v55 = vpop.permute.xlu2 %1392 }
 0x6e2   : > { %v1260_v0 = vmul.f32 %v3034_v39, %v3022_v49  ;;  %v3036_v46 = vpop.eup %3035 }
 0x6e3   : > { %2894 = vmatmul.msk.f32.vlgmr.msrb.gmra.mxu1 %vm926_vm9, %v1261_v56  ;;  %v1390_v57 = vmul.f32 %v3036_v46, %v3026_v61 }
 0x6e9   : > { %v1263_v58 = vpop.permute.xlu1 %1262  ;;  %v1447_v45 = vpop.permute.xlu2 %1446 }
 0x6ea   : > { %1283 = vmatpush.msra.mxu3 %v1263_v58  ;;  %v1181_v44 = vpop.f32.mrf.mxu1 }
 0x6eb   : > { %2893 = vmatmul.msk.f32.vlgmr.msra.gmra.mxu3 %vm926_vm9, %v1260_v0 }
 0x6ec   : > { %1413 = vmatpush.msrb.mxu3 %v1393_v55 }
 0x6ed   : > { %v1419_v59 = vpop.permute.xlu0 %1418 }
 0x6ee   : > { %1611 = vmatpush.msra.mxu3 %v3460_v32  ;;  %1439 = vmatpush.msra.mxu1 %v1419_v59  ;;  %v1477_v59 = vperm.slane %v3402_v11, 0 }
 0x6f0   : > { %1612 = vmatpush.msra.mxu3 %v3457_v31 }
 0x6f2   : > { %1613 = vmatpush.msra.mxu3 %v3454_v30 }
 0x6f3   : > { %2899 = vmatmul.msk.f32.vlgmr.msrb.gmra.mxu3 %vm926_vm9, %v1390_v57 }
 0x6f4   : > { %1614 = vmatpush.msra.mxu3 %v3451_v29 }
 0x6f6   : > { %1615 = vmatpush.msra.mxu3 %v3448_v28 }
 0x6f8   : > { %1616 = vmatpush.msra.mxu3 %v3445_v27 }
 0x6fa   : > { %1617 = vmatpush.msra.mxu3 %v3442_v26 }
 0x6fc   : > { %1618 = vmatpush.msra.mxu3 %v3439_v25 }
 0x6fe   : > { %1619 = vmatpush.msra.mxu3 %v3436_v24 }
 0x700   : > { %1620 = vmatpush.msra.mxu3 %v3433_v23 }
 0x702   : > { %1621 = vmatpush.msra.mxu3 %v3430_v22 }
 0x704   : > { %1622 = vmatpush.msra.mxu3 %v3427_v21 }
 0x706   : > { %1623 = vmatpush.msra.mxu3 %v3424_v20 }
 0x708   : > { %1624 = vmatpush.msra.mxu3 %v3421_v19 }
 0x70a   : > { %1625 = vmatpush.msra.mxu3 %v3418_v18 }
 0x70c   : > { %1626 = vmatpush.msra.mxu3 %v3415_v17 }
 0x714   : > { %v1387_v49 = vpop.xlane.xlu1 %1386 }
 0x715   : > { %3037 = vrcp.f32 %v1387_v49 }
 0x71b   : > { %v3038_v61 = vpop.eup %3037 }
 0x71c   : > { %v1391_v50 = vmul.f32 %v3038_v61, %v3030_v60  ;;  %v1468_v60 = vsel %vm926_vm9, %v3574_v41, %v1447_v45 }
 0x71e   : > { %2900 = vmatmul.msk.f32.vlgmr.msra.gmra.mxu1 %vm926_vm9, %v1391_v50 }
 0x760   : > { %v1311_v51 = vpop.f32.mrf.mxu1 }
 0x76e   : > { %v1285_v53 = vpop.f32.mrf.mxu3 }
 0x76f   : > { %1454 = vrot.lane.b32.xlu0 %v1285_v53, %s3185_s18 }
 0x776   : > { %v1415_v62 = vpop.f32.mrf.mxu3 }
 0x777   : > { %1448 = vrot.lane.b32.xlu0 %v1181_v44, %s3184_s6  ;;  %1462 = vrot.lane.b32.xlu2 %v1415_v62, %s3186_s19 }
 0x77f   : > { %1456 = vrot.lane.b32.xlu2 %v1311_v51, %s3185_s18 }
 0x79b   : > { %v1441_v43 = vpop.f32.mrf.mxu1 }
 0x79c   : > { %1464 = vrot.lane.b32.xlu0 %v1441_v43, %s3186_s19 }
 0x7d1   : > { %v1463_v47 = vpop.permute.xlu2 %1462 }
 0x7d9   : > { %v1457_v39 = vpop.permute.xlu2 %1456 }
 0x7e1   : > { %v1455_v63 = vpop.permute.xlu0 %1454 }
 0x7e2   : > { %v1471_v52 = vsel %vm1470_vm11, %v1468_v60, %v1455_v63 }
 0x7e3   : > { %v1474_v54 = vsel %vm1473_vm12, %v1471_v52, %v1463_v47 }
 0x7e4   : > { %2901 = vmatmul.msk.f32.vlgmr.msrb.gmra.mxu2 %vm821_vm1, %v1474_v54 }
 0x7e9   : > { %v1449_v56 = vpop.permute.xlu0 %1448 }
 0x7ea   : > { %v1469_v42 = vsel %vm926_vm9, %v3576_v1, %v1449_v56 }
 0x7eb   : > { %v1472_v0 = vsel %vm1470_vm11, %v1469_v42, %v1457_v39 }
 0x80e   : > { %v1465_v58 = vpop.permute.xlu0 %1464 }
 0x80f   : > { %v1475_v55 = vsel %vm1473_vm12, %v1472_v0, %v1465_v58 }
 0x810   : > { %2902 = vmatmul.msk.f32.gmra.mxu2 %vm821_vm1, %v1475_v55 }
 0x867   : > { %v1502_v46 = vpop.f32.mrf.mxu2 }
 0x868   : > { %v1503_v41 = vadd.f32 %v1502_v46, %v1477_v59  ;;  %v1555_v46 = vperm.slane %v3488_v36, 0 }
 0x86a   : > { %v3655_v57 = vadd.f32 %v1503_v41, %v3498_v38 }
 0x86c   : > { %v1510_v49 = vsel %vm821_vm1, %v3655_v57, 0.0 }
 0x86d   : > { %1511 = vadd.xlane.f32.xlu2 %v1510_v49 }
 0x893   : > { %v1505_v61 = vpop.f32.mrf.mxu2 }
 0x894   : > { %v1506_v50 = vadd.f32 %v1505_v61, %v1477_v59  ;;  %v1560_v61 = vperm.slane %v3495_v37, 0 }
 0x896   : > { %v3660_v1 = vadd.f32 %v1506_v50, %v3504_v40 }
 0x898   : > { %v1513_v53 = vsel %vm821_vm1, %v3660_v1, 0.0 }
 0x899   : > { %1514 = vadd.xlane.f32.xlu0 %v1513_v53 }
 0x8e0   : > { %v1512_v44 = vpop.xlane.xlu2 %1511 }
 0x8e1   : > { %v1516_v62 = vmul.f32 %v1512_v44, %v3510_v48 }
 0x8e3   : > { %v1518_v51 = vsub.f32 %v3655_v57, %v1516_v62 }
 0x8e5   : > { %v1520_v38 = vmul.f32 %v1518_v51, %v1518_v51 }
 0x8e7   : > { %v1522_v43 = vsel %vm821_vm1, %v1520_v38, 0.0 }
 0x8e8   : > { %1523 = vadd.xlane.f32.xlu1 %v1522_v43 }
 0x90c   : > { %v1515_v45 = vpop.xlane.xlu0 %1514 }
 0x90d   : > { %v1517_v60 = vmul.f32 %v1515_v45, %v3510_v48 }
 0x90f   : > { %v1519_v63 = vsub.f32 %v3660_v1, %v1517_v60 }
 0x911   : > { %v1521_v40 = vmul.f32 %v1519_v63, %v1519_v63 }
 0x913   : > { %v1525_v47 = vsel %vm821_vm1, %v1521_v40, 0.0 }
 0x914   : > { %1526 = vadd.xlane.f32.xlu1 %v1525_v47 }
 0x95b   : > { %v1524_v52 = vpop.xlane.xlu1 %1523 }
 0x95c   : > { %v1528_v54 = vmul.f32 %v1524_v52, %v3510_v48 }
 0x95e   : > { %v1530_v56 = vadd.f32 1e-05, %v1528_v54 }
 0x960   : > { %3039 = vrsqrt.f32 %v1530_v56  ;;  %vm1538_vm14 = vweird.f32 %v1530_v56 }
 0x966   : > { %v3040_v42 = vpop.eup %3039 }
 0x967   : > { %v1533_v39 = vmul.f32 %v3040_v42, %v1530_v56  ;;  %vm1539_vm13 = vweird.f32 %v3040_v42 }
 0x968   : > { %vm1540_vm15 = vmor %vm1538_vm14, %vm1539_vm13 }
 0x969   : > { %v1534_v58 = vmul.f32 %v3040_v42, %v1533_v39  ;;  %v1565_v39 = vperm.slane %v3412_v16, 0 }
 0x96b   : > { %v1535_v0 = vmul.f32 0.5, %v1534_v58 }
 0x96d   : > { %v1536_v55 = vsub.f32 1.5, %v1535_v0 }
 0x96f   : > { %v1537_v59 = vmul.f32 %v3040_v42, %v1536_v55 }
 0x971   : > { %v1541_v41 = vsel %vm1540_vm15, %v3040_v42, %v1537_v59 }
 0x972   : > { %v1552_v49 = vmul.f32 %v1541_v41, %v1518_v51 }
 0x974   : > { %v1557_v50 = vmul.f32 %v1555_v46, %v1552_v49 }
 0x976   : > { %v1562_v53 = vadd.f32 %v1560_v61, %v1557_v50 }
 0x978   : > { %2903 = vmatmul.msk.f32.vlgmr.msrb.gmra.mxu0 %vm821_vm1, %v1562_v53 }
 0x987   : > { %v1527_v44 = vpop.xlane.xlu1 %1526 }
 0x988   : > { %v1529_v62 = vmul.f32 %v1527_v44, %v3510_v48 }
 0x98a   : > { %v1531_v38 = vadd.f32 1e-05, %v1529_v62 }
 0x98c   : > { %3041 = vrsqrt.f32 %v1531_v38  ;;  %vm1548_vm2 = vweird.f32 %v1531_v38 }
 0x992   : > { %v3042_v43 = vpop.eup %3041 }
 0x993   : > { %v1543_v45 = vmul.f32 %v3042_v43, %v1531_v38  ;;  %vm1549_vm0 = vweird.f32 %v3042_v43 }
 0x994   : > { %vm1550_vm3 = vmor %vm1548_vm2, %vm1549_vm0 }
 0x995   : > { %v1544_v60 = vmul.f32 %v3042_v43, %v1543_v45  ;;  %v1609_v45 = vperm.slane %v3467_v33, 0 }
 0x997   : > { %v1545_v40 = vmul.f32 0.5, %v1544_v60 }
 0x999   : > { %v1546_v47 = vsub.f32 1.5, %v1545_v40 }
 0x99b   : > { %v1547_v52 = vmul.f32 %v3042_v43, %v1546_v47 }
 0x99d   : > { %v1551_v51 = vsel %vm1550_vm3, %v3042_v43, %v1547_v52 }
 0x99e   : > { %v1553_v54 = vmul.f32 %v1551_v51, %v1519_v63 }
 0x9a0   : > { %v1558_v56 = vmul.f32 %v1555_v46, %v1553_v54 }
 0x9a2   : > { %v1563_v42 = vadd.f32 %v1560_v61, %v1558_v56 }
 0x9a4   : > { %2904 = vmatmul.msk.f32.gmra.mxu0 %vm821_vm1, %v1563_v42 }
 0x9f5   : > { %v1590_v48 = vpop.f32.mrf.mxu0 }
 0x9f6   : > { %v1591_v58 = vadd.f32 %v1590_v48, %v1565_v39 }
 0x9f8   : > { %v1596_v0 = vmul.f32 -1.702, %v1591_v58 }
 0x9fa   : > { %v1598_v55 = vmul.f32 1.442695, %v1596_v0 }
 0x9fc   : > { %3043 = vpow2.f32 %v1598_v55 }
 0xa02   : > { %v3044_v59 = vpop.eup %3043 }
 0xa03   : > { %v1602_v41 = vadd.f32 1.0, %v3044_v59 }
 0xa05   : > { %3045 = vrcp.f32 %v1602_v41 }
 0xa0b   : > { %v3046_v49 = vpop.eup %3045 }
 0xa0c   : > { %v1606_v50 = vmul.f32 %v3046_v49, %v1591_v58 }
 0xa0e   : > { %1627 = vmatmul.f32.vlgmr.msra.gmra.mxu3 %v1606_v50 }
 0xa21   : > { %v1593_v53 = vpop.f32.mrf.mxu0 }
 0xa22   : > { %v1594_v44 = vadd.f32 %v1593_v53, %v1565_v39 }
 0xa24   : > { %v1597_v63 = vmul.f32 -1.702, %v1594_v44 }
 0xa26   : > { %v1600_v46 = vmul.f32 1.442695, %v1597_v63 }
 0xa28   : > { %3047 = vpow2.f32 %v1600_v46 }
 0xa2e   : > { %v3048_v61 = vpop.eup %3047 }
 0xa2f   : > { %v1603_v62 = vadd.f32 1.0, %v3048_v61 }
 0xa31   : > { %3049 = vrcp.f32 %v1603_v62 }
 0xa37   : > { %v3050_v38 = vpop.eup %3049 }
 0xa38   : > { %v1607_v43 = vmul.f32 %v3050_v38, %v1594_v44 }
 0xa3a   : > { %1630 = vmatmul.f32.gmra.mxu3 %v1607_v43 }
 0xa91   : > { %v1628_v60 = vpop.f32.mrf.mxu3 }
 0xa92   : > { %v1629_v40 = vadd.f32 %v1628_v60, %v1609_v45 }
 0xa94   : > { %v1634_v47 = vadd.f32 %v1629_v40, %v3655_v57 }
 0xa96   : > { %1636 = vst.msk [vmem:[#allocation2] sm:$0xff] %vm821_vm1, %v1634_v47 }
 0xabd   : > { %v1631_v52 = vpop.f32.mrf.mxu3 }
 0xabe   : > { %v1632_v51 = vadd.f32 %v1631_v52, %v1609_v45 }
 0xac0   : > { %v1635_v54 = vadd.f32 %v1632_v51, %v3660_v1 }
 0xac2   : > { %1637 = vst.msk [vmem:[#allocation2 + $0x8] sm:$0xff] %vm821_vm1, %v1635_v54 }
 0xac3 PF: > { %s3937_s4 = sld [smem:[#allocation10_spill]] }
 0xac9   : > { %p2905_p6 = scmp.ne.s32.totalorder %s3937_s4, 1 }
 0xaca   : > { %s3938_s26 = sld [smem:[#allocation18_spill]] (!%p2905_p6) }
 0xacb   : > { %1641 = sbr.rel (%p2905_p6) target bundleno = 3046 (0xbe6), region = 108  ;;  %s3939_s17 = sld [smem:[#allocation19_spill]] (!%p2905_p6) }
 0xad0   : > { %v1642_v56 = vld [vmem:[#allocation2] sm:$0xff]  ;;  %vm1646_vm4 = vcmask 261120   ;;  %v1643_v39 = vld [vmem:[#allocation2 + $0x8] sm:$0xff]  ;;  %v3187_v48 = vmov 32.0  }
 0xad1   : > { %v1647_v42 = vsel %vm1646_vm4, %v1642_v56, 0.0  ;;  %v1650_v57 = vsel %vm1646_vm4, %v1643_v39, 0.0  ;;  %3053 = vrcp.f32 %v3187_v48 }
 0xad2   : > { %1648 = vadd.xlane.f32.xlu0 %v1647_v42 }
 0xad7   : > { %v3054_v58 = vpop.eup %3053 }
 0xad8   : > { %v1654_v0 = vmul.f32 32.0, %v3054_v58  ;;  %vm1658_vm1 = vweird.f32 %v3054_v58 }
 0xada   : > { %1651 = vadd.xlane.f32.xlu0 %v1650_v57  ;;  %v1655_v1 = vsub.f32 1.0, %v1654_v0 }
 0xadc   : > { %v1656_v55 = vmul.f32 %v3054_v58, %v1655_v1  ;;  %v3051_v1 = vld [vmem:[%s3938_s26] ss:$0 sm:$0xff] }
 0xade   : > { %v1657_v59 = vadd.f32 %v3054_v58, %v1656_v55 }
 0xae0   : > { %v1659_v41 = vsel %vm1658_vm1, %v3054_v58, %v1657_v59 }
 0xb45   : > { %v1649_v49 = vpop.xlane.xlu0 %1648 }
 0xb46   : > { %v1660_v50 = vmul.f32 %v1659_v41, %v1649_v49 }
 0xb48   : > { %v1662_v53 = vsub.f32 %v1642_v56, %v1660_v50 }
 0xb4a   : > { %v1664_v44 = vmul.f32 %v1662_v53, %v1662_v53 }
 0xb4c   : > { %v1666_v63 = vsel %vm1646_vm4, %v1664_v44, 0.0 }
 0xb4d   : > { %1667 = vadd.xlane.f32.xlu1 %v1666_v63  ;;  %v1652_v46 = vpop.xlane.xlu0 %1651 }
 0xb4e   : > { %v1661_v61 = vmul.f32 %v1659_v41, %v1652_v46 }
 0xb50   : > { %v1663_v62 = vsub.f32 %v1643_v39, %v1661_v61 }
 0xb52   : > { %v1665_v38 = vmul.f32 %v1663_v62, %v1663_v62 }
 0xb54   : > { %v1669_v43 = vsel %vm1646_vm4, %v1665_v38, 0.0 }
 0xb55   : > { %1670 = vadd.xlane.f32.xlu1 %v1669_v43 }
 0xbc0   : > { %v1668_v45 = vpop.xlane.xlu1 %1667 }
 0xbc1   : > { %v1672_v60 = vmul.f32 %v1668_v45, %v1659_v41 }
 0xbc3   : > { %v1674_v40 = vadd.f32 1e-05, %v1672_v60 }
 0xbc5   : > { %3055 = vrsqrt.f32 %v1674_v40  ;;  %vm1682_vm6 = vweird.f32 %v1674_v40 }
 0xbc8   : > { %v1671_v47 = vpop.xlane.xlu1 %1670 }
 0xbc9   : > { %v1673_v52 = vmul.f32 %v1671_v47, %v1659_v41  ;;  %v3052_v41 = vld [vmem:[%s3939_s17] ss:$0 sm:$0xff] }
 0xbcb   : > { %v3056_v51 = vpop.eup %3055  ;;  %v1675_v54 = vadd.f32 1e-05, %v1673_v52 }
 0xbcc   : > { %v1677_v56 = vmul.f32 %v3056_v51, %v1674_v40  ;;  %vm1683_vm5 = vweird.f32 %v3056_v51 }
 0xbcd   : > { %3057 = vrsqrt.f32 %v1675_v54  ;;  %vm1684_vm7 = vmor %vm1682_vm6, %vm1683_vm5  ;;  %vm1692_vm9 = vweird.f32 %v1675_v54 }
 0xbce   : > { %v1678_v42 = vmul.f32 %v3056_v51, %v1677_v56 }
 0xbd0   : > { %v1679_v57 = vmul.f32 0.5, %v1678_v42 }
 0xbd2   : > { %v1680_v48 = vsub.f32 1.5, %v1679_v57 }
 0xbd3   : > { %v3058_v58 = vpop.eup %3057 }
 0xbd4   : > { %v1681_v39 = vmul.f32 %v3056_v51, %v1680_v48  ;;  %v1687_v0 = vmul.f32 %v3058_v58, %v1675_v54  ;;  %vm1693_vm8 = vweird.f32 %v3058_v58 }
 0xbd5   : > { %vm1694_vm10 = vmor %vm1692_vm9, %vm1693_vm8 }
 0xbd6   : > { %v1685_v55 = vsel %vm1684_vm7, %v3056_v51, %v1681_v39  ;;  %v1688_v59 = vmul.f32 %v3058_v58, %v1687_v0 }
 0xbd7   : > { %v1696_v49 = vmul.f32 %v1685_v55, %v1662_v53 }
 0xbd8   : > { %v1689_v50 = vmul.f32 0.5, %v1688_v59 }
 0xbd9   : > { %v1701_v44 = vmul.f32 %v3051_v1, %v1696_v49 }
 0xbda   : > { %v1690_v63 = vsub.f32 1.5, %v1689_v50 }
 0xbdb   : > { %v1706_v46 = vadd.f32 %v3052_v41, %v1701_v44 }
 0xbdc   : > { %v1691_v61 = vmul.f32 %v3058_v58, %v1690_v63 }
 0xbdd   : > { %1708 = vst.msk [vmem:[#allocation2] sm:$0xff] %vm1646_vm4, %v1706_v46 }
 0xbde   : > { %v1695_v38 = vsel %vm1694_vm10, %v3058_v58, %v1691_v61 }
 0xbdf   : > { %v1697_v43 = vmul.f32 %v1695_v38, %v1663_v62 }
 0xbe1   : > { %v1702_v45 = vmul.f32 %v3051_v1, %v1697_v43 }
 0xbe3   : > { %v1707_v60 = vadd.f32 %v3052_v41, %v1702_v45 }
 0xbe5   : > { %1709 = vst.msk [vmem:[#allocation2 + $0x8] sm:$0xff] %vm1646_vm4, %v1707_v60 }
 0xbe6 PF: > { %s3940_s15 = sld [smem:[#allocation10_spill]] }
 0xbec   : > { %p2906_p7 = scmp.lt.s32.totalorder %s3940_s15, 2 }
 0xbed   : > { %s3188_s23 = smov (!%p2906_p7), 96   ;;  %s3189_s5 = smov (!%p2906_p7), 64  }
 0xbee   : > { %1713 = sbr.rel (%p2906_p7) target bundleno = 5787 (0x169b), region = 112  ;;  %s3190_s14 = smov (!%p2906_p7), 120  }
 0xbef   : > { %s3191_s3 = smov (!%p2906_p7), 88   ;;  %s3192_s25 = smov (!%p2906_p7), 56  }
 0xbf0   : > { %s3193_s28 = smov (!%p2906_p7), 80   ;;  %s3194_s27 = smov (!%p2906_p7), 112  }
 0xbf1   : > { %s3195_s29 = smov (!%p2906_p7), 104   ;;  %s3196_s0 = smov (!%p2906_p7), 72  }
 0xbf2   : > { %s3197_s1 = smov (!%p2906_p7), 48   ;;  %s3198_s20 = smov (!%p2906_p7), 40  }
 0xbf3   : > { %1738 = vmatpush.msra.mxu0 %v3390_v5  ;;  %v3699_v53 = vld [vmem:[#allocation2] sm:$0xff]  ;;  %vm1719_vm11 = vcmask 261120   ;;  %v3704_v62 = vld [vmem:[#allocation2 + $0x8] sm:$0xff]  ;;  %v1717_v40 = vperm.slane %v3392_v6, 0  ;;  %vm1754_vm12 = vcmask 64512   ;;  %s3199_s2 = smov 8  }
 0xbf4   : > { %s3200_s6 = smov 16   ;;  %s3201_s18 = smov 24   ;;  %vm2298_vm13 = vcmask 130048   ;;  %vm2301_vm14 = vcmask 195584  }
 0xbf5   : > { %1739 = vmatpush.msra.mxu0 %v3388_v4 }
 0xbf7   : > { %1740 = vmatpush.msra.mxu0 %v3386_v3 }
 0xbf9   : > { %1741 = vmatpush.msra.mxu0 %v3384_v2 }
 0xbfa   : > { %2907 = vmatmul.msk.f32.vlgmr.msra.gmra.mxu0 %vm1719_vm11, %v3699_v53 }
 0xc02   : > { %2908 = vmatmul.msk.f32.gmra.mxu0 %vm1719_vm11, %v3704_v62 }
 0xc77   : > { %v1743_v5 = vpop.f32.mrf.mxu0 }
 0xc78   : > { %v3709_v47 = vadd.f32 %v1743_v5, %v1717_v40 }
 0xc7a   : > { %1752 = vrot.lane.b32.xlu0 %v3709_v47, %s3188_s23  ;;  %v1749_v2 = vmul.f32 0.35355338, %v3709_v47 }
 0xc7f   : > { %v1746_v3 = vpop.f32.mrf.mxu0 }
 0xc80   : > { %v3712_v4 = vadd.f32 %v1746_v3, %v1717_v40 }
 0xc82   : > { %1781 = vrot.lane.b32.xlu0 %v3712_v4, %s3188_s23  ;;  %v1750_v51 = vmul.f32 0.35355338, %v3712_v4 }
 0xc8a   : > { %1830 = vrot.lane.b32.xlu0 %v3709_v47, %s3189_s5 }
 0xc92   : > { %1882 = vrot.lane.b32.xlu0 %v1749_v2, %s3190_s14 }
 0xcec   : > { %v1753_v6 = vpop.permute.xlu0 %1752 }
 0xced   : > { %2909 = vmatpush.xpose.msk.msra.mxu1 %vm1754_vm12, %v1753_v6 }
 0xcf0   : > { %2910 = vmatmul.msk.f32.vlgmr.msra.gmra.mxu1 %vm1754_vm12, %v1749_v2 }
 0xcf4   : > { %v1782_v52 = vpop.permute.xlu0 %1781 }
 0xcf5   : > { %2911 = vmatpush.xpose.msk.msra.mxu2 %vm1754_vm12, %v1782_v52 }
 0xcf8   : > { %2912 = vmatmul.msk.f32.vlgmr.msra.gmra.mxu2 %vm1754_vm12, %v1750_v51 }
 0xcfc   : > { %v1831_v54 = vpop.permute.xlu0 %1830 }
 0xcfd   : > { %1851 = vmatpush.msrb.mxu1 %v1831_v54 }
 0xd04   : > { %v1883_v3 = vpop.permute.xlu0 %1882 }
 0xd6d   : > { %v1777_v56 = vpop.f32.mrf.mxu1 }
 0xd6e   : > { %v1808_v42 = vsel %vm1754_vm12, %v1777_v56, -inf }
 0xd6f   : > { %1809 = vmax.xlane.f32.xlu1 %v1808_v42 }
 0xd7b   : > { %v1805_v57 = vpop.f32.mrf.mxu2 }
 0xd7c   : > { %v1811_v48 = vsel %vm1754_vm12, %v1805_v57, -inf }
 0xd7d   : > { %1812 = vmax.xlane.f32.xlu1 %v1811_v48 }
 0xd96   : > { %1856 = vrot.lane.b32.xlu1 %v3712_v4, %s3189_s5 }
 0xde2   : > { %v1810_v58 = vpop.xlane.xlu1 %1809 }
 0xde3   : > { %v1814_v39 = vsub.f32 %v1777_v56, %v1810_v58 }
 0xde5   : > { %v1816_v0 = vmul.f32 1.442695, %v1814_v39 }
 0xde7   : > { %3059 = vpow2.f32 %v1816_v0 }
 0xded   : > { %v3060_v1 = vpop.eup %3059 }
 0xdee   : > { %v1820_v55 = vsel %vm1754_vm12, %v3060_v1, 0.0 }
 0xdef   : > { %1821 = vadd.xlane.f32.xlu2 %v1820_v55 }
 0xdf0   : > { %v1813_v59 = vpop.xlane.xlu1 %1812 }
 0xdf1   : > { %v1815_v41 = vsub.f32 %v1805_v57, %v1813_v59 }
 0xdf3   : > { %v1818_v49 = vmul.f32 1.442695, %v1815_v41 }
 0xdf5   : > { %3061 = vpow2.f32 %v1818_v49 }
 0xdfb   : > { %v3062_v50 = vpop.eup %3061 }
 0xdfc   : > { %v1823_v44 = vsel %vm1754_vm12, %v3062_v50, 0.0 }
 0xdfd   : > { %1824 = vadd.xlane.f32.xlu2 %v1823_v44 }
 0xe08   : > { %v1857_v63 = vpop.permute.xlu1 %1856 }
 0xe09   : > { %1877 = vmatpush.msra.mxu1 %v1857_v63 }
 0xe15   : > { %1884 = vrot.lane.b32.xlu2 %v3709_v47, %s3191_s3 }
 0xe1d   : > { %1912 = vrot.lane.b32.xlu2 %v3712_v4, %s3191_s3 }
 0xe25   : > { %1910 = vrot.lane.b32.xlu2 %v1750_v51, %s3190_s14 }
 0xe2d   : > { %1960 = vrot.lane.b32.xlu2 %v3709_v47, %s3192_s25 }
 0xe35   : > { %2014 = vrot.lane.b32.xlu2 %v3709_v47, %s3193_s28 }
 0xe3d   : > { %2012 = vrot.lane.b32.xlu2 %v1749_v2, %s3194_s27 }
 0xe45   : > { %2142 = vrot.lane.b32.xlu2 %v1749_v2, %s3195_s29 }
 0xe4d   : > { %2040 = vrot.lane.b32.xlu2 %v1750_v51, %s3194_s27 }
 0xe55   : > { %2170 = vrot.lane.b32.xlu2 %v1750_v51, %s3195_s29 }
 0xe62   : > { %v1822_v46 = vpop.xlane.xlu2 %1821 }
 0xe63   : > { %3063 = vrcp.f32 %v1822_v46 }
 0xe69   : > { %v3064_v61 = vpop.eup %3063 }
 0xe6a   : > { %v1828_v38 = vmul.f32 %v3064_v61, %v3060_v1 }
 0xe6c   : > { %2913 = vmatmul.msk.f32.vlgmr.msrb.gmra.mxu1 %vm1754_vm12, %v1828_v38 }
 0xe70   : > { %v1825_v43 = vpop.xlane.xlu2 %1824 }
 0xe71   : > { %3065 = vrcp.f32 %v1825_v43 }
 0xe77   : > { %v3066_v45 = vpop.eup %3065 }
 0xe78   : > { %v1829_v60 = vmul.f32 %v3066_v45, %v3062_v50  ;;  %v1885_v40 = vpop.permute.xlu2 %1884 }
 0xe79   : > { %2915 = vmatpush.xpose.msk.msrb.mxu1 %vm1754_vm12, %v1885_v40 }
 0xe7a   : > { %2914 = vmatmul.msk.f32.vlgmr.msra.gmra.mxu1 %vm1754_vm12, %v1829_v60 }
 0xe80   : > { %v1913_v5 = vpop.permute.xlu2 %1912 }
 0xe81   : > { %2917 = vmatpush.xpose.msk.msrb.mxu2 %vm1754_vm12, %v1913_v5 }
 0xe82   : > { %2916 = vmatmul.msk.f32.vlgmr.msrb.gmra.mxu1 %vm1754_vm12, %v1883_v3 }
 0xe88   : > { %v1911_v2 = vpop.permute.xlu2 %1910 }
 0xe89   : > { %2918 = vmatmul.msk.f32.vlgmr.msrb.gmra.mxu2 %vm1754_vm12, %v1911_v2 }
 0xe90   : > { %v1961_v6 = vpop.permute.xlu2 %1960 }
 0xe91   : > { %1981 = vmatpush.msra.mxu2 %v1961_v6 }
 0xe98   : > { %v2015_v52 = vpop.permute.xlu2 %2014 }
 0xe99   : > { %2921 = vmatpush.xpose.msk.msrb.mxu2 %vm1754_vm12, %v2015_v52 }
 0xea0   : > { %v2013_v41 = vpop.permute.xlu2 %2012 }
 0xea8   : > { %v2143_v63 = vpop.permute.xlu2 %2142 }
 0xeb0   : > { %v2041_v61 = vpop.permute.xlu2 %2040 }
 0xee9   : > { %v3742_v51 = vpop.f32.mrf.mxu1 }
 0xef7   : > { %v3744_v54 = vpop.f32.mrf.mxu1 }
 0xeff   : > { %v1907_v56 = vpop.f32.mrf.mxu1 }
 0xf00   : > { %v1938_v42 = vsel %vm1754_vm12, %v1907_v56, -inf }
 0xf01   : > { %1939 = vmax.xlane.f32.xlu0 %v1938_v42 }
 0xf0c   : > { %v1935_v57 = vpop.f32.mrf.mxu2 }
 0xf0d   : > { %v1941_v48 = vsel %vm1754_vm12, %v1935_v57, -inf }
 0xf0e   : > { %1942 = vmax.xlane.f32.xlu2 %v1941_v48 }
 0xf15   : > { %2144 = vrot.lane.b32.xlu0 %v3709_v47, %s3196_s0 }
 0xf1d   : > { %2172 = vrot.lane.b32.xlu0 %v3712_v4, %s3196_s0 }
 0xf74   : > { %v1940_v58 = vpop.xlane.xlu0 %1939 }
 0xf75   : > { %v1944_v39 = vsub.f32 %v1907_v56, %v1940_v58 }
 0xf77   : > { %v1946_v0 = vmul.f32 1.442695, %v1944_v39 }
 0xf79   : > { %3067 = vpow2.f32 %v1946_v0 }
 0xf7f   : > { %v3068_v1 = vpop.eup %3067 }
 0xf80   : > { %v1950_v55 = vsel %vm1754_vm12, %v3068_v1, 0.0 }
 0xf81   : > { %1951 = vadd.xlane.f32.xlu1 %v1950_v55 }
 0xf87   : > { %v2145_v44 = vpop.permute.xlu0 %2144 }
 0xf8f   : > { %v2173_v38 = vpop.permute.xlu0 %2172 }
 0xf9a   : > { %2042 = vrot.lane.b32.xlu1 %v3712_v4, %s3193_s28 }
 0xff4   : > { %v1952_v59 = vpop.xlane.xlu1 %1951 }
 0xff5   : > { %3069 = vrcp.f32 %v1952_v59 }
 0xffb   : > { %v3070_v49 = vpop.eup %3069 }
 0xffc   : > { %v1958_v50 = vmul.f32 %v3070_v49, %v3068_v1 }
 0xffe   : > { %2919 = vmatmul.msk.f32.vlgmr.msra.gmra.mxu2 %vm1754_vm12, %v1958_v50 }
 0xfff   : > { %2927 = vmatpush.xpose.msk.msra.mxu2 %vm1754_vm12, %v2145_v44 }
0x1006   : > { %2922 = vmatmul.msk.f32.vlgmr.msrb.gmra.mxu2 %vm1754_vm12, %v2013_v41 }
0x1007   : > { %2325 = vmatpush.msrb.mxu2 %v3400_v10 }
0x1009   : > { %2326 = vmatpush.msrb.mxu2 %v3398_v9 }
0x100b   : > { %2327 = vmatpush.msrb.mxu2 %v3396_v8  ;;  %v2171_v8 = vpop.permute.xlu2 %2170 }
0x100c   : > { %v2043_v46 = vpop.permute.xlu1 %2042 }
0x100d   : > { %2923 = vmatpush.xpose.msk.msrb.mxu0 %vm1754_vm12, %v2043_v46  ;;  %2328 = vmatpush.msrb.mxu2 %v3394_v7 }
0x100e   : > { %2928 = vmatmul.msk.f32.vlgmr.msra.gmra.mxu2 %vm1754_vm12, %v2143_v63 }
0x1010   : > { %2924 = vmatmul.msk.f32.vlgmr.msrb.gmra.mxu0 %vm1754_vm12, %v2041_v61 }
0x1011   : > { %2929 = vmatpush.xpose.msk.msra.mxu0 %vm1754_vm12, %v2173_v38 }
0x1013   : > { %v1943_v10 = vpop.xlane.xlu2 %1942 }
0x1014   : > { %v1945_v7 = vsub.f32 %v1935_v57, %v1943_v10 }
0x1015   : > { %2420 = vmatpush.msrb.mxu0 %v3410_v15 }
0x1016   : > { %v1948_v60 = vmul.f32 1.442695, %v1945_v7 }
0x1017   : > { %2421 = vmatpush.msrb.mxu0 %v3408_v14 }
0x1018   : > { %2930 = vmatmul.msk.f32.vlgmr.msra.gmra.mxu0 %vm1754_vm12, %v2171_v8  ;;  %3071 = vpow2.f32 %v1948_v60 }
0x1019   : > { %2422 = vmatpush.msrb.mxu0 %v3406_v13 }
0x101b   : > { %2423 = vmatpush.msrb.mxu0 %v3404_v12 }
0x101e   : > { %v3072_v3 = vpop.eup %3071 }
0x101f   : > { %v1953_v2 = vsel %vm1754_vm12, %v3072_v3, 0.0 }
0x1081   : > { %v1983_v9 = vpop.f32.mrf.mxu2 }
0x1089   : > { %v2037_v43 = vpop.f32.mrf.mxu2 }
0x108a   : > { %v2068_v45 = vsel %vm1754_vm12, %v2037_v43, -inf }
0x108b   : > { %2069 = vmax.xlane.f32.xlu0 %v2068_v45 }
0x108d   : > { %v2065_v40 = vpop.f32.mrf.mxu0 }
0x108e   : > { %v2071_v14 = vsel %vm1754_vm12, %v2065_v40, -inf }
0x1091   : > { %v2167_v15 = vpop.f32.mrf.mxu2 }
0x1092   : > { %v2198_v13 = vsel %vm1754_vm12, %v2167_v15, -inf }
0x1093   : > { %2072 = vmax.xlane.f32.xlu0 %v2071_v14  ;;  %2199 = vmax.xlane.f32.xlu1 %v2198_v13 }
0x1095   : > { %v2195_v12 = vpop.f32.mrf.mxu0 }
0x1096   : > { %v2201_v5 = vsel %vm1754_vm12, %v2195_v12, -inf }
0x1097   : > { %2202 = vmax.xlane.f32.xlu2 %v2201_v5 }
0x109b   : > { %1954 = vadd.xlane.f32.xlu0 %v1953_v2 }
0x10af   : > { %1986 = vrot.lane.b32.xlu2 %v3712_v4, %s3192_s25 }
0x10fe   : > { %v2070_v6 = vpop.xlane.xlu0 %2069 }
0x10ff   : > { %v2074_v52 = vsub.f32 %v2037_v43, %v2070_v6 }
0x1101   : > { %v2076_v56 = vmul.f32 1.442695, %v2074_v52 }
0x1103   : > { %3073 = vpow2.f32 %v2076_v56 }
0x1106   : > { %v2200_v42 = vpop.xlane.xlu1 %2199  ;;  %v2073_v57 = vpop.xlane.xlu0 %2072 }
0x1107   : > { %v2204_v48 = vsub.f32 %v2167_v15, %v2200_v42  ;;  %v2075_v58 = vsub.f32 %v2065_v40, %v2073_v57  ;;  %v2305_v57 = vperm.slane %v3402_v11, 0 }
0x1109   : > { %v3074_v39 = vpop.eup %3073  ;;  %v2206_v0 = vmul.f32 1.442695, %v2204_v48  ;;  %v2078_v1 = vmul.f32 1.442695, %v2075_v58 }
0x110a   : > { %v2203_v55 = vpop.xlane.xlu2 %2202  ;;  %v2080_v59 = vsel %vm1754_vm12, %v3074_v39, 0.0 }
0x110b   : > { %3075 = vpow2.f32 %v2206_v0  ;;  %2081 = vadd.xlane.f32.xlu1 %v2080_v59  ;;  %v2205_v8 = vsub.f32 %v2195_v12, %v2203_v55  ;;  %v3202_v59 = vmov 32.0  }
0x110c   : > { %3077 = vpow2.f32 %v2078_v1 }
0x110d   : > { %v2208_v10 = vmul.f32 1.442695, %v2205_v8 }
0x110e   : > { %v1955_v41 = vpop.xlane.xlu0 %1954 }
0x110f   : > { %3079 = vrcp.f32 %v1955_v41 }
0x1110   : > { %3081 = vpow2.f32 %v2208_v10 }
0x1111   : > { %v3076_v49 = vpop.eup %3075 }
0x1112   : > { %v3078_v50 = vpop.eup %3077  ;;  %v1987_v44 = vpop.permute.xlu2 %1986  ;;  %v2210_v63 = vsel %vm1754_vm12, %v3076_v49, 0.0 }
0x1113   : > { %2211 = vadd.xlane.f32.xlu2 %v2210_v63  ;;  %2007 = vmatpush.msra.mxu1 %v1987_v44  ;;  %v2083_v46 = vsel %vm1754_vm12, %v3078_v50, 0.0 }
0x1114   : > { %2084 = vadd.xlane.f32.xlu0 %v2083_v46 }
0x1115   : > { %v3080_v61 = vpop.eup %3079 }
0x1116   : > { %v1959_v38 = vmul.f32 %v3080_v61, %v3072_v3  ;;  %v3082_v7 = vpop.eup %3081 }
0x1117   : > { %v2213_v43 = vsel %vm1754_vm12, %v3082_v7, 0.0 }
0x1118   : > { %2920 = vmatmul.msk.f32.vlgmr.msra.gmra.mxu1 %vm1754_vm12, %v1959_v38 }
0x1124   : > { %2090 = vrot.lane.b32.xlu1 %v3709_v47, %s3197_s1 }
0x1128   : > { %2220 = vrot.lane.b32.xlu0 %v3709_v47, %s3198_s20 }
0x112b   : > { %2116 = vrot.lane.b32.xlu2 %v3712_v4, %s3197_s1 }
0x1130   : > { %2246 = vrot.lane.b32.xlu0 %v3712_v4, %s3198_s20 }
0x1133   : > { %2274 = vrot.lane.b32.xlu2 %v1983_v9, %s3199_s2 }
0x114e   : > { %2214 = vadd.xlane.f32.xlu1 %v2213_v43 }
0x117e   : > { %v2082_v40 = vpop.xlane.xlu1 %2081 }
0x1186   : > { %v2212_v45 = vpop.xlane.xlu2 %2211 }
0x1187   : > { %v2085_v60 = vpop.xlane.xlu0 %2084 }
0x1188   : > { %3083 = vrcp.f32 %v2085_v60 }
0x1189   : > { %3085 = vrcp.f32 %v2082_v40 }
0x118a   : > { %3087 = vrcp.f32 %v2212_v45 }
0x118e   : > { %v3084_v15 = vpop.eup %3083  ;;  %v2117_v47 = vpop.permute.xlu2 %2116 }
0x118f   : > { %v2089_v14 = vmul.f32 %v3084_v15, %v3078_v50  ;;  %2137 = vmatpush.msrb.mxu1 %v2117_v47  ;;  %v3086_v4 = vpop.eup %3085 }
0x1190   : > { %v2088_v13 = vmul.f32 %v3086_v4, %v3074_v39  ;;  %v3088_v5 = vpop.eup %3087 }
0x1191   : > { %2926 = vmatmul.msk.f32.vlgmr.msrb.gmra.mxu1 %vm1754_vm12, %v2089_v14  ;;  %v2218_v3 = vmul.f32 %v3088_v5, %v3076_v49  ;;  %v2390_v5 = vperm.slane %v3474_v34, 0 }
0x1196   : > { %v2091_v9 = vpop.permute.xlu1 %2090 }
0x1197   : > { %2111 = vmatpush.msra.mxu3 %v2091_v9 }
0x1198   : > { %2925 = vmatmul.msk.f32.vlgmr.msra.gmra.mxu3 %vm1754_vm12, %v2088_v13 }
0x119a   : > { %v2221_v12 = vpop.permute.xlu0 %2220 }
0x119b   : > { %2241 = vmatpush.msrb.mxu3 %v2221_v12 }
0x119d   : > { %2514 = vmatpush.msra.mxu3 %v3460_v32 }
0x119f   : > { %2515 = vmatpush.msra.mxu3 %v3457_v31 }
0x11a0   : > { %2931 = vmatmul.msk.f32.vlgmr.msrb.gmra.mxu3 %vm1754_vm12, %v2218_v3 }
0x11a1   : > { %2516 = vmatpush.msra.mxu3 %v3454_v30 }
0x11a2   : > { %v2247_v2 = vpop.permute.xlu0 %2246 }
0x11a3   : > { %2517 = vmatpush.msra.mxu3 %v3451_v29  ;;  %2267 = vmatpush.msra.mxu1 %v2247_v2 }
0x11a5   : > { %2518 = vmatpush.msra.mxu3 %v3448_v28 }
0x11a7   : > { %2519 = vmatpush.msra.mxu3 %v3445_v27 }
0x11a9   : > { %2520 = vmatpush.msra.mxu3 %v3442_v26 }
0x11ab   : > { %2521 = vmatpush.msra.mxu3 %v3439_v25 }
0x11ad   : > { %2522 = vmatpush.msra.mxu3 %v3436_v24 }
0x11af   : > { %2523 = vmatpush.msra.mxu3 %v3433_v23 }
0x11b1   : > { %2524 = vmatpush.msra.mxu3 %v3430_v22  ;;  %v2009_v22 = vpop.f32.mrf.mxu1 }
0x11b3   : > { %2525 = vmatpush.msra.mxu3 %v3427_v21 }
0x11b5   : > { %2526 = vmatpush.msra.mxu3 %v3424_v20 }
0x11b7   : > { %2527 = vmatpush.msra.mxu3 %v3421_v19 }
0x11b9   : > { %2528 = vmatpush.msra.mxu3 %v3418_v18 }
0x11bb   : > { %2529 = vmatpush.msra.mxu3 %v3415_v17  ;;  %v2275_v17 = vpop.permute.xlu2 %2274 }
0x11bc   : > { %v2296_v20 = vsel %vm1754_vm12, %v3742_v51, %v2275_v17 }
0x11c1   : > { %v2215_v27 = vpop.xlane.xlu1 %2214 }
0x11c2   : > { %3089 = vrcp.f32 %v2215_v27  ;;  %v2395_v27 = vperm.slane %v3481_v35, 0 }
0x11c3   : > { %3091 = vrcp.f32 %v3202_v59 }
0x11c8   : > { %v3090_v26 = vpop.eup %3089 }
0x11c9   : > { %v2219_v25 = vmul.f32 %v3090_v26, %v3082_v7  ;;  %v3092_v41 = vpop.eup %3091 }
0x11ca   : > { %v2345_v49 = vmul.f32 32.0, %v3092_v41  ;;  %vm2349_vm15 = vweird.f32 %v3092_v41 }
0x11cb   : > { %2932 = vmatmul.msk.f32.vlgmr.msra.gmra.mxu1 %vm1754_vm12, %v2219_v25 }
0x11cc   : > { %v2346_v50 = vsub.f32 1.0, %v2345_v49 }
0x11ce   : > { %v2347_v11 = vmul.f32 %v3092_v41, %v2346_v50 }
0x11d0   : > { %v2348_v44 = vadd.f32 %v3092_v41, %v2347_v11 }
0x11d2   : > { %v3818_v63 = vsel %vm2349_vm15, %v3092_v41, %v2348_v44 }
0x120e   : > { %v2139_v19 = vpop.f32.mrf.mxu1 }
0x121b   : > { %v2113_v24 = vpop.f32.mrf.mxu3 }
0x121c   : > { %2282 = vrot.lane.b32.xlu0 %v2113_v24, %s3200_s6 }
0x1223   : > { %v2243_v23 = vpop.f32.mrf.mxu3 }
0x1224   : > { %2276 = vrot.lane.b32.xlu0 %v2009_v22, %s3199_s2  ;;  %2290 = vrot.lane.b32.xlu2 %v2243_v23, %s3201_s18 }
0x122c   : > { %2284 = vrot.lane.b32.xlu2 %v2139_v19, %s3200_s6 }
0x1248   : > { %v2269_v18 = vpop.f32.mrf.mxu1 }
0x1249   : > { %2292 = vrot.lane.b32.xlu0 %v2269_v18, %s3201_s18 }
0x127e   : > { %v2291_v28 = vpop.permute.xlu2 %2290 }
0x1286   : > { %v2285_v6 = vpop.permute.xlu2 %2284 }
0x128e   : > { %v2283_v21 = vpop.permute.xlu0 %2282 }
0x128f   : > { %v2299_v29 = vsel %vm2298_vm13, %v2296_v20, %v2283_v21 }
0x1290   : > { %v2302_v30 = vsel %vm2301_vm14, %v2299_v29, %v2291_v28 }
0x1291   : > { %2933 = vmatmul.msk.f32.vlgmr.msrb.gmra.mxu2 %vm1719_vm11, %v2302_v30 }
0x1296   : > { %v2277_v31 = vpop.permute.xlu0 %2276 }
0x1297   : > { %v2297_v32 = vsel %vm1754_vm12, %v3744_v54, %v2277_v31  ;;  %v2400_v31 = vperm.slane %v3412_v16, 0 }
0x1298   : > { %v2300_v56 = vsel %vm2298_vm13, %v2297_v32, %v2285_v6 }
0x12bb   : > { %v2293_v52 = vpop.permute.xlu0 %2292 }
0x12bc   : > { %v2303_v42 = vsel %vm2301_vm14, %v2300_v56, %v2293_v52 }
0x12bd   : > { %2934 = vmatmul.msk.f32.gmra.mxu2 %vm1719_vm11, %v2303_v42 }
0x1314   : > { %v2330_v48 = vpop.f32.mrf.mxu2 }
0x1315   : > { %v2331_v51 = vadd.f32 %v2330_v48, %v2305_v57 }
0x1317   : > { %v2336_v58 = vadd.f32 %v2331_v51, %v3699_v53 }
0x1319   : > { %v2338_v39 = vsel %vm1719_vm11, %v2336_v58, 0.0 }
0x131a   : > { %2339 = vadd.xlane.f32.xlu2 %v2338_v39 }
0x1340   : > { %v2333_v0 = vpop.f32.mrf.mxu2 }
0x1341   : > { %v2334_v1 = vadd.f32 %v2333_v0, %v2305_v57 }
0x1343   : > { %v2337_v55 = vadd.f32 %v2334_v1, %v3704_v62 }
0x1345   : > { %v2341_v54 = vsel %vm1719_vm11, %v2337_v55, 0.0 }
0x1346   : > { %2342 = vadd.xlane.f32.xlu0 %v2341_v54 }
0x138d   : > { %v2340_v53 = vpop.xlane.xlu2 %2339 }
0x138e   : > { %v2351_v46 = vmul.f32 %v3818_v63, %v2340_v53 }
0x1390   : > { %v2353_v61 = vsub.f32 %v2336_v58, %v2351_v46 }
0x1392   : > { %v2355_v38 = vmul.f32 %v2353_v61, %v2353_v61 }
0x1394   : > { %v2357_v62 = vsel %vm1719_vm11, %v2355_v38, 0.0 }
0x1395   : > { %2358 = vadd.xlane.f32.xlu1 %v2357_v62 }
0x13b9   : > { %v2343_v8 = vpop.xlane.xlu0 %2342 }
0x13ba   : > { %v2352_v10 = vmul.f32 %v3818_v63, %v2343_v8 }
0x13bc   : > { %v2354_v7 = vsub.f32 %v2337_v55, %v2352_v10 }
0x13be   : > { %v2356_v43 = vmul.f32 %v2354_v7, %v2354_v7 }
0x13c0   : > { %v2360_v45 = vsel %vm1719_vm11, %v2356_v43, 0.0 }
0x13c1   : > { %2361 = vadd.xlane.f32.xlu1 %v2360_v45 }
0x1408   : > { %v2359_v60 = vpop.xlane.xlu1 %2358 }
0x1409   : > { %v2363_v40 = vmul.f32 %v2359_v60, %v3818_v63 }
0x140b   : > { %v2365_v15 = vadd.f32 1e-05, %v2363_v40 }
0x140d   : > { %3093 = vrsqrt.f32 %v2365_v15  ;;  %vm2373_vm2 = vweird.f32 %v2365_v15 }
0x1413   : > { %v3094_v47 = vpop.eup %3093 }
0x1414   : > { %v2368_v14 = vmul.f32 %v3094_v47, %v2365_v15  ;;  %vm2374_vm0 = vweird.f32 %v3094_v47 }
0x1415   : > { %vm2375_vm3 = vmor %vm2373_vm2, %vm2374_vm0 }
0x1416   : > { %v2369_v4 = vmul.f32 %v3094_v47, %v2368_v14  ;;  %v3203_v14 = vmov -1.0  }
0x1418   : > { %v2370_v9 = vmul.f32 0.5, %v2369_v4 }
0x141a   : > { %v2371_v13 = vsub.f32 1.5, %v2370_v9 }
0x141c   : > { %v2372_v12 = vmul.f32 %v3094_v47, %v2371_v13 }
0x141e   : > { %v2376_v3 = vsel %vm2375_vm3, %v3094_v47, %v2372_v12 }
0x141f   : > { %v2387_v2 = vmul.f32 %v2376_v3, %v2353_v61 }
0x1421   : > { %v2392_v26 = vmul.f32 %v2390_v5, %v2387_v2 }
0x1423   : > { %v3827_v25 = vadd.f32 %v2395_v27, %v2392_v26 }
0x1425   : > { %2935 = vmatmul.msk.f32.vlgmr.msrb.gmra.mxu0 %vm1719_vm11, %v3827_v25 }
0x1434   : > { %v2362_v24 = vpop.xlane.xlu1 %2361 }
0x1435   : > { %v2364_v22 = vmul.f32 %v2362_v24, %v3818_v63 }
0x1437   : > { %v2366_v23 = vadd.f32 1e-05, %v2364_v22 }
0x1439   : > { %3095 = vrsqrt.f32 %v2366_v23  ;;  %vm2383_vm1 = vweird.f32 %v2366_v23 }
0x143f   : > { %v3096_v19 = vpop.eup %3095 }
0x1440   : > { %v2378_v18 = vmul.f32 %v3096_v19, %v2366_v23  ;;  %vm2384_vm4 = vweird.f32 %v3096_v19 }
0x1441   : > { %vm2385_vm5 = vmor %vm2383_vm1, %vm2384_vm4 }
0x1442   : > { %v2379_v17 = vmul.f32 %v3096_v19, %v2378_v18 }
0x1444   : > { %v2380_v34 = vmul.f32 0.5, %v2379_v17 }
0x1446   : > { %v2381_v20 = vsub.f32 1.5, %v2380_v34 }
0x1448   : > { %v2382_v21 = vmul.f32 %v3096_v19, %v2381_v20 }
0x144a   : > { %v2386_v35 = vsel %vm2385_vm5, %v3096_v19, %v2382_v21 }
0x144b   : > { %v2388_v28 = vmul.f32 %v2386_v35, %v2354_v7 }
0x144d   : > { %v2393_v29 = vmul.f32 %v2390_v5, %v2388_v28 }
0x144f   : > { %v3832_v30 = vadd.f32 %v2395_v27, %v2393_v29 }
0x1451   : > { %2936 = vmatmul.msk.f32.gmra.mxu0 %vm1719_vm11, %v3832_v30 }
0x14a2   : > { %v2425_v32 = vpop.f32.mrf.mxu0 }
0x14a3   : > { %v2426_v6 = vadd.f32 %v2425_v32, %v2400_v31 }
0x14a5   : > { %v2433_v52 = vmul.f32 0.70710677, %v2426_v6  ;;  %v2431_v12 = vmul.f32 0.5, %v2426_v6 }
0x14a7   : > { %v2439_v56 = vand.u32 2147483647, %v2433_v52  ;;  %vm2435_vm10 = vcmp.ge.f32.partialorder %v2433_v52, 0.0 }
0x14a8   : > { %v2437_v4 = vsel %vm2435_vm10, 1.0, %v3203_v14 }
0x14a9   : > { %v2441_v42 = vmul.f32 0.3275911, %v2439_v56  ;;  %v2493_v41 = vsub.f32 0.0, %v2439_v56 }
0x14ab   : > { %v2443_v57 = vadd.f32 1.0, %v2441_v42  ;;  %v2495_v11 = vmul.f32 %v2493_v41, %v2439_v56 }
0x14ad   : > { %3097 = vrcp.f32 %v2443_v57  ;;  %v2456_v39 = vand.u32 2147483648, %v2443_v57  ;;  %v2454_v1 = vand.u32 2147483647, %v2443_v57  ;;  %vm2450_vm7 = vweird.f32 %v2443_v57 }
0x14ae   : > { %v2497_v46 = vmul.f32 1.442695, %v2495_v11 }
0x14af   : > { %v2457_v54 = vor.u32 1.1754944e-38, %v2456_v39  ;;  %vm2455_vm9 = vcmp.eq.f32.partialorder %v2454_v1, 8.507059e+37 }
0x14b0   : > { %3099 = vpow2.f32 %v2497_v46 }
0x14b3   : > { %v3098_v48 = vpop.eup %3097 }
0x14b4   : > { %v2446_v51 = vmul.f32 %v3098_v48, %v2443_v57  ;;  %vm2451_vm6 = vweird.f32 %v3098_v48 }
0x14b5   : > { %vm2452_vm8 = vmor %vm2450_vm7, %vm2451_vm6 }
0x14b6   : > { %v2447_v58 = vsub.f32 1.0, %v2446_v51  ;;  %v3100_v45 = vpop.eup %3099 }
0x14b8   : > { %v2448_v0 = vmul.f32 %v3098_v48, %v2447_v58 }
0x14ba   : > { %v2449_v55 = vadd.f32 %v3098_v48, %v2448_v0 }
0x14bc   : > { %v2453_v59 = vsel %vm2452_vm8, %v3098_v48, %v2449_v55 }
0x14bd   : > { %v2458_v16 = vsel %vm2455_vm9, %v2457_v54, %v2453_v59 }
0x14be   : > { %v2475_v49 = vmul.f32 1.0614054, %v2458_v16 }
0x14c0   : > { %v2477_v50 = vadd.f32 -1.4531521, %v2475_v49 }
0x14c2   : > { %v2479_v44 = vmul.f32 %v2477_v50, %v2458_v16 }
0x14c4   : > { %v2481_v53 = vadd.f32 1.4214138, %v2479_v44 }
0x14c6   : > { %v2483_v61 = vmul.f32 %v2481_v53, %v2458_v16 }
0x14c8   : > { %v2485_v38 = vadd.f32 -0.28449672, %v2483_v61 }
0x14ca   : > { %v2487_v62 = vmul.f32 %v2485_v38, %v2458_v16 }
0x14cc   : > { %v2489_v8 = vadd.f32 0.2548296, %v2487_v62 }
0x14ce   : > { %v2428_v10 = vpop.f32.mrf.mxu0  ;;  %v2491_v7 = vmul.f32 %v2489_v8, %v2458_v16  ;;  %v2512_v16 = vperm.slane %v3467_v33, 0 }
0x14cf   : > { %v2429_v43 = vadd.f32 %v2428_v10, %v2400_v31 }
0x14d0   : > { %v2501_v60 = vmul.f32 %v3100_v45, %v2491_v7 }
0x14d1   : > { %v2434_v40 = vmul.f32 0.70710677, %v2429_v43  ;;  %v2432_v55 = vmul.f32 0.5, %v2429_v43 }
0x14d2   : > { %v2503_v15 = vsub.f32 1.0, %v2501_v60 }
0x14d3   : > { %v2440_v47 = vand.u32 2147483647, %v2434_v40  ;;  %vm2436_vm0 = vcmp.ge.f32.partialorder %v2434_v40, 0.0 }
0x14d4   : > { %v2505_v9 = vmul.f32 %v2503_v15, %v2437_v4  ;;  %v2438_v0 = vsel %vm2436_vm0, 1.0, %v3203_v14 }
0x14d5   : > { %v2442_v13 = vmul.f32 0.3275911, %v2440_v47  ;;  %v2494_v20 = vsub.f32 0.0, %v2440_v47 }
0x14d6   : > { %v2507_v5 = vadd.f32 1.0, %v2505_v9 }
0x14d7   : > { %v2444_v3 = vadd.f32 1.0, %v2442_v13  ;;  %v2496_v29 = vmul.f32 %v2494_v20, %v2440_v47 }
0x14d8   : > { %v2509_v2 = vmul.f32 %v2507_v5, %v2431_v12  ;;  %v2584_v5 = vperm.slane %v3488_v36, 0 }
0x14d9   : > { %3101 = vrcp.f32 %v2444_v3  ;;  %v2471_v22 = vand.u32 2147483648, %v2444_v3  ;;  %v2469_v19 = vand.u32 2147483647, %v2444_v3  ;;  %vm2465_vm13 = vweird.f32 %v2444_v3 }
0x14da   : > { %2530 = vmatmul.f32.vlgmr.msra.gmra.mxu3 %v2509_v2  ;;  %v2499_v6 = vmul.f32 1.442695, %v2496_v29  ;;  %v2589_v2 = vperm.slane %v3495_v37, 0 }
0x14db   : > { %v2472_v17 = vor.u32 1.1754944e-38, %v2471_v22  ;;  %vm2470_vm15 = vcmp.eq.f32.partialorder %v2469_v19, 8.507059e+37 }
0x14dc   : > { %3103 = vpow2.f32 %v2499_v6 }
0x14df   : > { %v3102_v27 = vpop.eup %3101 }
0x14e0   : > { %v2461_v26 = vmul.f32 %v3102_v27, %v2444_v3  ;;  %vm2466_vm12 = vweird.f32 %v3102_v27 }
0x14e1   : > { %vm2467_vm14 = vmor %vm2465_vm13, %vm2466_vm12 }
0x14e2   : > { %v2462_v24 = vsub.f32 1.0, %v2461_v26  ;;  %v3104_v51 = vpop.eup %3103 }
0x14e4   : > { %v2463_v23 = vmul.f32 %v3102_v27, %v2462_v24 }
0x14e6   : > { %v2464_v18 = vadd.f32 %v3102_v27, %v2463_v23 }
0x14e8   : > { %v2468_v34 = vsel %vm2467_vm14, %v3102_v27, %v2464_v18 }
0x14e9   : > { %v2473_v21 = vsel %vm2470_vm15, %v2472_v17, %v2468_v34 }
0x14ea   : > { %v2476_v35 = vmul.f32 1.0614054, %v2473_v21 }
0x14ec   : > { %v2478_v28 = vadd.f32 -1.4531521, %v2476_v35 }
0x14ee   : > { %v2480_v31 = vmul.f32 %v2478_v28, %v2473_v21 }
0x14f0   : > { %v2482_v32 = vadd.f32 1.4214138, %v2480_v31 }
0x14f2   : > { %v2484_v52 = vmul.f32 %v2482_v32, %v2473_v21 }
0x14f4   : > { %v2486_v56 = vadd.f32 -0.28449672, %v2484_v52 }
0x14f6   : > { %v2488_v42 = vmul.f32 %v2486_v56, %v2473_v21 }
0x14f8   : > { %v2490_v57 = vadd.f32 0.2548296, %v2488_v42 }
0x14fa   : > { %v2492_v48 = vmul.f32 %v2490_v57, %v2473_v21 }
0x14fc   : > { %v2502_v58 = vmul.f32 %v3104_v51, %v2492_v48 }
0x14fe   : > { %v2504_v39 = vsub.f32 1.0, %v2502_v58 }
0x1500   : > { %v2506_v1 = vmul.f32 %v2504_v39, %v2438_v0 }
0x1502   : > { %v2508_v54 = vadd.f32 1.0, %v2506_v1 }
0x1504   : > { %v2510_v59 = vmul.f32 %v2508_v54, %v2432_v55 }
0x1506   : > { %2533 = vmatmul.f32.gmra.mxu3 %v2510_v59 }
0x155d   : > { %v2531_v41 = vpop.f32.mrf.mxu3 }
0x155e   : > { %v2532_v49 = vadd.f32 %v2531_v41, %v2512_v16 }
0x1560   : > { %v2537_v50 = vadd.f32 %v2532_v49, %v3827_v25 }
0x1562   : > { %v2539_v11 = vsel %vm1719_vm11, %v2537_v50, 0.0 }
0x1563   : > { %2540 = vadd.xlane.f32.xlu1 %v2539_v11 }
0x1589   : > { %v2534_v44 = vpop.f32.mrf.mxu3 }
0x158a   : > { %v2535_v53 = vadd.f32 %v2534_v44, %v2512_v16 }
0x158c   : > { %v2538_v46 = vadd.f32 %v2535_v53, %v3832_v30 }
0x158e   : > { %v2542_v61 = vsel %vm1719_vm11, %v2538_v46, 0.0 }
0x158f   : > { %2543 = vadd.xlane.f32.xlu1 %v2542_v61 }
0x15d6   : > { %v2541_v38 = vpop.xlane.xlu1 %2540 }
0x15d7   : > { %v2545_v62 = vmul.f32 %v2541_v38, %v3818_v63 }
0x15d9   : > { %v2547_v8 = vsub.f32 %v2537_v50, %v2545_v62 }
0x15db   : > { %v2549_v10 = vmul.f32 %v2547_v8, %v2547_v8 }
0x15dd   : > { %v2551_v33 = vsel %vm1719_vm11, %v2549_v10, 0.0 }
0x15de   : > { %2552 = vadd.xlane.f32.xlu1 %v2551_v33 }
0x1602   : > { %v2544_v7 = vpop.xlane.xlu1 %2543 }
0x1603   : > { %v2546_v25 = vmul.f32 %v2544_v7, %v3818_v63 }
0x1605   : > { %v2548_v43 = vsub.f32 %v2538_v46, %v2546_v25 }
0x1607   : > { %v2550_v45 = vmul.f32 %v2548_v43, %v2548_v43 }
0x1609   : > { %v2554_v60 = vsel %vm1719_vm11, %v2550_v45, 0.0 }
0x160a   : > { %2555 = vadd.xlane.f32.xlu2 %v2554_v60 }
0x1651   : > { %v2553_v30 = vpop.xlane.xlu1 %2552 }
0x1652   : > { %v2557_v40 = vmul.f32 %v2553_v30, %v3818_v63 }
0x1654   : > { %v2559_v15 = vadd.f32 1e-05, %v2557_v40 }
0x1656   : > { %3105 = vrsqrt.f32 %v2559_v15  ;;  %vm2567_vm3 = vweird.f32 %v2559_v15 }
0x165c   : > { %v3106_v47 = vpop.eup %3105 }
0x165d   : > { %v2562_v14 = vmul.f32 %v3106_v47, %v2559_v15  ;;  %vm2568_vm2 = vweird.f32 %v3106_v47 }
0x165e   : > { %vm2569_vm4 = vmor %vm2567_vm3, %vm2568_vm2 }
0x165f   : > { %v2563_v4 = vmul.f32 %v3106_v47, %v2562_v14 }
0x1661   : > { %v2564_v9 = vmul.f32 0.5, %v2563_v4 }
0x1663   : > { %v2565_v13 = vsub.f32 1.5, %v2564_v9 }
0x1665   : > { %v2566_v12 = vmul.f32 %v3106_v47, %v2565_v13 }
0x1667   : > { %v2570_v3 = vsel %vm2569_vm4, %v3106_v47, %v2566_v12 }
0x1668   : > { %v2581_v27 = vmul.f32 %v2570_v3, %v2547_v8 }
0x166a   : > { %v2586_v26 = vmul.f32 %v2584_v5, %v2581_v27 }
0x166c   : > { %v2591_v24 = vadd.f32 %v2589_v2, %v2586_v26 }
0x166e   : > { %2593 = vst.msk [vmem:[#allocation2] sm:$0xff] %vm1719_vm11, %v2591_v24 }
0x167d   : > { %v2556_v22 = vpop.xlane.xlu2 %2555 }
0x167e   : > { %v2558_v23 = vmul.f32 %v2556_v22, %v3818_v63 }
0x1680   : > { %v2560_v19 = vadd.f32 1e-05, %v2558_v23 }
0x1682   : > { %3107 = vrsqrt.f32 %v2560_v19  ;;  %vm2577_vm5 = vweird.f32 %v2560_v19 }
0x1688   : > { %v3108_v18 = vpop.eup %3107 }
0x1689   : > { %v2572_v17 = vmul.f32 %v3108_v18, %v2560_v19  ;;  %vm2578_vm1 = vweird.f32 %v3108_v18 }
0x168a   : > { %vm2579_vm6 = vmor %vm2577_vm5, %vm2578_vm1 }
0x168b   : > { %v2573_v34 = vmul.f32 %v3108_v18, %v2572_v17 }
0x168d   : > { %v2574_v20 = vmul.f32 0.5, %v2573_v34 }
0x168f   : > { %v2575_v21 = vsub.f32 1.5, %v2574_v20 }
0x1691   : > { %v2576_v36 = vmul.f32 %v3108_v18, %v2575_v21 }
0x1693   : > { %v2580_v37 = vsel %vm2579_vm6, %v3108_v18, %v2576_v36 }
0x1694   : > { %v2582_v35 = vmul.f32 %v2580_v37, %v2548_v43 }
0x1696   : > { %v2587_v28 = vmul.f32 %v2584_v5, %v2582_v35 }
0x1698   : > { %v2592_v29 = vadd.f32 %v2589_v2, %v2587_v28 }
0x169a   : > { %2594 = vst.msk [vmem:[#allocation2 + $0x8] sm:$0xff] %vm1719_vm11, %v2592_v29 }
0x169b PF: > { %s3941_s19 = sld [smem:[#allocation10_spill]] }
0x16a1   : > { %p2937_p8 = scmp.ne.s32.totalorder %s3941_s19, 5 }
0x16a2   : > { %s2601_s4 = sld [smem:[#allocation4]] (!%p2937_p8) }
0x16a3   : > { %2598 = sbr.rel (%p2937_p8) target bundleno = 6219 (0x184b), region = 116  ;;  %s2939_s21 = sld [smem:[#allocation4 + $0x1]] (!%p2937_p8) }
0x16a4   : > { %s3942_s30 = sld [smem:[#allocation22_spill]] (!%p2937_p8) }
0x16a5   : > { %s3943_s28 = sld [smem:[#allocation20_spill]] (!%p2937_p8) }
0x16a6   : > { %s3944_s0 = sld [smem:[#allocation21_spill]] (!%p2937_p8) }
0x16a7   : > { %s3945_s2 = sld [smem:[#allocation23_spill]] (!%p2937_p8) }
0x16a8   : > { %v2599_v63 = vlaneseq  ;;  %v2602_v32 = vstv %s2601_s4  ;;  %v2606_v6 = vld [vmem:[#allocation2] sm:$0xff]  ;;  %v2622_v56 = vld [vmem:[#allocation2 + $0x8] sm:$0xff]  ;;  %v3204_v42 = vmov 0.0   ;;  %vm2608_vm8 = vcmask 261120  }
0x16a9   : > { %v2617_v52 = vstv %s2939_s21  ;;  %vm2631_vm11 = vcmask 1040384   ;;  %vm2635_vm10 = vcmask 254976   ;;  %v3205_v62 = vmov 32.0  }
0x16aa   : > { %v2600_v31 = vshrl.u32 %v2599_v63, 7  ;;  %3112 = vrcp.f32 %v3205_v62  ;;  %v2676_v47 = vld [vmem:[%s3942_s30 + $0x18] sm:$0xff]  ;;  %v2675_v14 = vld [vmem:[%s3942_s30 + $0x10] sm:$0xff]  ;;  %v2674_v4 = vld [vmem:[%s3942_s30 + $0x8] sm:$0xff] }
0x16ab   : > { %2696 = vmatpush.msra.mxu0 %v2676_v47  ;;  %v2673_v9 = vld [vmem:[%s3942_s30] sm:$0xff] }
0x16ac   : > { %vm2603_vm7 = vcmp.eq.s32.totalorder %v2600_v31, %v2602_v32  ;;  %vm2618_vm9 = vcmp.eq.s32.totalorder %v2600_v31, %v2617_v52  ;;  %v3109_v23 = vld [vmem:[%s3943_s28] ss:$0 sm:$0xff] }
0x16ad   : > { %v2938_v57 = vsel %vm2603_vm7, 1.0, %v3204_v42  ;;  %v2940_v51 = vsel %vm2618_vm9, 1.0, %v3204_v42  ;;  %2697 = vmatpush.msra.mxu0 %v2675_v14  ;;  %v3110_v17 = vld [vmem:[%s3944_s0] ss:$0 sm:$0xff] }
0x16ae   : > { %v2607_v48 = vmul.f32 %v2938_v57, %v2606_v6  ;;  %v2623_v58 = vmul.f32 %v2940_v51, %v2622_v56  ;;  %v3111_v21 = vld [vmem:[%s3945_s2] ss:$0 sm:$0xff] }
0x16af   : > { %2698 = vmatpush.msra.mxu0 %v2674_v4 }
0x16b0   : > { %v2609_v39 = vsel %vm2608_vm8, %v2607_v48, 0.0  ;;  %v2624_v1 = vsel %vm2608_vm8, %v2623_v58, 0.0  ;;  %v3113_v8 = vpop.eup %3112 }
0x16b1   : > { %v2610_v0 = vrot.slane %v2609_v39, 4  ;;  %v2625_v55 = vrot.slane %v2624_v1, 4  ;;  %v2640_v10 = vmul.f32 32.0, %v3113_v8  ;;  %vm2644_vm12 = vweird.f32 %v3113_v8  ;;  %2699 = vmatpush.msra.mxu0 %v2673_v9 }
0x16b3   : > { %v2611_v54 = vadd.f32 %v2610_v0, %v2609_v39  ;;  %v2626_v59 = vadd.f32 %v2625_v55, %v2624_v1  ;;  %v2641_v33 = vsub.f32 1.0, %v2640_v10 }
0x16b5   : > { %v2612_v16 = vrot.slane %v2611_v54, 2  ;;  %v2627_v41 = vrot.slane %v2626_v59, 2  ;;  %v2642_v7 = vmul.f32 %v3113_v8, %v2641_v33 }
0x16b7   : > { %v2613_v49 = vadd.f32 %v2612_v16, %v2611_v54  ;;  %v2628_v50 = vadd.f32 %v2627_v41, %v2626_v59  ;;  %v2643_v25 = vadd.f32 %v3113_v8, %v2642_v7 }
0x16b9   : > { %v2614_v11 = vrot.slane %v2613_v49, 1  ;;  %v2629_v44 = vrot.slane %v2628_v50, 1  ;;  %v2645_v43 = vsel %vm2644_vm12, %v3113_v8, %v2643_v25 }
0x16bb   : > { %v2615_v53 = vadd.f32 %v2614_v11, %v2613_v49  ;;  %v2630_v46 = vadd.f32 %v2629_v44, %v2628_v50 }
0x16bd   : > { %v2632_v61 = vsel %vm2631_vm11, %v2615_v53, %v2630_v46 }
0x16be   : > { %v2636_v38 = vsel %vm2635_vm10, %v2632_v61, 0.0 }
0x16bf   : > { %2637 = vadd.xlane.f32.xlu0 %v2636_v38 }
0x1732   : > { %v2638_v45 = vpop.xlane.xlu0 %2637 }
0x1733   : > { %v2646_v60 = vmul.f32 %v2645_v43, %v2638_v45 }
0x1735   : > { %v2647_v30 = vsub.f32 %v2632_v61, %v2646_v60 }
0x1737   : > { %v2648_v40 = vmul.f32 %v2647_v30, %v2647_v30 }
0x1739   : > { %v2649_v15 = vsel %vm2635_vm10, %v2648_v40, 0.0 }
0x173a   : > { %2650 = vadd.xlane.f32.xlu0 %v2649_v15 }
0x17ad   : > { %v2651_v13 = vpop.xlane.xlu0 %2650 }
0x17ae   : > { %v2652_v12 = vmul.f32 %v2651_v13, %v2645_v43 }
0x17b0   : > { %v2653_v5 = vadd.f32 1e-05, %v2652_v12 }
0x17b2   : > { %3114 = vrsqrt.f32 %v2653_v5  ;;  %vm2660_vm14 = vweird.f32 %v2653_v5 }
0x17b8   : > { %v3115_v3 = vpop.eup %3114 }
0x17b9   : > { %v2655_v2 = vmul.f32 %v3115_v3, %v2653_v5  ;;  %vm2661_vm13 = vweird.f32 %v3115_v3 }
0x17ba   : > { %vm2662_vm15 = vmor %vm2660_vm14, %vm2661_vm13 }
0x17bb   : > { %v2656_v27 = vmul.f32 %v3115_v3, %v2655_v2 }
0x17bd   : > { %v2657_v26 = vmul.f32 0.5, %v2656_v27 }
0x17bf   : > { %v2658_v24 = vsub.f32 1.5, %v2657_v26 }
0x17c1   : > { %v2659_v22 = vmul.f32 %v3115_v3, %v2658_v24 }
0x17c3   : > { %v2663_v19 = vsel %vm2662_vm15, %v3115_v3, %v2659_v22 }
0x17c4   : > { %v2664_v18 = vmul.f32 %v2663_v19, %v2647_v30 }
0x17c6   : > { %v2668_v34 = vmul.f32 %v3109_v23, %v2664_v18 }
0x17c8   : > { %v2672_v20 = vadd.f32 %v3110_v17, %v2668_v34 }
0x17ca   : > { %2941 = vmatmul.msk.f32.vlgmr.msra.gmra.mxu0 %vm2608_vm8, %v2672_v20 }
0x1847   : > { %v2701_v36 = vpop.f32.mrf.mxu0 }
0x1848   : > { %v2702_v37 = vadd.f32 %v3111_v21, %v2701_v36 }
0x184a   : > { %2704 = vst [vmem:[#allocation5] sm:$0x3] %v2702_v37 }
0x184b PF: > { %s3946_s6 = sld [smem:[#allocation10_spill]]  ;;  %s3206_s18 = smov [#allocation5]  }
0x184c   : > { %s2711_s19 = sshll.u32 %s3206_s18, 4  ;;  %s3947_s24 = sld [smem:[#allocation24_spill]]  ;;  %s2712_s19 = int_to_ptr.vmem [resolvable:$true] %s2711_s19 }
0x1851   : > { %p2954_p9 = scmp.eq.s32.totalorder %s3946_s6, 5 }
0x1852   : > { %s2713_s26 = sshll.u32 %s3947_s24, 4  ;;  %s2714_s26 = int_to_ptr.hbm [resolvable:$true] %s2713_s26 }
0x1853   : > { %2951 = dma.vmem_to_hbm [thread:$0]  (%p2954_p9), %s2712_s19, 32, %s2714_s26, [#allocation6]  }
0x1854   : > { %3163 = dma.done.wait (%p2954_p9), [#allocation6], 32  }
0x1855   : > { %3165 = vsyncadd (%p2954_p9), [#allocation6], 4294967264 }
0x1856 PF: > { %s3948_s16 = sld [smem:[#allocation9_spill]] }
0x185c   : > { %s39_s2 = sadd.s32 1, %s3948_s16  }
0x185d   : > { %p36_p10 = scmp.ge.s32.totalorder %s39_s2, 8  }
0x185f   :  { %38 = sbr.rel (!%p36_p10) target bundleno = 27 (0x1b), region = 177 }
0x1864   :  { %2727 = vsyncpa [#allocation6], 1 }
0x1865   :  { %2729 = vsyncpa [#allocation6 + $0x1], 1 }

</bundles_post_ra>
